<compile_context>
chip_gen: v7x
topology: tpu7x:2x2x1
jax: 0.10.0
libtpu: 0.0.40
codegen_flags: <defaults>
</compile_context>

<pallas_src>
import functools

import jax
import jax.numpy as jnp
from jax import lax
from jax.experimental import pallas as pl
from jax.experimental.pallas import tpu as pltpu


# ----------------------------------------------------------------------------
# Fused SEBottleneck kernel (B_blk batch images per grid step)
# ----------------------------------------------------------------------------
def _se_bottleneck_kernel(x_ref, w1_ref, b1_ref, w2_ref, b2_ref,
                          w3_ref, b3_ref, fc1_ref, fc2_ref,
                          o_ref, halo_ref, *, B, H, W, P, C):
    HW = H * W
    M = B * HW

    x = x_ref[...]                                    # (B, HW, C) f32 (also the residual)
    xf = x.reshape(M, C)                              # leading-dim reshape (free)

    # ---- conv1 1x1 (+ folded bn1) + relu : bf16 MXU operands, f32 accumulate ----
    h1 = jnp.dot(xf.astype(jnp.bfloat16), w1_ref[...],
                 preferred_element_type=jnp.float32)
    h1 = jnp.maximum(h1 + b1_ref[...], 0.0)           # (M, P) f32

    # ---- conv2 3x3 (pad=1) ------------------------------------------------------
    # dy halo lives in a bf16 VMEM scratch: zero the two halo rows, write conv1's
    # output into rows 1..H (already in the next matmul's operand dtype), and read
    # the three dy windows back as ref-view slices -> no pad/concat copies.
    halo_ref[:, 0:1, :, :] = jnp.zeros((B, 1, W, P), jnp.bfloat16)
    halo_ref[:, H + 1:H + 2, :, :] = jnp.zeros((B, 1, W, P), jnp.bfloat16)
    halo_ref[:, 1:H + 1, :, :] = h1.astype(jnp.bfloat16).reshape(B, H, W, P)

    # One matmul per dy tap (K=P, N=3P), accumulated in f32.  w2_ref[dy] has rows=cin
    # and columns ordered (dx, cout), with the bn2 scale pre-folded into the columns.
    gall = None
    for dy in range(3):
        win = halo_ref[:, dy:dy + H, :, :].reshape(M, P)          # bf16 view read
        part = jnp.dot(win, w2_ref[dy], preferred_element_type=jnp.float32)
        gall = part if gall is None else gall + part              # (M, 3P)

    # dx taps: shift the matmul *outputs* along W with XLU rolls + an iota mask
    # (zeroing the wrapped column) instead of zero-column concat copies.
    #   out[y,x] = G0[y,x-1] + G1[y,x] + G2[y,x+1]
    g = gall.reshape(B * H, W, 3 * P)
    g0 = g[:, :, 0 * P:1 * P]
    g1 = g[:, :, 1 * P:2 * P]
    g2 = g[:, :, 2 * P:3 * P]
    wx = lax.broadcasted_iota(jnp.int32, (B * H, W, P), 1)
    conv2 = (g1
             + jnp.where(wx > 0, pltpu.roll(g0, shift=1, axis=1), 0.0)
             + jnp.where(wx < W - 1, pltpu.roll(g2, shift=W - 1, axis=1), 0.0))
    h2 = jnp.maximum(conv2.reshape(M, P) + b2_ref[...], 0.0)      # (M, P) f32

    # ---- conv3 1x1 (+ folded bn3, no relu) --------------------------------------
    h3 = jnp.dot(h2.astype(jnp.bfloat16), w3_ref[...],
                 preferred_element_type=jnp.float32) + b3_ref[...]   # (M, C)
    h3b = h3.reshape(B, HW, C)

    # ---- SE gate + identity residual + relu, per image --------------------------
    # The two tiny FCs are done with VPU broadcast-multiply + XLU reduce (no MXU
    # weight pushes for M=1 matmuls).  x is already resident in VMEM for the residual.
    fc1 = fc1_ref[...]
    fc2 = fc2_ref[...]
    for b in range(B):                                # B is static -> unrolled
        pooled = jnp.sum(h3b[b], axis=0, keepdims=True) * (1.0 / HW)      # (1, C)
        hidden = jnp.maximum(
            jnp.sum(fc1 * pooled, axis=1, keepdims=True), 0.0)            # (Cr, 1)
        gate = jax.nn.sigmoid(
            jnp.sum(fc2 * hidden, axis=0, keepdims=True))                 # (1, C)
        o_ref[b] = jnp.maximum(h3b[b] * gate + x[b], 0.0).astype(o_ref.dtype)


def se_bottleneck_forward(x, p):
    """x: (N, H, W, Cin) f32 NHWC.  Requires Cin == 4*planes (identity residual)."""
    N, H, W, Cin = x.shape
    P = p["w_conv2"].shape[-1]          # planes
    Cout = p["w_conv3"].shape[-1]       # planes * 4
    Cr = p["w_fc1"].shape[0]
    assert Cin == Cout, "identity residual requires inplanes == planes * expansion"
    HW = H * W

    # Batch blocking: amortize the ~0.35us/step pipeline overhead while keeping
    # >= 2 "parallel" grid steps so both v7x TensorCores get work.
    b_blk = N // 2 if (N >= 2 and N % 2 == 0) else 1
    grid = (N // b_blk,)

    x2d = x.reshape(N, HW, Cin)                                   # free metadata reshape

    # Host-side weight prep: fold BN scales into the conv weights and pre-cast the
    # MXU operands to bf16 (single-pass MXU, half the weight DMA).  Biases stay f32.
    w1f = (p["w_conv1"] * p["bn1_scale"][None, :]).astype(jnp.bfloat16)      # (Cin, P)
    # (3,3,P,P) HWIO -> (dy, cin, dx, cout) -> (3, P, 3P); bn2 scale folded per cout.
    w2pack = jnp.transpose(p["w_conv2"], (0, 2, 1, 3)).reshape(3, P, 3 * P)
    w2f = (w2pack * jnp.tile(p["bn2_scale"], 3)[None, None, :]).astype(jnp.bfloat16)
    w3f = (p["w_conv3"] * p["bn3_scale"][None, :]).astype(jnp.bfloat16)      # (P, Cout)

    def vec(v):
        return v.reshape(1, -1).astype(jnp.float32)

    kernel = functools.partial(_se_bottleneck_kernel,
                               B=b_blk, H=H, W=W, P=P, C=Cout)

    flops = int(2 * N * HW * (Cin * P + 9 * P * P + P * Cout) + 4 * N * Cr * Cout)
    bytes_accessed = int(4 * (2 * N * HW * Cin + 2 * Cr * Cout + 2 * P + Cout)
                         + 2 * (Cin * P + 9 * P * P + P * Cout))

    # NOTE: weight blocks use constant index_maps, so Pallas does not re-DMA them on
    #       consecutive grid steps; VMEM use per step is < 1 MiB, fine on v5e/v6e/v7x.
    # TODO(synk): at real ResNet-stage sizes, repack I/O to a lane-dense (N, H, W*C)
    #             layout (trade in-kernel relayout vs masked vst) and consider a bf16
    #             output dtype to halve the writeback tail.
    out2d = pl.pallas_call(
        kernel,
        out_shape=jax.ShapeDtypeStruct((N, HW, Cout), jnp.float32),
        grid=grid,
        in_specs=[
            pl.BlockSpec((b_blk, HW, Cin), lambda n: (n, 0, 0)),   # x (also residual)
            pl.BlockSpec((Cin, P), lambda n: (0, 0)),              # conv1 (bn1 folded), bf16
            pl.BlockSpec((1, P), lambda n: (0, 0)),                # bn1 bias
            pl.BlockSpec((3, P, 3 * P), lambda n: (0, 0, 0)),      # conv2 packed (bn2 folded), bf16
            pl.BlockSpec((1, P), lambda n: (0, 0)),                # bn2 bias
            pl.BlockSpec((P, Cout), lambda n: (0, 0)),             # conv3 (bn3 folded), bf16
            pl.BlockSpec((1, Cout), lambda n: (0, 0)),             # bn3 bias
            pl.BlockSpec((Cr, Cout), lambda n: (0, 0)),            # SE fc1 (PyTorch layout)
            pl.BlockSpec((Cr, Cout), lambda n: (0, 0)),            # SE fc2 (transposed)
        ],
        out_specs=pl.BlockSpec((b_blk, HW, Cout), lambda n: (n, 0, 0)),
        scratch_shapes=[pltpu.VMEM((b_blk, H + 2, W, P), jnp.bfloat16)],  # conv2 dy halo
        compiler_params=pltpu.CompilerParams(dimension_semantics=("parallel",)),
        cost_estimate=pl.CostEstimate(flops=flops, transcendentals=int(N * Cout),
                                      bytes_accessed=bytes_accessed),
    )(x2d, w1f, vec(p["bn1_bias"]), w2f, vec(p["bn2_bias"]),
      w3f, vec(p["bn3_bias"]), p["w_fc1"], p["w_fc2_t"])

    return out2d.reshape(N, H, W, Cout)


# ----------------------------------------------------------------------------
# Helpers + pure-JAX reference
# ----------------------------------------------------------------------------
def fold_bn(gamma, beta, mean, var, eps=1e-5):
    scale = gamma / jnp.sqrt(var + eps)
    bias = beta - mean * scale
    return scale, bias


def reference_forward(x, p):
    out = jnp.einsum("nhwc,cd->nhwd", x, p["w_conv1"])
    out = jnp.maximum(out * p["bn1_scale"] + p["bn1_bias"], 0.0)
    out = lax.conv_general_dilated(out, p["w_conv2"], (1, 1), ((1, 1), (1, 1)),
                                   dimension_numbers=("NHWC", "HWIO", "NHWC"))
    out = jnp.maximum(out * p["bn2_scale"] + p["bn2_bias"], 0.0)
    out = jnp.einsum("nhwc,cd->nhwd", out, p["w_conv3"])
    out = out * p["bn3_scale"] + p["bn3_bias"]
    pooled = out.mean(axis=(1, 2))                            # (N, Cout)
    h = jnp.maximum(pooled @ p["w_fc1"].T, 0.0)               # (N, Cr)
    y = jax.nn.sigmoid(h @ p["w_fc2_t"])                      # (N, Cout)
    out = out * y[:, None, None, :]
    return jnp.maximum(out + x, 0.0)


if __name__ == "__main__":
    # SEBottleneck(inplanes=64, planes=16, stride=1, downsample=None, reduction=16)
    # expansion = 4  ->  output channels = 64 == inplanes, so identity residual applies.
    N, H, W = 4, 16, 16
    planes = 16
    Cin = Cout = planes * 4          # 64
    reduction = 16
    Cr = Cout // reduction           # 4

    key = jax.random.PRNGKey(0)
    ks = jax.random.split(key, 12)

    w_conv1 = jax.random.normal(ks[0], (Cin, planes), jnp.float32) * 0.1          # 1x1
    w_conv2 = jax.random.normal(ks[1], (3, 3, planes, planes), jnp.float32) * 0.1  # HWIO
    w_conv3 = jax.random.normal(ks[2], (planes, Cout), jnp.float32) * 0.1          # 1x1

    def rand_bn(k, c):
        k1, k2, k3, k4 = jax.random.split(k, 4)
        gamma = 1.0 + 0.1 * jax.random.normal(k1, (c,), jnp.float32)
        beta = 0.1 * jax.random.normal(k2, (c,), jnp.float32)
        mean = 0.1 * jax.random.normal(k3, (c,), jnp.float32)
        var = jnp.abs(jax.random.normal(k4, (c,), jnp.float32)) + 0.5
        return fold_bn(gamma, beta, mean, var)

    bn1_scale, bn1_bias = rand_bn(ks[3], planes)
    bn2_scale, bn2_bias = rand_bn(ks[4], planes)
    bn3_scale, bn3_bias = rand_bn(ks[5], Cout)

    # SE weights.  PyTorch: Linear(Cout, Cr).weight -> (Cr, Cout);
    #              Linear(Cr, Cout).weight -> (Cout, Cr), stored transposed here.
    w_fc1 = jax.random.normal(ks[6], (Cr, Cout), jnp.float32) * 0.1
    w_fc2_t = jax.random.normal(ks[7], (Cr, Cout), jnp.float32) * 0.1

    params = dict(w_conv1=w_conv1, w_conv2=w_conv2, w_conv3=w_conv3,
                  bn1_scale=bn1_scale, bn1_bias=bn1_bias,
                  bn2_scale=bn2_scale, bn2_bias=bn2_bias,
                  bn3_scale=bn3_scale, bn3_bias=bn3_bias,
                  w_fc1=w_fc1, w_fc2_t=w_fc2_t)

    x = jax.random.normal(ks[8], (N, H, W, Cin), jnp.float32)

    out = jax.block_until_ready(se_bottleneck_forward(x, params))
    ref = jax.block_until_ready(reference_forward(x, params))

    assert out.shape == (N, H, W, Cout)
    # Tolerance relaxed vs the all-f32 variant: the kernel now uses bf16 MXU operands
    # (with f32 accumulation) per the performance review.
    err = float(jnp.max(jnp.abs(out - ref)))
    assert jnp.allclose(out, ref, atol=2e-2, rtol=2e-2), f"max abs err = {err}"

    print("KERNEL_OK")
</pallas_src>

<mosaic_0001>
module attributes {stable_mosaic.version = 11 : i64} {
  func.func @_se_bottleneck_kernel(%arg0: i32, %arg1: memref<2x256x64xf32, #tpu.memory_space<vmem>>, %arg2: memref<64x16xbf16, #tpu.memory_space<vmem>>, %arg3: memref<1x16xf32, #tpu.memory_space<vmem>>, %arg4: memref<3x16x48xbf16, #tpu.memory_space<vmem>>, %arg5: memref<1x16xf32, #tpu.memory_space<vmem>>, %arg6: memref<16x64xbf16, #tpu.memory_space<vmem>>, %arg7: memref<1x64xf32, #tpu.memory_space<vmem>>, %arg8: memref<4x64xf32, #tpu.memory_space<vmem>>, %arg9: memref<4x64xf32, #tpu.memory_space<vmem>>, %arg10: memref<2x256x64xf32, #tpu.memory_space<vmem>>, %arg11: memref<2x18x16x16xbf16, #tpu.memory_space<vmem>>) attributes {dimension_semantics = [#tpu.dimension_semantics<parallel>], iteration_bounds = array<i64: 2>, scalar_prefetch = 0 : i64, scratch_operands = 1 : i64, tpu.core_type = #tpu.core_type<tc>, window_params = [{transform_indices = @transform_0, window_bounds = array<i64: 2, 256, 64>}, {pipeline_mode = #tpu.pipeline_mode<synchronous>, transform_indices = @transform_1, window_bounds = array<i64: 64, 16>}, {pipeline_mode = #tpu.pipeline_mode<synchronous>, transform_indices = @transform_2, window_bounds = array<i64: 1, 16>}, {pipeline_mode = #tpu.pipeline_mode<synchronous>, transform_indices = @transform_3, window_bounds = array<i64: 3, 16, 48>}, {pipeline_mode = #tpu.pipeline_mode<synchronous>, transform_indices = @transform_4, window_bounds = array<i64: 1, 16>}, {pipeline_mode = #tpu.pipeline_mode<synchronous>, transform_indices = @transform_5, window_bounds = array<i64: 16, 64>}, {pipeline_mode = #tpu.pipeline_mode<synchronous>, transform_indices = @transform_6, window_bounds = array<i64: 1, 64>}, {pipeline_mode = #tpu.pipeline_mode<synchronous>, transform_indices = @transform_7, window_bounds = array<i64: 4, 64>}, {pipeline_mode = #tpu.pipeline_mode<synchronous>, transform_indices = @transform_8, window_bounds = array<i64: 4, 64>}, {transform_indices = @transform_9, window_bounds = array<i64: 2, 256, 64>}]} {
    %c0 = arith.constant 0 : index
    %c0_0 = arith.constant 0 : index
    %c0_1 = arith.constant 0 : index
    %0 = vector.load %arg1[%c0, %c0_0, %c0_1] : memref<2x256x64xf32, #tpu.memory_space<vmem>>, vector<2x256x64xf32>
    %1 = vector.shape_cast %0 : vector<2x256x64xf32> to vector<512x64xf32>
    %2 = arith.truncf %1 : vector<512x64xf32> to vector<512x64xbf16>
    %c0_2 = arith.constant 0 : index
    %c0_3 = arith.constant 0 : index
    %3 = vector.load %arg2[%c0_2, %c0_3] : memref<64x16xbf16, #tpu.memory_space<vmem>>, vector<64x16xbf16>
    %cst = arith.constant dense<0.000000e+00> : vector<512x16xf32>
    %4 = tpu.matmul %2, %3, %cst {dimension_numbers = #tpu.dot_dimension_numbers<[1], [0], [0], [1], [0, 0, 1, 1], [], []>} : vector<512x64xbf16>, vector<64x16xbf16>, vector<512x16xf32> -> vector<512x16xf32>
    %c0_4 = arith.constant 0 : index
    %c0_5 = arith.constant 0 : index
    %5 = vector.load %arg3[%c0_4, %c0_5] : memref<1x16xf32, #tpu.memory_space<vmem>>, vector<1x16xf32>
    %6 = vector.broadcast %5 : vector<1x16xf32> to vector<512x16xf32>
    %7 = arith.addf %4, %6 : vector<512x16xf32>
    %cst_6 = arith.constant 0.000000e+00 : f32
    %8 = vector.broadcast %cst_6 : f32 to vector<512x16xf32>
    %9 = arith.maximumf %7, %8 : vector<512x16xf32>
    %cst_7 = arith.constant 0.000000e+00 : bf16
    %10 = vector.broadcast %cst_7 : bf16 to vector<2x1x16x16xbf16>
    %c0_8 = arith.constant 0 : index
    %c0_9 = arith.constant 0 : index
    %c0_10 = arith.constant 0 : index
    %c0_11 = arith.constant 0 : index
    %11 = vector.load %arg11[%c0_8, %c0_9, %c0_10, %c0_11] : memref<2x18x16x16xbf16, #tpu.memory_space<vmem>>, vector<2x1x16x16xbf16>
    tpu.vector_store %arg11[%c0_8, %c0_9, %c0_10, %c0_11], %10 {strides = array<i32>} : memref<2x18x16x16xbf16, #tpu.memory_space<vmem>>, vector<2x1x16x16xbf16>,
    %cst_12 = arith.constant 0.000000e+00 : bf16
    %12 = vector.broadcast %cst_12 : bf16 to vector<2x1x16x16xbf16>
    %c0_13 = arith.constant 0 : index
    %c17 = arith.constant 17 : index
    %c0_14 = arith.constant 0 : index
    %c0_15 = arith.constant 0 : index
    %13 = vector.load %arg11[%c0_13, %c17, %c0_14, %c0_15] : memref<2x18x16x16xbf16, #tpu.memory_space<vmem>>, vector<2x1x16x16xbf16>
    tpu.vector_store %arg11[%c0_13, %c17, %c0_14, %c0_15], %12 {strides = array<i32>} : memref<2x18x16x16xbf16, #tpu.memory_space<vmem>>, vector<2x1x16x16xbf16>,
    %14 = arith.truncf %9 : vector<512x16xf32> to vector<512x16xbf16>
    %15 = vector.shape_cast %14 : vector<512x16xbf16> to vector<2x16x16x16xbf16>
    %c0_16 = arith.constant 0 : index
    %c1 = arith.constant 1 : index
    %c0_17 = arith.constant 0 : index
    %c0_18 = arith.constant 0 : index
    %16 = vector.load %arg11[%c0_16, %c1, %c0_17, %c0_18] : memref<2x18x16x16xbf16, #tpu.memory_space<vmem>>, vector<2x16x16x16xbf16>
    tpu.vector_store %arg11[%c0_16, %c1, %c0_17, %c0_18], %15 {strides = array<i32>} : memref<2x18x16x16xbf16, #tpu.memory_space<vmem>>, vector<2x16x16x16xbf16>,
    %c0_19 = arith.constant 0 : index
    %c0_20 = arith.constant 0 : index
    %c0_21 = arith.constant 0 : index
    %c0_22 = arith.constant 0 : index
    %17 = vector.load %arg11[%c0_19, %c0_20, %c0_21, %c0_22] : memref<2x18x16x16xbf16, #tpu.memory_space<vmem>>, vector<2x16x16x16xbf16>
    %18 = vector.shape_cast %17 : vector<2x16x16x16xbf16> to vector<512x16xbf16>
    %c0_23 = arith.constant 0 : index
    %c0_24 = arith.constant 0 : index
    %c0_25 = arith.constant 0 : index
    %19 = vector.load %arg4[%c0_23, %c0_24, %c0_25] : memref<3x16x48xbf16, #tpu.memory_space<vmem>>, vector<1x16x48xbf16>
    %20 = vector.shape_cast %19 : vector<1x16x48xbf16> to vector<16x48xbf16>
    %cst_26 = arith.constant dense<0.000000e+00> : vector<512x48xf32>
    %21 = tpu.matmul %18, %20, %cst_26 {dimension_numbers = #tpu.dot_dimension_numbers<[1], [0], [0], [1], [0, 0, 1, 1], [], []>} : vector<512x16xbf16>, vector<16x48xbf16>, vector<512x48xf32> -> vector<512x48xf32>
    %c0_27 = arith.constant 0 : index
    %c1_28 = arith.constant 1 : index
    %c0_29 = arith.constant 0 : index
    %c0_30 = arith.constant 0 : index
    %22 = vector.load %arg11[%c0_27, %c1_28, %c0_29, %c0_30] : memref<2x18x16x16xbf16, #tpu.memory_space<vmem>>, vector<2x16x16x16xbf16>
    %23 = vector.shape_cast %22 : vector<2x16x16x16xbf16> to vector<512x16xbf16>
    %c1_31 = arith.constant 1 : index
    %c0_32 = arith.constant 0 : index
    %c0_33 = arith.constant 0 : index
    %24 = vector.load %arg4[%c1_31, %c0_32, %c0_33] : memref<3x16x48xbf16, #tpu.memory_space<vmem>>, vector<1x16x48xbf16>
    %25 = vector.shape_cast %24 : vector<1x16x48xbf16> to vector<16x48xbf16>
    %cst_34 = arith.constant dense<0.000000e+00> : vector<512x48xf32>
    %26 = tpu.matmul %23, %25, %cst_34 {dimension_numbers = #tpu.dot_dimension_numbers<[1], [0], [0], [1], [0, 0, 1, 1], [], []>} : vector<512x16xbf16>, vector<16x48xbf16>, vector<512x48xf32> -> vector<512x48xf32>
    %27 = arith.addf %21, %26 : vector<512x48xf32>
    %c0_35 = arith.constant 0 : index
    %c2 = arith.constant 2 : index
    %c0_36 = arith.constant 0 : index
    %c0_37 = arith.constant 0 : index
    %28 = vector.load %arg11[%c0_35, %c2, %c0_36, %c0_37] : memref<2x18x16x16xbf16, #tpu.memory_space<vmem>>, vector<2x16x16x16xbf16>
    %29 = vector.shape_cast %28 : vector<2x16x16x16xbf16> to vector<512x16xbf16>
    %c2_38 = arith.constant 2 : index
    %c0_39 = arith.constant 0 : index
    %c0_40 = arith.constant 0 : index
    %30 = vector.load %arg4[%c2_38, %c0_39, %c0_40] : memref<3x16x48xbf16, #tpu.memory_space<vmem>>, vector<1x16x48xbf16>
    %31 = vector.shape_cast %30 : vector<1x16x48xbf16> to vector<16x48xbf16>
    %cst_41 = arith.constant dense<0.000000e+00> : vector<512x48xf32>
    %32 = tpu.matmul %29, %31, %cst_41 {dimension_numbers = #tpu.dot_dimension_numbers<[1], [0], [0], [1], [0, 0, 1, 1], [], []>} : vector<512x16xbf16>, vector<16x48xbf16>, vector<512x48xf32> -> vector<512x48xf32>
    %33 = arith.addf %27, %32 : vector<512x48xf32>
    %34 = vector.shape_cast %33 : vector<512x48xf32> to vector<32x16x48xf32>
    %35 = vector.extract_strided_slice %34 {offsets = [0, 0, 0], sizes = [32, 16, 16], strides = [1, 1, 1]} : vector<32x16x48xf32> to vector<32x16x16xf32>
    %36 = vector.extract_strided_slice %34 {offsets = [0, 0, 16], sizes = [32, 16, 16], strides = [1, 1, 1]} : vector<32x16x48xf32> to vector<32x16x16xf32>
    %37 = vector.extract_strided_slice %34 {offsets = [0, 0, 32], sizes = [32, 16, 16], strides = [1, 1, 1]} : vector<32x16x48xf32> to vector<32x16x16xf32>
    %38 = tpu.iota {dimensions = array<i32: 1>} : vector<32x16x16xi32>
    %c0_i32 = arith.constant 0 : i32
    %39 = vector.broadcast %c0_i32 : i32 to vector<32x16x16xi32>
    %40 = arith.cmpi sgt, %38, %39 : vector<32x16x16xi32>
    %c1_i32 = arith.constant 1 : i32
    %41 = tpu.dynamic_rotate %35 by %c1_i32 dim 1 : vector<32x16x16xf32>, i32 -> vector<32x16x16xf32>
    %cst_42 = arith.constant 0.000000e+00 : f32
    %42 = vector.broadcast %cst_42 : f32 to vector<32x16x16xf32>
    %43 = arith.select %40, %41, %42 : vector<32x16x16xi1>, vector<32x16x16xf32>
    %44 = arith.addf %36, %43 : vector<32x16x16xf32>
    %c15_i32 = arith.constant 15 : i32
    %45 = vector.broadcast %c15_i32 : i32 to vector<32x16x16xi32>
    %46 = arith.cmpi slt, %38, %45 : vector<32x16x16xi32>
    %c15_i32_43 = arith.constant 15 : i32
    %47 = tpu.dynamic_rotate %37 by %c15_i32_43 dim 1 : vector<32x16x16xf32>, i32 -> vector<32x16x16xf32>
    %cst_44 = arith.constant 0.000000e+00 : f32
    %48 = vector.broadcast %cst_44 : f32 to vector<32x16x16xf32>
    %49 = arith.select %46, %47, %48 : vector<32x16x16xi1>, vector<32x16x16xf32>
    %50 = arith.addf %44, %49 : vector<32x16x16xf32>
    %51 = vector.shape_cast %50 : vector<32x16x16xf32> to vector<512x16xf32>
    %c0_45 = arith.constant 0 : index
    %c0_46 = arith.constant 0 : index
    %52 = vector.load %arg5[%c0_45, %c0_46] : memref<1x16xf32, #tpu.memory_space<vmem>>, vector<1x16xf32>
    %53 = vector.broadcast %52 : vector<1x16xf32> to vector<512x16xf32>
    %54 = arith.addf %51, %53 : vector<512x16xf32>
    %cst_47 = arith.constant 0.000000e+00 : f32
    %55 = vector.broadcast %cst_47 : f32 to vector<512x16xf32>
    %56 = arith.maximumf %54, %55 : vector<512x16xf32>
    %57 = arith.truncf %56 : vector<512x16xf32> to vector<512x16xbf16>
    %c0_48 = arith.constant 0 : index
    %c0_49 = arith.constant 0 : index
    %58 = vector.load %arg6[%c0_48, %c0_49] : memref<16x64xbf16, #tpu.memory_space<vmem>>, vector<16x64xbf16>
    %cst_50 = arith.constant dense<0.000000e+00> : vector<512x64xf32>
    %59 = tpu.matmul %57, %58, %cst_50 {dimension_numbers = #tpu.dot_dimension_numbers<[1], [0], [0], [1], [0, 0, 1, 1], [], []>} : vector<512x16xbf16>, vector<16x64xbf16>, vector<512x64xf32> -> vector<512x64xf32>
    %c0_51 = arith.constant 0 : index
    %c0_52 = arith.constant 0 : index
    %60 = vector.load %arg7[%c0_51, %c0_52] : memref<1x64xf32, #tpu.memory_space<vmem>>, vector<1x64xf32>
    %61 = vector.broadcast %60 : vector<1x64xf32> to vector<512x64xf32>
    %62 = arith.addf %59, %61 : vector<512x64xf32>
    %63 = vector.shape_cast %62 : vector<512x64xf32> to vector<2x256x64xf32>
    %c0_53 = arith.constant 0 : index
    %c0_54 = arith.constant 0 : index
    %64 = vector.load %arg8[%c0_53, %c0_54] : memref<4x64xf32, #tpu.memory_space<vmem>>, vector<4x64xf32>
    %c0_55 = arith.constant 0 : index
    %c0_56 = arith.constant 0 : index
    %65 = vector.load %arg9[%c0_55, %c0_56] : memref<4x64xf32, #tpu.memory_space<vmem>>, vector<4x64xf32>
    %66 = vector.extract_strided_slice %63 {offsets = [0, 0, 0], sizes = [1, 256, 64], strides = [1, 1, 1]} : vector<2x256x64xf32> to vector<1x256x64xf32>
    %67 = vector.shape_cast %66 : vector<1x256x64xf32> to vector<256x64xf32>
    %cst_57 = arith.constant dense<0.000000e+00> : vector<64xf32>
    %68 = vector.multi_reduction <add>, %67, %cst_57 [0] : vector<256x64xf32> to vector<64xf32>
    %69 = vector.shape_cast %68 : vector<64xf32> to vector<1x64xf32>
    %cst_58 = arith.constant 3.906250e-03 : f32
    %70 = vector.broadcast %cst_58 : f32 to vector<1x64xf32>
    %71 = arith.mulf %69, %70 : vector<1x64xf32>
    %72 = vector.broadcast %71 : vector<1x64xf32> to vector<4x64xf32>
    %73 = arith.mulf %64, %72 : vector<4x64xf32>
    %cst_59 = arith.constant dense<0.000000e+00> : vector<4xf32>
    %74 = vector.multi_reduction <add>, %73, %cst_59 [1] : vector<4x64xf32> to vector<4xf32>
    %75 = vector.shape_cast %74 : vector<4xf32> to vector<4x1xf32>
    %cst_60 = arith.constant 0.000000e+00 : f32
    %76 = vector.broadcast %cst_60 : f32 to vector<4x1xf32>
    %77 = arith.maximumf %75, %76 : vector<4x1xf32>
    %78 = vector.broadcast %77 : vector<4x1xf32> to vector<4x64xf32>
    %79 = arith.mulf %65, %78 : vector<4x64xf32>
    %cst_61 = arith.constant dense<0.000000e+00> : vector<64xf32>
    %80 = vector.multi_reduction <add>, %79, %cst_61 [0] : vector<4x64xf32> to vector<64xf32>
    %81 = vector.shape_cast %80 : vector<64xf32> to vector<1x64xf32>
    %82 = arith.negf %81 : vector<1x64xf32>
    %83 = math.exp %82 : vector<1x64xf32>
    %cst_62 = arith.constant 1.000000e+00 : f32
    %84 = vector.broadcast %cst_62 : f32 to vector<1x64xf32>
    %85 = arith.addf %84, %83 : vector<1x64xf32>
    %86 = arith.divf %84, %85 : vector<1x64xf32>
    %87 = vector.extract_strided_slice %63 {offsets = [0, 0, 0], sizes = [1, 256, 64], strides = [1, 1, 1]} : vector<2x256x64xf32> to vector<1x256x64xf32>
    %88 = vector.shape_cast %87 : vector<1x256x64xf32> to vector<256x64xf32>
    %89 = vector.broadcast %86 : vector<1x64xf32> to vector<256x64xf32>
    %90 = arith.mulf %88, %89 : vector<256x64xf32>
    %91 = vector.extract_strided_slice %0 {offsets = [0, 0, 0], sizes = [1, 256, 64], strides = [1, 1, 1]} : vector<2x256x64xf32> to vector<1x256x64xf32>
    %92 = vector.shape_cast %91 : vector<1x256x64xf32> to vector<256x64xf32>
    %93 = arith.addf %90, %92 : vector<256x64xf32>
    %cst_63 = arith.constant 0.000000e+00 : f32
    %94 = vector.broadcast %cst_63 : f32 to vector<256x64xf32>
    %95 = arith.maximumf %93, %94 : vector<256x64xf32>
    %c0_64 = arith.constant 0 : index
    %c0_65 = arith.constant 0 : index
    %c0_66 = arith.constant 0 : index
    %96 = vector.load %arg10[%c0_64, %c0_65, %c0_66] : memref<2x256x64xf32, #tpu.memory_space<vmem>>, vector<1x256x64xf32>
    %97 = vector.shape_cast %96 : vector<1x256x64xf32> to vector<256x64xf32>
    %98 = vector.shape_cast %95 : vector<256x64xf32> to vector<1x256x64xf32>
    tpu.vector_store %arg10[%c0_64, %c0_65, %c0_66], %98 {strides = array<i32>} : memref<2x256x64xf32, #tpu.memory_space<vmem>>, vector<1x256x64xf32>,
    %99 = vector.extract_strided_slice %63 {offsets = [1, 0, 0], sizes = [1, 256, 64], strides = [1, 1, 1]} : vector<2x256x64xf32> to vector<1x256x64xf32>
    %100 = vector.shape_cast %99 : vector<1x256x64xf32> to vector<256x64xf32>
    %cst_67 = arith.constant dense<0.000000e+00> : vector<64xf32>
    %101 = vector.multi_reduction <add>, %100, %cst_67 [0] : vector<256x64xf32> to vector<64xf32>
    %102 = vector.shape_cast %101 : vector<64xf32> to vector<1x64xf32>
    %cst_68 = arith.constant 3.906250e-03 : f32
    %103 = vector.broadcast %cst_68 : f32 to vector<1x64xf32>
    %104 = arith.mulf %102, %103 : vector<1x64xf32>
    %105 = vector.broadcast %104 : vector<1x64xf32> to vector<4x64xf32>
    %106 = arith.mulf %64, %105 : vector<4x64xf32>
    %cst_69 = arith.constant dense<0.000000e+00> : vector<4xf32>
    %107 = vector.multi_reduction <add>, %106, %cst_69 [1] : vector<4x64xf32> to vector<4xf32>
    %108 = vector.shape_cast %107 : vector<4xf32> to vector<4x1xf32>
    %cst_70 = arith.constant 0.000000e+00 : f32
    %109 = vector.broadcast %cst_70 : f32 to vector<4x1xf32>
    %110 = arith.maximumf %108, %109 : vector<4x1xf32>
    %111 = vector.broadcast %110 : vector<4x1xf32> to vector<4x64xf32>
    %112 = arith.mulf %65, %111 : vector<4x64xf32>
    %cst_71 = arith.constant dense<0.000000e+00> : vector<64xf32>
    %113 = vector.multi_reduction <add>, %112, %cst_71 [0] : vector<4x64xf32> to vector<64xf32>
    %114 = vector.shape_cast %113 : vector<64xf32> to vector<1x64xf32>
    %115 = arith.negf %114 : vector<1x64xf32>
    %116 = math.exp %115 : vector<1x64xf32>
    %cst_72 = arith.constant 1.000000e+00 : f32
    %117 = vector.broadcast %cst_72 : f32 to vector<1x64xf32>
    %118 = arith.addf %117, %116 : vector<1x64xf32>
    %119 = arith.divf %117, %118 : vector<1x64xf32>
    %120 = vector.extract_strided_slice %63 {offsets = [1, 0, 0], sizes = [1, 256, 64], strides = [1, 1, 1]} : vector<2x256x64xf32> to vector<1x256x64xf32>
    %121 = vector.shape_cast %120 : vector<1x256x64xf32> to vector<256x64xf32>
    %122 = vector.broadcast %119 : vector<1x64xf32> to vector<256x64xf32>
    %123 = arith.mulf %121, %122 : vector<256x64xf32>
    %124 = vector.extract_strided_slice %0 {offsets = [1, 0, 0], sizes = [1, 256, 64], strides = [1, 1, 1]} : vector<2x256x64xf32> to vector<1x256x64xf32>
    %125 = vector.shape_cast %124 : vector<1x256x64xf32> to vector<256x64xf32>
    %126 = arith.addf %123, %125 : vector<256x64xf32>
    %cst_73 = arith.constant 0.000000e+00 : f32
    %127 = vector.broadcast %cst_73 : f32 to vector<256x64xf32>
    %128 = arith.maximumf %126, %127 : vector<256x64xf32>
    %c1_74 = arith.constant 1 : index
    %c0_75 = arith.constant 0 : index
    %c0_76 = arith.constant 0 : index
    %129 = vector.load %arg10[%c1_74, %c0_75, %c0_76] : memref<2x256x64xf32, #tpu.memory_space<vmem>>, vector<1x256x64xf32>
    %130 = vector.shape_cast %129 : vector<1x256x64xf32> to vector<256x64xf32>
    %131 = vector.shape_cast %128 : vector<256x64xf32> to vector<1x256x64xf32>
    tpu.vector_store %arg10[%c1_74, %c0_75, %c0_76], %131 {strides = array<i32>} : memref<2x256x64xf32, #tpu.memory_space<vmem>>, vector<1x256x64xf32>,
    return
  }
  func.func @transform_0(%arg0: i32) -> (i32, i32, i32) {
    %c0_i32 = arith.constant 0 : i32
    %c0_i32_0 = arith.constant 0 : i32
    %c0_i32_1 = arith.constant 0 : i32
    return %arg0, %c0_i32, %c0_i32_0 : i32, i32, i32
  }
  func.func @transform_1(%arg0: i32) -> (i32, i32) {
    %c0_i32 = arith.constant 0 : i32
    %c0_i32_0 = arith.constant 0 : i32
    %c0_i32_1 = arith.constant 0 : i32
    return %c0_i32, %c0_i32_0 : i32, i32
  }
  func.func @transform_2(%arg0: i32) -> (i32, i32) {
    %c0_i32 = arith.constant 0 : i32
    %c0_i32_0 = arith.constant 0 : i32
    %c0_i32_1 = arith.constant 0 : i32
    return %c0_i32, %c0_i32_0 : i32, i32
  }
  func.func @transform_3(%arg0: i32) -> (i32, i32, i32) {
    %c0_i32 = arith.constant 0 : i32
    %c0_i32_0 = arith.constant 0 : i32
    %c0_i32_1 = arith.constant 0 : i32
    %c0_i32_2 = arith.constant 0 : i32
    return %c0_i32, %c0_i32_0, %c0_i32_1 : i32, i32, i32
  }
  func.func @transform_4(%arg0: i32) -> (i32, i32) {
    %c0_i32 = arith.constant 0 : i32
    %c0_i32_0 = arith.constant 0 : i32
    %c0_i32_1 = arith.constant 0 : i32
    return %c0_i32, %c0_i32_0 : i32, i32
  }
  func.func @transform_5(%arg0: i32) -> (i32, i32) {
    %c0_i32 = arith.constant 0 : i32
    %c0_i32_0 = arith.constant 0 : i32
    %c0_i32_1 = arith.constant 0 : i32
    return %c0_i32, %c0_i32_0 : i32, i32
  }
  func.func @transform_6(%arg0: i32) -> (i32, i32) {
    %c0_i32 = arith.constant 0 : i32
    %c0_i32_0 = arith.constant 0 : i32
    %c0_i32_1 = arith.constant 0 : i32
    return %c0_i32, %c0_i32_0 : i32, i32
  }
  func.func @transform_7(%arg0: i32) -> (i32, i32) {
    %c0_i32 = arith.constant 0 : i32
    %c0_i32_0 = arith.constant 0 : i32
    %c0_i32_1 = arith.constant 0 : i32
    return %c0_i32, %c0_i32_0 : i32, i32
  }
  func.func @transform_8(%arg0: i32) -> (i32, i32) {
    %c0_i32 = arith.constant 0 : i32
    %c0_i32_0 = arith.constant 0 : i32
    %c0_i32_1 = arith.constant 0 : i32
    return %c0_i32, %c0_i32_0 : i32, i32
  }
  func.func @transform_9(%arg0: i32) -> (i32, i32, i32) {
    %c0_i32 = arith.constant 0 : i32
    %c0_i32_0 = arith.constant 0 : i32
    %c0_i32_1 = arith.constant 0 : i32
    return %arg0, %c0_i32, %c0_i32_0 : i32, i32, i32
  }
}

</mosaic_0001>

<bundles_post_ra>
// kernel: tpu_custom_call.1
= control target key start
LH: loop header
LB: loop body
LE: loop exit
PB: predicated region body
PF: predicated region fallthrough
CT: control target
= control target key end

     0   :  { %s5802_s30 = smov 0   ;;  %s8706_s0 = inlined_call_operand.vmem [shape: f32[4,256,64], index: 0, kind: input, shape index: {}]   ;;  %s8707_s1 = inlined_call_operand.vmem [shape: bf16[64,16], index: 1, kind: input, shape index: {}]   ;;  %s8708_s2 = inlined_call_operand.vmem [shape: f32[1,16], index: 2, kind: input, shape index: {}]   ;;  %s8709_s3 = inlined_call_operand.vmem [shape: bf16[3,16,48], index: 3, kind: input, shape index: {}]   ;;  %s8710_s4 = inlined_call_operand.vmem [shape: f32[1,16], index: 4, kind: input, shape index: {}]   ;;  %s8711_s5 = inlined_call_operand.vmem [shape: bf16[16,64], index: 5, kind: input, shape index: {}]   ;;  %s8712_s6 = inlined_call_operand.vmem [shape: f32[1,64], index: 6, kind: input, shape index: {}]   ;;  %s8713_s7 = inlined_call_operand.vmem [shape: f32[4,64], index: 7, kind: input, shape index: {}]   ;;  %s8714_s8 = inlined_call_operand.vmem [shape: f32[4,64], index: 8, kind: input, shape index: {}]   ;;  %s8715_s9 = inlined_call_operand.vmem [shape: f32[4,256,64], index: 9, kind: output, shape index: {}]  }
   0x1 LB: > { %s4790_s10 = sadd.s32 4294967295, %s5746_s30   ;;  %p4794_p0 = scmp.ge.s32.totalorder %s5746_s30, 1  ;;  %s5746_s30 = sphi %s5802_s30, %s19_s30  }
   0x2   : > { %p289_p1 = scmp.lt.s32.totalorder %s5746_s30, 3 }
   0x4   : > { %p290_p2 = pnand %p4794_p0, %p289_p1 }
   0x6   : > { %293 = sbr.rel (%p290_p2) target bundleno = 1852 (0x73c), region = 56 }
   0xd   : > { %v5660_v0 = vld [vmem:[%s8707_s1] sm:$0xff]   ;;  %s4795_s13 = sshll.u32 %s4790_s10, 1  ;;  %v5661_v1 = vld [vmem:[%s8707_s1 + $0x8] sm:$0xff]   ;;  %v5662_v2 = vld [vmem:[%s8707_s1 + $0x10] sm:$0xff]   ;;  %vm477_vm0 = vcmask 523264   ;;  %vm927_vm1 = vcmask 130048  }
   0xe   : > { %p328_p3 = scmp.lt.s32.totalorder %s4795_s13, 3  ;;  %5182 = vmatprep.subr.bf16.mxu0 %v5660_v0  ;;  %v5663_v5 = vld [vmem:[%s8707_s1 + $0x18] sm:$0xff]   ;;  %s5749_s15 = smov 16   ;;  %vm4367_vm6 = vcmask 519168  }
   0xf   : > { %5183 = vmatpush3.bf16.msra.mxu0 %v5660_v0  ;;  %s5750_s16 = smov 96   ;;  %s5751_s20 = smov 112  }
  0x10   : > { %s9039_s13 = smov (!%p328_p3, %s4795_s13), 3  ;;  %5184 = vmatprep.subr.bf16.mxu0 %v5661_v1 }
  0x11   : > { %s5012_s18 = sshll.u32 %s9039_s13, 8 }
  0x12   : > { %s5827_s21 = scalar_lea.vmem %s8706_s0, %s5012_s18  ;;  %s8358_s10 = scalar_lea.vmem %s8715_s9, %s5012_s18 }
  0x13   : > { %5185 = vmatpush3.bf16.msra.mxu0 %v5661_v1  ;;  %v342_v3 = vld [vmem:[%s5827_s21] sm:$0xff]  ;;  %v343_v4 = vld [vmem:[%s5827_s21 + $0x8] sm:$0xff]  ;;  %v344_v7 = vld [vmem:[%s5827_s21 + $0x10] sm:$0xff] }
  0x14   : > { %5186 = vmatprep.subr.bf16.mxu0 %v5662_v2  ;;  %v406_v6 = vpack.c.bf16 %v343_v4, %v342_v3  ;;  %v345_v8 = vld [vmem:[%s5827_s21 + $0x18] sm:$0xff]  ;;  %v346_v9 = vld [vmem:[%s5827_s21 + $0x20] sm:$0xff]  ;;  %v347_v10 = vld [vmem:[%s5827_s21 + $0x28] sm:$0xff] }
  0x15   : > { %v407_v11 = vpack.c.bf16 %v345_v8, %v344_v7  ;;  %v408_v12 = vpack.c.bf16 %v347_v10, %v346_v9  ;;  %v348_v13 = vld [vmem:[%s5827_s21 + $0x30] sm:$0xff]  ;;  %v349_v14 = vld [vmem:[%s5827_s21 + $0x38] sm:$0xff]  ;;  %v350_v15 = vld [vmem:[%s5827_s21 + $0x40] sm:$0xff] }
  0x16   : > { %5190 = vmatprep.mubr.msk.bf16.mxu0 %vm477_vm0, %v406_v6  ;;  %v351_v16 = vld [vmem:[%s5827_s21 + $0x48] sm:$0xff]  ;;  %v409_v17 = vpack.c.bf16 %v349_v14, %v348_v13  ;;  %v352_v19 = vld [vmem:[%s5827_s21 + $0x50] sm:$0xff]  ;;  %v353_v20 = vld [vmem:[%s5827_s21 + $0x58] sm:$0xff] }
  0x17   : > { %5187 = vmatpush3.bf16.msra.mxu0 %v5662_v2  ;;  %v410_v18 = vpack.c.bf16 %v351_v16, %v350_v15  ;;  %v354_v21 = vld [vmem:[%s5827_s21 + $0x60] sm:$0xff]  ;;  %v355_v22 = vld [vmem:[%s5827_s21 + $0x68] sm:$0xff]  ;;  %v411_v23 = vpack.c.bf16 %v353_v20, %v352_v19  ;;  %v356_v25 = vld [vmem:[%s5827_s21 + $0x70] sm:$0xff] }
  0x18   : > { %5188 = vmatprep.subr.bf16.mxu0 %v5663_v5  ;;  %v412_v24 = vpack.c.bf16 %v355_v22, %v354_v21  ;;  %v357_v26 = vld [vmem:[%s5827_s21 + $0x78] sm:$0xff]  ;;  %v358_v27 = vld [vmem:[%s5827_s21 + $0x80] sm:$0xff]  ;;  %v359_v28 = vld [vmem:[%s5827_s21 + $0x88] sm:$0xff] }
  0x19   : > { %v413_v29 = vpack.c.bf16 %v357_v26, %v356_v25  ;;  %v414_v30 = vpack.c.bf16 %v359_v28, %v358_v27  ;;  %v360_v31 = vld [vmem:[%s5827_s21 + $0x90] sm:$0xff]  ;;  %v361_v32 = vld [vmem:[%s5827_s21 + $0x98] sm:$0xff]  ;;  %v362_v33 = vld [vmem:[%s5827_s21 + $0xa0] sm:$0xff] }
  0x1a   : > { %v363_v34 = vld [vmem:[%s5827_s21 + $0xa8] sm:$0xff]  ;;  %v415_v35 = vpack.c.bf16 %v361_v32, %v360_v31  ;;  %v364_v37 = vld [vmem:[%s5827_s21 + $0xb0] sm:$0xff]  ;;  %v365_v38 = vld [vmem:[%s5827_s21 + $0xb8] sm:$0xff] }
  0x1b   : > { %5189 = vmatpush3.bf16.msra.mxu0 %v5663_v5  ;;  %v416_v36 = vpack.c.bf16 %v363_v34, %v362_v33  ;;  %v366_v39 = vld [vmem:[%s5827_s21 + $0xc0] sm:$0xff]  ;;  %v367_v40 = vld [vmem:[%s5827_s21 + $0xc8] sm:$0xff]  ;;  %v417_v41 = vpack.c.bf16 %v365_v38, %v364_v37  ;;  %v368_v43 = vld [vmem:[%s5827_s21 + $0xd0] sm:$0xff] }
  0x1c   : > { %v418_v42 = vpack.c.bf16 %v367_v40, %v366_v39  ;;  %v369_v44 = vld [vmem:[%s5827_s21 + $0xd8] sm:$0xff]  ;;  %v370_v45 = vld [vmem:[%s5827_s21 + $0xe0] sm:$0xff]  ;;  %v371_v46 = vld [vmem:[%s5827_s21 + $0xe8] sm:$0xff] }
  0x1d   : > { %v419_v47 = vpack.c.bf16 %v369_v44, %v368_v43  ;;  %v420_v48 = vpack.c.bf16 %v371_v46, %v370_v45  ;;  %v372_v49 = vld [vmem:[%s5827_s21 + $0xf0] sm:$0xff]  ;;  %v373_v50 = vld [vmem:[%s5827_s21 + $0xf8] sm:$0xff]  ;;  %v374_v51 = vld [vmem:[%s5827_s21 + $0x100] sm:$0xff] }
  0x1e   : > { %5191 = vmatmul.mubr.msk.bf16.vlgmr.msra.gmra.mrb[0].mxu0 %vm477_vm0, %v407_v11  ;;  %v375_v52 = vld [vmem:[%s5827_s21 + $0x108] sm:$0xff]  ;;  %v421_v53 = vpack.c.bf16 %v373_v50, %v372_v49  ;;  %v376_v55 = vld [vmem:[%s5827_s21 + $0x110] sm:$0xff]  ;;  %v377_v56 = vld [vmem:[%s5827_s21 + $0x118] sm:$0xff] }
  0x1f   : > { %5194 = vmatprep.mubr.msk.bf16.mxu0 %vm477_vm0, %v408_v12  ;;  %v422_v54 = vpack.c.bf16 %v375_v52, %v374_v51  ;;  %v378_v57 = vld [vmem:[%s5827_s21 + $0x120] sm:$0xff]  ;;  %v379_v58 = vld [vmem:[%s5827_s21 + $0x128] sm:$0xff]  ;;  %v423_v59 = vpack.c.bf16 %v377_v56, %v376_v55  ;;  %v380_v61 = vld [vmem:[%s5827_s21 + $0x130] sm:$0xff] }
  0x20   : > { %v424_v60 = vpack.c.bf16 %v379_v58, %v378_v57  ;;  %v381_v62 = vld [vmem:[%s5827_s21 + $0x138] sm:$0xff]  ;;  %v382_v63 = vld [vmem:[%s5827_s21 + $0x140] sm:$0xff]  ;;  %v383_v0 = vld [vmem:[%s5827_s21 + $0x148] sm:$0xff]  ;;  %v5748_v58 = vmov 0  }
  0x21   : > { %v425_v1 = vpack.c.bf16 %v381_v62, %v380_v61  ;;  %v426_v2 = vpack.c.bf16 %v383_v0, %v382_v63  ;;  %v384_v3 = vld [vmem:[%s5827_s21 + $0x150] sm:$0xff]  ;;  %v385_v4 = vld [vmem:[%s5827_s21 + $0x158] sm:$0xff]  ;;  %v386_v5 = vld [vmem:[%s5827_s21 + $0x160] sm:$0xff]  ;;  %928 = vst.msk [vmem:[#allocation2] sm:$0xff] %vm927_vm1, %v5748_v58 }
  0x22   : > { %v387_v6 = vld [vmem:[%s5827_s21 + $0x168] sm:$0xff]  ;;  %v427_v7 = vpack.c.bf16 %v385_v4, %v384_v3  ;;  %v388_v9 = vld [vmem:[%s5827_s21 + $0x170] sm:$0xff]  ;;  %v389_v10 = vld [vmem:[%s5827_s21 + $0x178] sm:$0xff]  ;;  %929 = vst.msk [vmem:[#allocation2 + $0x90] sm:$0xff] %vm927_vm1, %v5748_v58 }
  0x23   : > { %v428_v8 = vpack.c.bf16 %v387_v6, %v386_v5  ;;  %v390_v11 = vld [vmem:[%s5827_s21 + $0x180] sm:$0xff]  ;;  %v391_v12 = vld [vmem:[%s5827_s21 + $0x188] sm:$0xff]  ;;  %v429_v13 = vpack.c.bf16 %v389_v10, %v388_v9  ;;  %v392_v15 = vld [vmem:[%s5827_s21 + $0x190] sm:$0xff]  ;;  %931 = vst.msk [vmem:[#allocation2 + $0x88] sm:$0xff] %vm927_vm1, %v5748_v58 }
  0x24   : > { %v430_v14 = vpack.c.bf16 %v391_v12, %v390_v11  ;;  %v393_v16 = vld [vmem:[%s5827_s21 + $0x198] sm:$0xff]  ;;  %v5664_v21 = vld [vmem:[%s8709_s3 + $0x8] sm:$0xff]   ;;  %v396_v22 = vld [vmem:[%s5827_s21 + $0x1b0] sm:$0xff]  ;;  %932 = vst.msk [vmem:[#allocation2 + $0x118] sm:$0xff] %vm927_vm1, %v5748_v58 }
  0x25   : > { %v431_v19 = vpack.c.bf16 %v393_v16, %v392_v15  ;;  %v399_v25 = vld [vmem:[%s5827_s21 + $0x1c8] sm:$0xff]  ;;  %5254 = vmatprep.subr.bf16.mxu0 %v5664_v21  ;;  %5518 = vmatprep.subr.bf16.mxu1 %v5664_v21  ;;  %v400_v28 = vld [vmem:[%s5827_s21 + $0x1d0] sm:$0xff]  ;;  %v5934_v37 = vld [vmem:[%s8709_s3] sm:$0xff]  }
  0x26   : > { %5195 = vmatmul.mubr.msk.bf16.gmra.mrb[4].mxu0 %vm477_vm0, %v409_v17  ;;  %v394_v17 = vld [vmem:[%s5827_s21 + $0x1a0] sm:$0xff]  ;;  %5519 = vmatpush3.bf16.msra.mxu1 %v5664_v21  ;;  %v403_v31 = vld [vmem:[%s5827_s21 + $0x1e8] sm:$0xff]  ;;  %v404_v34 = vld [vmem:[%s5827_s21 + $0x1f0] sm:$0xff] }
  0x27   : > { %5198 = vmatprep.mubr.msk.bf16.mxu0 %vm477_vm0, %v410_v18  ;;  %v395_v18 = vld [vmem:[%s5827_s21 + $0x1a8] sm:$0xff]  ;;  %5255 = vmatpush3.bf16.msra.mxu0 %v5664_v21  ;;  %v5940_v38 = vld [vmem:[%s8708_s2] ss:$0 sm:$0xff] }
  0x28   : > { %v432_v20 = vpack.c.bf16 %v395_v18, %v394_v17  ;;  %5320 = vmatprep.subr.bf16.mxu1 %v5934_v37 }
  0x2e   : > { %5199 = vmatmul.mubr.msk.bf16.gmra.mrb[8].mxu0 %vm477_vm0, %v411_v23  ;;  %v397_v23 = vld [vmem:[%s5827_s21 + $0x1b8] sm:$0xff] }
  0x2f   : > { %5202 = vmatprep.mubr.msk.bf16.mxu0 %vm477_vm0, %v412_v24  ;;  %v398_v24 = vld [vmem:[%s5827_s21 + $0x1c0] sm:$0xff]  ;;  %v433_v26 = vpack.c.bf16 %v397_v23, %v396_v22 }
  0x30   : > { %v434_v27 = vpack.c.bf16 %v399_v25, %v398_v24 }
  0x36   : > { %5203 = vmatmul.mubr.msk.bf16.gmra.mrb[12].mxu0 %vm477_vm0, %v413_v29  ;;  %v401_v29 = vld [vmem:[%s5827_s21 + $0x1d8] sm:$0xff] }
  0x37   : > { %5206 = vmatprep.mubr.msk.bf16.mxu0 %vm477_vm0, %v414_v30  ;;  %v402_v30 = vld [vmem:[%s5827_s21 + $0x1e0] sm:$0xff]  ;;  %v435_v32 = vpack.c.bf16 %v401_v29, %v400_v28 }
  0x38   : > { %v436_v33 = vpack.c.bf16 %v403_v31, %v402_v30 }
  0x3e   : > { %5207 = vmatmul.mubr.msk.bf16.gmra.mrb[16].mxu0 %vm477_vm0, %v415_v35  ;;  %v405_v35 = vld [vmem:[%s5827_s21 + $0x1f8] sm:$0xff] }
  0x3f   : > { %5210 = vmatprep.mubr.msk.bf16.mxu0 %vm477_vm0, %v416_v36  ;;  %v437_v36 = vpack.c.bf16 %v405_v35, %v404_v34 }
  0x46   : > { %5211 = vmatmul.mubr.msk.bf16.gmra.mrb[20].mxu0 %vm477_vm0, %v417_v41 }
  0x47   : > { %5214 = vmatprep.mubr.msk.bf16.mxu0 %vm477_vm0, %v418_v42 }
  0x4e   : > { %5215 = vmatmul.mubr.msk.bf16.gmra.mrb[24].mxu0 %vm477_vm0, %v419_v47 }
  0x4f   : > { %5218 = vmatprep.mubr.msk.bf16.mxu0 %vm477_vm0, %v420_v48 }
  0x56   : > { %5219 = vmatmul.mubr.msk.bf16.gmra.mrb[28].mxu0 %vm477_vm0, %v421_v53 }
  0x57   : > { %5222 = vmatprep.mubr.msk.bf16.mxu0 %vm477_vm0, %v422_v54 }
  0x5e   : > { %5223 = vmatmul.mubr.msk.bf16.gmra.mrb[32].mxu0 %vm477_vm0, %v423_v59 }
  0x5f   : > { %5226 = vmatprep.mubr.msk.bf16.mxu0 %vm477_vm0, %v424_v60 }
  0x66   : > { %5227 = vmatmul.mubr.msk.bf16.gmra.mrb[36].mxu0 %vm477_vm0, %v425_v1 }
  0x67   : > { %5230 = vmatprep.mubr.msk.bf16.mxu0 %vm477_vm0, %v426_v2 }
  0x6e   : > { %5231 = vmatmul.mubr.msk.bf16.gmra.mrb[40].mxu0 %vm477_vm0, %v427_v7 }
  0x6f   : > { %5234 = vmatprep.mubr.msk.bf16.mxu0 %vm477_vm0, %v428_v8 }
  0x76   : > { %5235 = vmatmul.mubr.msk.bf16.gmra.mrb[44].mxu0 %vm477_vm0, %v429_v13 }
  0x77   : > { %5238 = vmatprep.mubr.msk.bf16.mxu0 %vm477_vm0, %v430_v14 }
  0x7e   : > { %5239 = vmatmul.mubr.msk.bf16.gmra.mrb[48].mxu0 %vm477_vm0, %v431_v19 }
  0x7f   : > { %5242 = vmatprep.mubr.msk.bf16.mxu0 %vm477_vm0, %v432_v20 }
  0x86   : > { %5243 = vmatmul.mubr.msk.bf16.gmra.mrb[52].mxu0 %vm477_vm0, %v433_v26 }
  0x87   : > { %5246 = vmatprep.mubr.msk.bf16.mxu0 %vm477_vm0, %v434_v27 }
  0x8e   : > { %5247 = vmatmul.mubr.msk.bf16.gmra.mrb[56].mxu0 %vm477_vm0, %v435_v32 }
  0x8f   : > { %5250 = vmatprep.mubr.msk.bf16.mxu0 %vm477_vm0, %v436_v33 }
  0x96   : > { %5251 = vmatmul.mubr.msk.bf16.gmra.mrb[60].mxu0 %vm477_vm0, %v437_v36 }
  0xf1   : > { %v5192_v39 = vpop.f32.mrb[0].mxu0 }
  0xf2   : > { %v617_v40 = vadd.f32 %v5192_v39, %v5940_v38  ;;  %v608_v41 = vpop.f32.mrb[1].mxu0 }
  0xf3   : > { %v609_v42 = vadd.f32 %v5940_v38, %v608_v41  ;;  %v5193_v43 = vpop.f32.mrb[2].mxu0 }
  0xf4   : > { %v620_v44 = vadd.f32 %v5193_v43, %v5940_v38  ;;  %v611_v45 = vpop.f32.mrb[3].mxu0  ;;  %v865_v47 = vmax.f32 %v617_v40, 0.0 }
  0xf5   : > { %v612_v46 = vadd.f32 %v5940_v38, %v611_v45  ;;  %v863_v49 = vmax.f32 %v609_v42, 0.0 }
  0xf6   : > { %v866_v48 = vmax.f32 %v620_v44, 0.0 }
  0xf7   : > { %v864_v50 = vmax.f32 %v612_v46, 0.0 }
  0xf8   : > { %v934_v51 = vpack.c.bf16 %v866_v48, %v865_v47 }
  0xf9   : > { %v933_v52 = vpack.c.bf16 %v864_v50, %v863_v49  ;;  %v5196_v53 = vpop.f32.mrb[4].mxu0 }
  0xfa   : > { %967 = vst.msk [vmem:[#allocation2 + $0x10] sm:$0xff] %vm927_vm1, %v934_v51  ;;  %v633_v54 = vadd.f32 %v5196_v53, %v5940_v38  ;;  %v624_v55 = vpop.f32.mrb[5].mxu0 }
  0xfb   : > { %966 = vst.msk [vmem:[#allocation2 + $0x8] sm:$0xff] %vm927_vm1, %v933_v52  ;;  %v625_v56 = vadd.f32 %v5940_v38, %v624_v55  ;;  %v5197_v57 = vpop.f32.mrb[6].mxu0 }
  0xfc   : > { %v636_v59 = vadd.f32 %v5197_v57, %v5940_v38  ;;  %v627_v60 = vpop.f32.mrb[7].mxu0  ;;  %v869_v62 = vmax.f32 %v633_v54, 0.0 }
  0xfd   : > { %v628_v61 = vadd.f32 %v5940_v38, %v627_v60  ;;  %v867_v0 = vmax.f32 %v625_v56, 0.0 }
  0xfe   : > { %v870_v63 = vmax.f32 %v636_v59, 0.0 }
  0xff   : > { %v868_v1 = vmax.f32 %v628_v61, 0.0 }
 0x100   : > { %v936_v2 = vpack.c.bf16 %v870_v63, %v869_v62 }
 0x101   : > { %v935_v3 = vpack.c.bf16 %v868_v1, %v867_v0  ;;  %v5200_v4 = vpop.f32.mrb[8].mxu0  ;;  %v5964_v10 = vld [vmem:[#allocation2 + $0x10] sm:$0xff] }
 0x102   : > { %969 = vst.msk [vmem:[#allocation2 + $0x20] sm:$0xff] %vm927_vm1, %v936_v2  ;;  %v649_v5 = vadd.f32 %v5200_v4, %v5940_v38  ;;  %v640_v6 = vpop.f32.mrb[9].mxu0  ;;  %v5958_v7 = vld [vmem:[#allocation2 + $0x8] sm:$0xff] }
 0x103   : > { %968 = vst.msk [vmem:[#allocation2 + $0x18] sm:$0xff] %vm927_vm1, %v935_v3  ;;  %v641_v8 = vadd.f32 %v5940_v38, %v640_v6  ;;  %v5201_v9 = vpop.f32.mrb[10].mxu0  ;;  %5256 = vmatprep.mubr.msk.bf16.mxu0 %vm927_vm1, %v5958_v7 }
 0x104   : > { %v652_v11 = vadd.f32 %v5201_v9, %v5940_v38  ;;  %v643_v12 = vpop.f32.mrb[11].mxu0  ;;  %5257 = vmatmul.mubr.msk.bf16.vlgmr.msra.gmra.mrb[64].mxu0 %vm927_vm1, %v5964_v10  ;;  %v873_v14 = vmax.f32 %v649_v5, 0.0 }
 0x105   : > { %v644_v13 = vadd.f32 %v5940_v38, %v643_v12  ;;  %v871_v16 = vmax.f32 %v641_v8, 0.0 }
 0x106   : > { %v874_v15 = vmax.f32 %v652_v11, 0.0 }
 0x107   : > { %v872_v17 = vmax.f32 %v644_v13, 0.0 }
 0x108   : > { %v938_v18 = vpack.c.bf16 %v874_v15, %v873_v14 }
 0x109   : > { %v937_v19 = vpack.c.bf16 %v872_v17, %v871_v16  ;;  %v5204_v20 = vpop.f32.mrb[12].mxu0  ;;  %v5978_v26 = vld [vmem:[#allocation2 + $0x20] sm:$0xff] }
 0x10a   : > { %971 = vst.msk [vmem:[#allocation2 + $0x30] sm:$0xff] %vm927_vm1, %v938_v18  ;;  %v665_v21 = vadd.f32 %v5204_v20, %v5940_v38  ;;  %v656_v22 = vpop.f32.mrb[13].mxu0  ;;  %v5972_v23 = vld [vmem:[#allocation2 + $0x18] sm:$0xff] }
 0x10b   : > { %970 = vst.msk [vmem:[#allocation2 + $0x28] sm:$0xff] %vm927_vm1, %v937_v19  ;;  %v657_v24 = vadd.f32 %v5940_v38, %v656_v22  ;;  %v5205_v25 = vpop.f32.mrb[14].mxu0  ;;  %5260 = vmatprep.mubr.msk.bf16.mxu0 %vm927_vm1, %v5972_v23 }
 0x10c   : > { %v668_v27 = vadd.f32 %v5205_v25, %v5940_v38  ;;  %v659_v28 = vpop.f32.mrb[15].mxu0  ;;  %5261 = vmatmul.mubr.msk.bf16.gmra.mrb[68].mxu0 %vm927_vm1, %v5978_v26  ;;  %v877_v30 = vmax.f32 %v665_v21, 0.0 }
 0x10d   : > { %v660_v29 = vadd.f32 %v5940_v38, %v659_v28  ;;  %v875_v32 = vmax.f32 %v657_v24, 0.0 }
 0x10e   : > { %v878_v31 = vmax.f32 %v668_v27, 0.0 }
 0x10f   : > { %v876_v33 = vmax.f32 %v660_v29, 0.0 }
 0x110   : > { %v940_v34 = vpack.c.bf16 %v878_v31, %v877_v30 }
 0x111   : > { %v939_v35 = vpack.c.bf16 %v876_v33, %v875_v32  ;;  %v5208_v36 = vpop.f32.mrb[16].mxu0  ;;  %v5992_v44 = vld [vmem:[#allocation2 + $0x30] sm:$0xff] }
 0x112   : > { %973 = vst.msk [vmem:[#allocation2 + $0x40] sm:$0xff] %vm927_vm1, %v940_v34  ;;  %v681_v39 = vadd.f32 %v5208_v36, %v5940_v38  ;;  %v672_v40 = vpop.f32.mrb[17].mxu0  ;;  %v5986_v41 = vld [vmem:[#allocation2 + $0x28] sm:$0xff] }
 0x113   : > { %972 = vst.msk [vmem:[#allocation2 + $0x38] sm:$0xff] %vm927_vm1, %v939_v35  ;;  %v673_v42 = vadd.f32 %v5940_v38, %v672_v40  ;;  %v5209_v43 = vpop.f32.mrb[18].mxu0  ;;  %5264 = vmatprep.mubr.msk.bf16.mxu0 %vm927_vm1, %v5986_v41 }
 0x114   : > { %v684_v45 = vadd.f32 %v5209_v43, %v5940_v38  ;;  %v675_v46 = vpop.f32.mrb[19].mxu0  ;;  %5265 = vmatmul.mubr.msk.bf16.gmra.mrb[72].mxu0 %vm927_vm1, %v5992_v44  ;;  %v881_v48 = vmax.f32 %v681_v39, 0.0 }
 0x115   : > { %v676_v47 = vadd.f32 %v5940_v38, %v675_v46  ;;  %v879_v50 = vmax.f32 %v673_v42, 0.0 }
 0x116   : > { %v882_v49 = vmax.f32 %v684_v45, 0.0 }
 0x117   : > { %v880_v51 = vmax.f32 %v676_v47, 0.0 }
 0x118   : > { %v942_v52 = vpack.c.bf16 %v882_v49, %v881_v48 }
 0x119   : > { %v941_v53 = vpack.c.bf16 %v880_v51, %v879_v50  ;;  %v5212_v54 = vpop.f32.mrb[20].mxu0  ;;  %v6006_v60 = vld [vmem:[#allocation2 + $0x40] sm:$0xff] }
 0x11a   : > { %975 = vst.msk [vmem:[#allocation2 + $0x50] sm:$0xff] %vm927_vm1, %v942_v52  ;;  %v697_v55 = vadd.f32 %v5212_v54, %v5940_v38  ;;  %v688_v56 = vpop.f32.mrb[21].mxu0  ;;  %v6000_v57 = vld [vmem:[#allocation2 + $0x38] sm:$0xff] }
 0x11b   : > { %974 = vst.msk [vmem:[#allocation2 + $0x48] sm:$0xff] %vm927_vm1, %v941_v53  ;;  %v689_v58 = vadd.f32 %v5940_v38, %v688_v56  ;;  %v5213_v59 = vpop.f32.mrb[22].mxu0  ;;  %5268 = vmatprep.mubr.msk.bf16.mxu0 %vm927_vm1, %v6000_v57 }
 0x11c   : > { %v700_v61 = vadd.f32 %v5213_v59, %v5940_v38  ;;  %v691_v62 = vpop.f32.mrb[23].mxu0  ;;  %5269 = vmatmul.mubr.msk.bf16.gmra.mrb[76].mxu0 %vm927_vm1, %v6006_v60  ;;  %v885_v0 = vmax.f32 %v697_v55, 0.0 }
 0x11d   : > { %v692_v63 = vadd.f32 %v5940_v38, %v691_v62  ;;  %v883_v2 = vmax.f32 %v689_v58, 0.0 }
 0x11e   : > { %v886_v1 = vmax.f32 %v700_v61, 0.0 }
 0x11f   : > { %v884_v3 = vmax.f32 %v692_v63, 0.0 }
 0x120   : > { %v944_v4 = vpack.c.bf16 %v886_v1, %v885_v0 }
 0x121   : > { %v943_v5 = vpack.c.bf16 %v884_v3, %v883_v2  ;;  %v5216_v6 = vpop.f32.mrb[24].mxu0  ;;  %v6020_v14 = vld [vmem:[#allocation2 + $0x50] sm:$0xff] }
 0x122   : > { %977 = vst.msk [vmem:[#allocation2 + $0x60] sm:$0xff] %vm927_vm1, %v944_v4  ;;  %v713_v8 = vadd.f32 %v5216_v6, %v5940_v38  ;;  %v704_v9 = vpop.f32.mrb[25].mxu0  ;;  %v6014_v11 = vld [vmem:[#allocation2 + $0x48] sm:$0xff]  ;;  %v6061_v4 = vld [vmem:[%s8709_s3 + $0x10] sm:$0xff]  }
 0x123   : > { %976 = vst.msk [vmem:[#allocation2 + $0x58] sm:$0xff] %vm927_vm1, %v943_v5  ;;  %v705_v12 = vadd.f32 %v5940_v38, %v704_v9  ;;  %v5217_v13 = vpop.f32.mrb[26].mxu0  ;;  %5272 = vmatprep.mubr.msk.bf16.mxu0 %vm927_vm1, %v6014_v11 }
 0x124   : > { %v716_v15 = vadd.f32 %v5217_v13, %v5940_v38  ;;  %v707_v16 = vpop.f32.mrb[27].mxu0  ;;  %5273 = vmatmul.mubr.msk.bf16.gmra.mrb[80].mxu0 %vm927_vm1, %v6020_v14  ;;  %v889_v18 = vmax.f32 %v713_v8, 0.0 }
 0x125   : > { %v708_v17 = vadd.f32 %v5940_v38, %v707_v16  ;;  %v887_v20 = vmax.f32 %v705_v12, 0.0 }
 0x126   : > { %v890_v19 = vmax.f32 %v716_v15, 0.0 }
 0x127   : > { %v888_v21 = vmax.f32 %v708_v17, 0.0 }
 0x128   : > { %v946_v22 = vpack.c.bf16 %v890_v19, %v889_v18 }
 0x129   : > { %v945_v24 = vpack.c.bf16 %v888_v21, %v887_v20  ;;  %v5220_v25 = vpop.f32.mrb[28].mxu0  ;;  %v6034_v32 = vld [vmem:[#allocation2 + $0x60] sm:$0xff] }
 0x12a   : > { %979 = vst.msk [vmem:[#allocation2 + $0x70] sm:$0xff] %vm927_vm1, %v946_v22  ;;  %v729_v27 = vadd.f32 %v5220_v25, %v5940_v38  ;;  %v720_v28 = vpop.f32.mrb[29].mxu0  ;;  %v6028_v29 = vld [vmem:[#allocation2 + $0x58] sm:$0xff] }
 0x12b   : > { %978 = vst.msk [vmem:[#allocation2 + $0x68] sm:$0xff] %vm927_vm1, %v945_v24  ;;  %v721_v30 = vadd.f32 %v5940_v38, %v720_v28  ;;  %v5221_v31 = vpop.f32.mrb[30].mxu0  ;;  %5276 = vmatprep.mubr.msk.bf16.mxu0 %vm927_vm1, %v6028_v29 }
 0x12c   : > { %v732_v33 = vadd.f32 %v5221_v31, %v5940_v38  ;;  %v723_v34 = vpop.f32.mrb[31].mxu0  ;;  %5277 = vmatmul.mubr.msk.bf16.gmra.mrb[84].mxu0 %vm927_vm1, %v6034_v32  ;;  %v893_v36 = vmax.f32 %v729_v27, 0.0 }
 0x12d   : > { %v724_v35 = vadd.f32 %v5940_v38, %v723_v34  ;;  %v891_v40 = vmax.f32 %v721_v30, 0.0 }
 0x12e   : > { %v894_v39 = vmax.f32 %v732_v33, 0.0 }
 0x12f   : > { %v892_v42 = vmax.f32 %v724_v35, 0.0 }
 0x130   : > { %v948_v43 = vpack.c.bf16 %v894_v39, %v893_v36 }
 0x131   : > { %v947_v45 = vpack.c.bf16 %v892_v42, %v891_v40  ;;  %v5224_v46 = vpop.f32.mrb[32].mxu0  ;;  %v6048_v52 = vld [vmem:[#allocation2 + $0x70] sm:$0xff] }
 0x132   : > { %981 = vst.msk [vmem:[#allocation2 + $0x80] sm:$0xff] %vm927_vm1, %v948_v43  ;;  %v745_v47 = vadd.f32 %v5224_v46, %v5940_v38  ;;  %v736_v48 = vpop.f32.mrb[33].mxu0  ;;  %v6042_v49 = vld [vmem:[#allocation2 + $0x68] sm:$0xff] }
 0x133   : > { %980 = vst.msk [vmem:[#allocation2 + $0x78] sm:$0xff] %vm927_vm1, %v947_v45  ;;  %v737_v50 = vadd.f32 %v5940_v38, %v736_v48  ;;  %v5225_v51 = vpop.f32.mrb[34].mxu0  ;;  %5280 = vmatprep.mubr.msk.bf16.mxu0 %vm927_vm1, %v6042_v49 }
 0x134   : > { %v748_v53 = vadd.f32 %v5225_v51, %v5940_v38  ;;  %v739_v54 = vpop.f32.mrb[35].mxu0  ;;  %5281 = vmatmul.mubr.msk.bf16.gmra.mrb[88].mxu0 %vm927_vm1, %v6048_v52  ;;  %v897_v56 = vmax.f32 %v745_v47, 0.0 }
 0x135   : > { %v740_v55 = vadd.f32 %v5940_v38, %v739_v54  ;;  %v895_v59 = vmax.f32 %v737_v50, 0.0 }
 0x136   : > { %v898_v58 = vmax.f32 %v748_v53, 0.0 }
 0x137   : > { %v896_v61 = vmax.f32 %v740_v55, 0.0 }
 0x138   : > { %v950_v62 = vpack.c.bf16 %v898_v58, %v897_v56 }
 0x139   : > { %v949_v63 = vpack.c.bf16 %v896_v61, %v895_v59  ;;  %v5228_v0 = vpop.f32.mrb[36].mxu0  ;;  %v6067_v8 = vld [vmem:[#allocation2 + $0x80] sm:$0xff] }
 0x13a   : > { %983 = vst.msk [vmem:[#allocation2 + $0xa0] sm:$0xff] %vm927_vm1, %v950_v62  ;;  %v761_v1 = vadd.f32 %v5228_v0, %v5940_v38  ;;  %v752_v2 = vpop.f32.mrb[37].mxu0  ;;  %v6056_v3 = vld [vmem:[#allocation2 + $0x78] sm:$0xff] }
 0x13b   : > { %982 = vst.msk [vmem:[#allocation2 + $0x98] sm:$0xff] %vm927_vm1, %v949_v63  ;;  %v753_v5 = vadd.f32 %v5940_v38, %v752_v2  ;;  %v5229_v6 = vpop.f32.mrb[38].mxu0  ;;  %5284 = vmatprep.mubr.msk.bf16.mxu1 %vm927_vm1, %v6056_v3 }
 0x13c   : > { %v764_v9 = vadd.f32 %v5229_v6, %v5940_v38  ;;  %v755_v12 = vpop.f32.mrb[39].mxu0  ;;  %5285 = vmatmul.mubr.msk.bf16.vlgmr.msra.gmra.mrb[0].mxu1 %vm927_vm1, %v6067_v8  ;;  %v901_v15 = vmax.f32 %v761_v1, 0.0 }
 0x13d   : > { %v756_v13 = vadd.f32 %v5940_v38, %v755_v12  ;;  %5321 = vmatpush3.bf16.msra.mxu1 %v5934_v37  ;;  %v899_v17 = vmax.f32 %v753_v5, 0.0 }
 0x13e   : > { %v902_v16 = vmax.f32 %v764_v9, 0.0  ;;  %5386 = vmatprep.subr.bf16.mxu1 %v6061_v4 }
 0x13f   : > { %v900_v18 = vmax.f32 %v756_v13, 0.0 }
 0x140   : > { %v952_v19 = vpack.c.bf16 %v902_v16, %v901_v15 }
 0x141   : > { %v951_v20 = vpack.c.bf16 %v900_v18, %v899_v17  ;;  %v5232_v21 = vpop.f32.mrb[40].mxu0  ;;  %v6083_v28 = vld [vmem:[#allocation2 + $0xa0] sm:$0xff] }
 0x142   : > { %985 = vst.msk [vmem:[#allocation2 + $0xb0] sm:$0xff] %vm927_vm1, %v952_v19  ;;  %v777_v22 = vadd.f32 %v5232_v21, %v5940_v38  ;;  %v768_v24 = vpop.f32.mrb[41].mxu0  ;;  %v6077_v25 = vld [vmem:[#allocation2 + $0x98] sm:$0xff] }
 0x143   : > { %984 = vst.msk [vmem:[#allocation2 + $0xa8] sm:$0xff] %vm927_vm1, %v951_v20  ;;  %v769_v37 = vadd.f32 %v5940_v38, %v768_v24  ;;  %v5233_v27 = vpop.f32.mrb[42].mxu0  ;;  %5288 = vmatprep.mubr.msk.bf16.mxu1 %vm927_vm1, %v6077_v25 }
 0x144   : > { %v780_v30 = vadd.f32 %v5233_v27, %v5940_v38  ;;  %v771_v31 = vpop.f32.mrb[43].mxu0  ;;  %5289 = vmatmul.mubr.msk.bf16.gmra.mrb[4].mxu1 %vm927_vm1, %v6083_v28  ;;  %v905_v34 = vmax.f32 %v777_v22, 0.0 }
 0x145   : > { %v772_v33 = vadd.f32 %v5940_v38, %v771_v31  ;;  %v903_v36 = vmax.f32 %v769_v37, 0.0 }
 0x146   : > { %v906_v35 = vmax.f32 %v780_v30, 0.0 }
 0x147   : > { %v904_v39 = vmax.f32 %v772_v33, 0.0 }
 0x148   : > { %v954_v40 = vpack.c.bf16 %v906_v35, %v905_v34 }
 0x149   : > { %v953_v42 = vpack.c.bf16 %v904_v39, %v903_v36  ;;  %v5236_v43 = vpop.f32.mrb[44].mxu0  ;;  %v6097_v51 = vld [vmem:[#allocation2 + $0xb0] sm:$0xff] }
 0x14a   : > { %987 = vst.msk [vmem:[#allocation2 + $0xc0] sm:$0xff] %vm927_vm1, %v954_v40  ;;  %v793_v45 = vadd.f32 %v5236_v43, %v5940_v38  ;;  %v784_v46 = vpop.f32.mrb[45].mxu0  ;;  %v6091_v47 = vld [vmem:[#allocation2 + $0xa8] sm:$0xff] }
 0x14b   : > { %986 = vst.msk [vmem:[#allocation2 + $0xb8] sm:$0xff] %vm927_vm1, %v953_v42  ;;  %v785_v48 = vadd.f32 %v5940_v38, %v784_v46  ;;  %v5237_v50 = vpop.f32.mrb[46].mxu0  ;;  %5292 = vmatprep.mubr.msk.bf16.mxu1 %vm927_vm1, %v6091_v47 }
 0x14c   : > { %v796_v53 = vadd.f32 %v5237_v50, %v5940_v38  ;;  %v787_v54 = vpop.f32.mrb[47].mxu0  ;;  %5293 = vmatmul.mubr.msk.bf16.gmra.mrb[8].mxu1 %vm927_vm1, %v6097_v51  ;;  %v909_v56 = vmax.f32 %v793_v45, 0.0 }
 0x14d   : > { %v788_v55 = vadd.f32 %v5940_v38, %v787_v54  ;;  %v907_v59 = vmax.f32 %v785_v48, 0.0 }
 0x14e   : > { %v910_v58 = vmax.f32 %v796_v53, 0.0 }
 0x14f   : > { %v908_v61 = vmax.f32 %v788_v55, 0.0 }
 0x150   : > { %v956_v62 = vpack.c.bf16 %v910_v58, %v909_v56 }
 0x151   : > { %v955_v63 = vpack.c.bf16 %v908_v61, %v907_v59  ;;  %v5240_v0 = vpop.f32.mrb[48].mxu0  ;;  %v6111_v12 = vld [vmem:[#allocation2 + $0xc0] sm:$0xff] }
 0x152   : > { %989 = vst.msk [vmem:[#allocation2 + $0xd0] sm:$0xff] %vm927_vm1, %v956_v62  ;;  %v809_v1 = vadd.f32 %v5240_v0, %v5940_v38  ;;  %v800_v2 = vpop.f32.mrb[49].mxu0  ;;  %v6105_v5 = vld [vmem:[#allocation2 + $0xb8] sm:$0xff] }
 0x153   : > { %988 = vst.msk [vmem:[#allocation2 + $0xc8] sm:$0xff] %vm927_vm1, %v955_v63  ;;  %v801_v6 = vadd.f32 %v5940_v38, %v800_v2  ;;  %v5241_v9 = vpop.f32.mrb[50].mxu0  ;;  %5296 = vmatprep.mubr.msk.bf16.mxu1 %vm927_vm1, %v6105_v5 }
 0x154   : > { %v812_v13 = vadd.f32 %v5241_v9, %v5940_v38  ;;  %v803_v15 = vpop.f32.mrb[51].mxu0  ;;  %5297 = vmatmul.mubr.msk.bf16.gmra.mrb[12].mxu1 %vm927_vm1, %v6111_v12  ;;  %v913_v17 = vmax.f32 %v809_v1, 0.0 }
 0x155   : > { %v804_v16 = vadd.f32 %v5940_v38, %v803_v15  ;;  %v911_v19 = vmax.f32 %v801_v6, 0.0 }
 0x156   : > { %v914_v18 = vmax.f32 %v812_v13, 0.0 }
 0x157   : > { %v912_v20 = vmax.f32 %v804_v16, 0.0 }
 0x158   : > { %v958_v21 = vpack.c.bf16 %v914_v18, %v913_v17 }
 0x159   : > { %v957_v22 = vpack.c.bf16 %v912_v20, %v911_v19  ;;  %v5244_v24 = vpop.f32.mrb[52].mxu0  ;;  %v6125_v34 = vld [vmem:[#allocation2 + $0xd0] sm:$0xff] }
 0x15a   : > { %991 = vst.msk [vmem:[#allocation2 + $0xe0] sm:$0xff] %vm927_vm1, %v958_v21  ;;  %v825_v37 = vadd.f32 %v5244_v24, %v5940_v38  ;;  %v816_v27 = vpop.f32.mrb[53].mxu0  ;;  %v6119_v30 = vld [vmem:[#allocation2 + $0xc8] sm:$0xff] }
 0x15b   : > { %990 = vst.msk [vmem:[#allocation2 + $0xd8] sm:$0xff] %vm927_vm1, %v957_v22  ;;  %v817_v31 = vadd.f32 %v5940_v38, %v816_v27  ;;  %v5245_v33 = vpop.f32.mrb[54].mxu0  ;;  %5300 = vmatprep.mubr.msk.bf16.mxu1 %vm927_vm1, %v6119_v30 }
 0x15c   : > { %v828_v35 = vadd.f32 %v5245_v33, %v5940_v38  ;;  %v819_v36 = vpop.f32.mrb[55].mxu0  ;;  %5301 = vmatmul.mubr.msk.bf16.gmra.mrb[16].mxu1 %vm927_vm1, %v6125_v34  ;;  %v917_v40 = vmax.f32 %v825_v37, 0.0 }
 0x15d   : > { %v820_v39 = vadd.f32 %v5940_v38, %v819_v36  ;;  %v915_v43 = vmax.f32 %v817_v31, 0.0 }
 0x15e   : > { %v918_v42 = vmax.f32 %v828_v35, 0.0 }
 0x15f   : > { %v916_v45 = vmax.f32 %v820_v39, 0.0 }
 0x160   : > { %v960_v46 = vpack.c.bf16 %v918_v42, %v917_v40 }
 0x161   : > { %v959_v48 = vpack.c.bf16 %v916_v45, %v915_v43  ;;  %v5248_v50 = vpop.f32.mrb[56].mxu0  ;;  %v6139_v59 = vld [vmem:[#allocation2 + $0xe0] sm:$0xff] }
 0x162   : > { %993 = vst.msk [vmem:[#allocation2 + $0xf0] sm:$0xff] %vm927_vm1, %v960_v46  ;;  %v841_v53 = vadd.f32 %v5248_v50, %v5940_v38  ;;  %v832_v54 = vpop.f32.mrb[57].mxu0  ;;  %v6133_v55 = vld [vmem:[#allocation2 + $0xd8] sm:$0xff]  ;;  %v998_v43 = vld [vmem:[#allocation2] sm:$0xff] }
 0x163   : > { %992 = vst.msk [vmem:[#allocation2 + $0xe8] sm:$0xff] %vm927_vm1, %v959_v48  ;;  %v833_v56 = vadd.f32 %v5940_v38, %v832_v54  ;;  %v5249_v58 = vpop.f32.mrb[58].mxu0  ;;  %5304 = vmatprep.mubr.msk.bf16.mxu1 %vm927_vm1, %v6133_v55 }
 0x164   : > { %v844_v61 = vadd.f32 %v5249_v58, %v5940_v38  ;;  %v835_v62 = vpop.f32.mrb[59].mxu0  ;;  %5305 = vmatmul.mubr.msk.bf16.gmra.mrb[20].mxu1 %vm927_vm1, %v6139_v59  ;;  %v921_v0 = vmax.f32 %v841_v53, 0.0 }
 0x165   : > { %v836_v63 = vadd.f32 %v5940_v38, %v835_v62  ;;  %v919_v2 = vmax.f32 %v833_v56, 0.0 }
 0x166   : > { %v922_v1 = vmax.f32 %v844_v61, 0.0 }
 0x167   : > { %v920_v6 = vmax.f32 %v836_v63, 0.0 }
 0x168   : > { %v962_v9 = vpack.c.bf16 %v922_v1, %v921_v0 }
 0x169   : > { %v961_v13 = vpack.c.bf16 %v920_v6, %v919_v2  ;;  %v5252_v15 = vpop.f32.mrb[60].mxu0  ;;  %v6153_v21 = vld [vmem:[#allocation2 + $0xf0] sm:$0xff] }
 0x16a   : > { %995 = vst.msk [vmem:[#allocation2 + $0x100] sm:$0xff] %vm927_vm1, %v962_v9  ;;  %v857_v16 = vadd.f32 %v5252_v15, %v5940_v38  ;;  %v848_v17 = vpop.f32.mrb[61].mxu0  ;;  %v6147_v18 = vld [vmem:[#allocation2 + $0xe8] sm:$0xff] }
 0x16b   : > { %994 = vst.msk [vmem:[#allocation2 + $0xf8] sm:$0xff] %vm927_vm1, %v961_v13  ;;  %v849_v19 = vadd.f32 %v5940_v38, %v848_v17  ;;  %v5253_v20 = vpop.f32.mrb[62].mxu0  ;;  %5308 = vmatprep.mubr.msk.bf16.mxu1 %vm927_vm1, %v6147_v18  ;;  %v4941_v17 = vld [vmem:[%s8710_s4] ss:$0 sm:$0xff] }
 0x16c   : > { %v860_v22 = vadd.f32 %v5253_v20, %v5940_v38  ;;  %v851_v24 = vpop.f32.mrb[63].mxu0  ;;  %5309 = vmatmul.mubr.msk.bf16.gmra.mrb[24].mxu1 %vm927_vm1, %v6153_v21  ;;  %v925_v27 = vmax.f32 %v857_v16, 0.0  ;;  %3635 = vrot.lane.b32.xlu0 %v4941_v17, %s5749_s15 }
 0x16d   : > { %v852_v37 = vadd.f32 %v5940_v38, %v851_v24  ;;  %v923_v33 = vmax.f32 %v849_v19, 0.0 }
 0x16e   : > { %v926_v31 = vmax.f32 %v860_v22, 0.0 }
 0x16f   : > { %v924_v35 = vmax.f32 %v852_v37, 0.0 }
 0x170   : > { %v964_v36 = vpack.c.bf16 %v926_v31, %v925_v27 }
 0x171   : > { %v963_v39 = vpack.c.bf16 %v924_v35, %v923_v33  ;;  %v6165_v42 = vld [vmem:[#allocation2 + $0x100] sm:$0xff] }
 0x172   : > { %997 = vst.msk [vmem:[#allocation2 + $0x110] sm:$0xff] %vm927_vm1, %v964_v36  ;;  %v6160_v40 = vld [vmem:[#allocation2 + $0xf8] sm:$0xff] }
 0x173   : > { %996 = vst.msk [vmem:[#allocation2 + $0x108] sm:$0xff] %vm927_vm1, %v963_v39  ;;  %5312 = vmatprep.mubr.msk.bf16.mxu1 %vm927_vm1, %v6160_v40 }
 0x174   : > { %5313 = vmatmul.mubr.msk.bf16.gmra.mrb[28].mxu1 %vm927_vm1, %v6165_v42 }
 0x179   : > { %v6173_v45 = vld [vmem:[#allocation2 + $0x110] sm:$0xff] }
 0x17a   : > { %v6169_v38 = vld [vmem:[#allocation2 + $0x108] sm:$0xff] }
 0x17b   : > { %5316 = vmatprep.mubr.msk.bf16.mxu1 %vm927_vm1, %v6169_v38 }
 0x17c   : > { %5317 = vmatmul.mubr.msk.bf16.gmra.mrb[32].mxu1 %vm927_vm1, %v6173_v45 }
 0x17d   : > { %5322 = vmatprep.mubr.msk.bf16.mxu1 %vm927_vm1, %v998_v43 }
 0x184   : > { %5323 = vmatmul.mubr.msk.bf16.vlgmr.msra.gmra.mrb[36].mxu1 %vm927_vm1, %v5958_v7  ;;  %v1014_v7 = vld [vmem:[#allocation2 + $0x90] sm:$0xff] }
 0x185   : > { %5387 = vmatpush3.bf16.msra.mxu1 %v6061_v4  ;;  %5326 = vmatprep.mubr.msk.bf16.mxu1 %vm927_vm1, %v5964_v10 }
 0x18c   : > { %5327 = vmatmul.mubr.msk.bf16.gmra.mrb[40].mxu1 %vm927_vm1, %v5972_v23 }
 0x18d   : > { %5330 = vmatprep.mubr.msk.bf16.mxu1 %vm927_vm1, %v5978_v26 }
 0x194   : > { %5331 = vmatmul.mubr.msk.bf16.gmra.mrb[44].mxu1 %vm927_vm1, %v5986_v41 }
 0x195   : > { %5334 = vmatprep.mubr.msk.bf16.mxu1 %vm927_vm1, %v5992_v44 }
 0x19c   : > { %5335 = vmatmul.mubr.msk.bf16.gmra.mrb[48].mxu1 %vm927_vm1, %v6000_v57 }
 0x19d   : > { %5338 = vmatprep.mubr.msk.bf16.mxu1 %vm927_vm1, %v6006_v60 }
 0x1a4   : > { %5339 = vmatmul.mubr.msk.bf16.gmra.mrb[52].mxu1 %vm927_vm1, %v6014_v11 }
 0x1a5   : > { %5342 = vmatprep.mubr.msk.bf16.mxu1 %vm927_vm1, %v6020_v14 }
 0x1ac   : > { %5343 = vmatmul.mubr.msk.bf16.gmra.mrb[56].mxu1 %vm927_vm1, %v6028_v29 }
 0x1ad   : > { %5346 = vmatprep.mubr.msk.bf16.mxu1 %vm927_vm1, %v6034_v32 }
 0x1b4   : > { %5347 = vmatmul.mubr.msk.bf16.gmra.mrb[60].mxu1 %vm927_vm1, %v6042_v49 }
 0x1b5   : > { %5350 = vmatprep.mubr.msk.bf16.mxu1 %vm927_vm1, %v6048_v52 }
 0x1bc   : > { %5351 = vmatmul.mubr.msk.bf16.gmra.mrb[0].mxu1 %vm927_vm1, %v6056_v3 }
 0x1bd   : > { %5354 = vmatprep.mubr.msk.bf16.mxu1 %vm927_vm1, %v1014_v7 }
 0x1c4   : > { %5355 = vmatmul.mubr.msk.bf16.gmra.mrb[4].mxu1 %vm927_vm1, %v6077_v25 }
 0x1c5   : > { %5358 = vmatprep.mubr.msk.bf16.mxu1 %vm927_vm1, %v6083_v28 }
 0x1cc   : > { %5359 = vmatmul.mubr.msk.bf16.gmra.mrb[8].mxu1 %vm927_vm1, %v6091_v47 }
 0x1cd   : > { %5362 = vmatprep.mubr.msk.bf16.mxu1 %vm927_vm1, %v6097_v51 }
 0x1d4   : > { %5363 = vmatmul.mubr.msk.bf16.gmra.mrb[12].mxu1 %vm927_vm1, %v6105_v5 }
 0x1d5   : > { %5366 = vmatprep.mubr.msk.bf16.mxu1 %vm927_vm1, %v6111_v12 }
 0x1d7   : > { %v6222_v4 = vpop.f32.mrb[64].mxu0 }
 0x1d8   : > { %v6224_v46 = vpop.f32.mrb[65].mxu0 }
 0x1d9   : > { %v6226_v25 = vpop.f32.mrb[66].mxu0 }
 0x1da   : > { %v6228_v48 = vpop.f32.mrb[67].mxu0 }
 0x1dc   : > { %5367 = vmatmul.mubr.msk.bf16.gmra.mrb[16].mxu1 %vm927_vm1, %v6119_v30 }
 0x1dd   : > { %5370 = vmatprep.mubr.msk.bf16.mxu1 %vm927_vm1, %v6125_v34 }
 0x1df   : > { %v6234_v50 = vpop.f32.mrb[68].mxu0 }
 0x1e0   : > { %v6236_v53 = vpop.f32.mrb[69].mxu0 }
 0x1e1   : > { %v6238_v54 = vpop.f32.mrb[70].mxu0 }
 0x1e2   : > { %v6240_v56 = vpop.f32.mrb[71].mxu0 }
 0x1e4   : > { %5371 = vmatmul.mubr.msk.bf16.gmra.mrb[20].mxu1 %vm927_vm1, %v6133_v55 }
 0x1e5   : > { %5374 = vmatprep.mubr.msk.bf16.mxu1 %vm927_vm1, %v6139_v59 }
 0x1e7   : > { %v6246_v58 = vpop.f32.mrb[72].mxu0 }
 0x1e8   : > { %v6248_v61 = vpop.f32.mrb[73].mxu0 }
 0x1e9   : > { %v6250_v62 = vpop.f32.mrb[74].mxu0 }
 0x1ea   : > { %v6252_v63 = vpop.f32.mrb[75].mxu0 }
 0x1ec   : > { %5375 = vmatmul.mubr.msk.bf16.gmra.mrb[24].mxu1 %vm927_vm1, %v6147_v18 }
 0x1ed   : > { %5378 = vmatprep.mubr.msk.bf16.mxu1 %vm927_vm1, %v6153_v21 }
 0x1ef   : > { %v6258_v0 = vpop.f32.mrb[76].mxu0 }
 0x1f0   : > { %v6260_v1 = vpop.f32.mrb[77].mxu0 }
 0x1f1   : > { %v6262_v2 = vpop.f32.mrb[78].mxu0 }
 0x1f2   : > { %v6264_v6 = vpop.f32.mrb[79].mxu0 }
 0x1f4   : > { %5379 = vmatmul.mubr.msk.bf16.gmra.mrb[28].mxu1 %vm927_vm1, %v6160_v40 }
 0x1f5   : > { %5382 = vmatprep.mubr.msk.bf16.mxu1 %vm927_vm1, %v6165_v42 }
 0x1f7   : > { %v6270_v9 = vpop.f32.mrb[80].mxu0 }
 0x1f8   : > { %v6272_v13 = vpop.f32.mrb[81].mxu0 }
 0x1f9   : > { %v6274_v15 = vpop.f32.mrb[82].mxu0 }
 0x1fa   : > { %v6276_v16 = vpop.f32.mrb[83].mxu0 }
 0x1fc   : > { %5383 = vmatmul.mubr.msk.bf16.gmra.mrb[32].mxu1 %vm927_vm1, %v6169_v38 }
 0x1fd   : > { %5388 = vmatprep.mubr.msk.bf16.mxu1 %vm927_vm1, %v5964_v10 }
 0x1ff   : > { %v6286_v19 = vpop.f32.mrb[84].mxu0 }
 0x200   : > { %v6288_v20 = vpop.f32.mrb[85].mxu0 }
 0x201   : > { %v6290_v22 = vpop.f32.mrb[86].mxu0 }
 0x202   : > { %v6292_v24 = vpop.f32.mrb[87].mxu0 }
 0x204   : > { %5389 = vmatmul.mubr.msk.bf16.vlgmr.msra.gmra.mrb[36].mxu1 %vm927_vm1, %v5972_v23  ;;  %v1865_v23 = vld [vmem:[#allocation2 + $0x88] sm:$0xff] }
 0x205   : > { %5392 = vmatprep.mubr.msk.bf16.mxu1 %vm927_vm1, %v5978_v26  ;;  %v1881_v26 = vld [vmem:[#allocation2 + $0x118] sm:$0xff] }
 0x207   : > { %v6298_v37 = vpop.f32.mrb[88].mxu0 }
 0x208   : > { %v6300_v10 = vpop.f32.mrb[89].mxu0 }
 0x209   : > { %v6302_v27 = vpop.f32.mrb[90].mxu0 }
 0x20a   : > { %v6304_v31 = vpop.f32.mrb[91].mxu0 }
 0x20c   : > { %5393 = vmatmul.mubr.msk.bf16.gmra.mrb[40].mxu1 %vm927_vm1, %v5986_v41  ;;  %v2340_v41 = vlaneseq }
 0x20d   : > { %5396 = vmatprep.mubr.msk.bf16.mxu1 %vm927_vm1, %v5992_v44 }
 0x214   : > { %5397 = vmatmul.mubr.msk.bf16.gmra.mrb[44].mxu1 %vm927_vm1, %v6000_v57 }
 0x215   : > { %5400 = vmatprep.mubr.msk.bf16.mxu1 %vm927_vm1, %v6006_v60 }
 0x21c   : > { %5401 = vmatmul.mubr.msk.bf16.gmra.mrb[48].mxu1 %vm927_vm1, %v6014_v11  ;;  %v6365_v11 = vshrl.u32 %v2340_v41, 7 }
 0x21d   : > { %5404 = vmatprep.mubr.msk.bf16.mxu1 %vm927_vm1, %v6020_v14 }
 0x21e   : > { %vm2409_vm2 = vcmp.lt.s32.totalorder %v6365_v11, 1  ;;  %vm2343_vm3 = vcmp.gt.s32.totalorder %v6365_v11, 0  ;;  %vm3180_vm4 = vcmp.lt.s32.totalorder %v6365_v11, 7 }
 0x224   : > { %5405 = vmatmul.mubr.msk.bf16.gmra.mrb[52].mxu1 %vm927_vm1, %v6028_v29 }
 0x225   : > { %5408 = vmatprep.mubr.msk.bf16.mxu1 %vm927_vm1, %v6034_v32 }
 0x22c   : > { %5409 = vmatmul.mubr.msk.bf16.gmra.mrb[56].mxu1 %vm927_vm1, %v6042_v49 }
 0x22d   : > { %5412 = vmatprep.mubr.msk.bf16.mxu1 %vm927_vm1, %v6048_v52 }
 0x234   : > { %5413 = vmatmul.mubr.msk.bf16.gmra.mrb[60].mxu1 %vm927_vm1, %v6056_v3 }
 0x235   : > { %5416 = vmatprep.mubr.msk.bf16.mxu1 %vm927_vm1, %v6067_v8 }
 0x23c   : > { %5417 = vmatmul.mubr.msk.bf16.gmra.mrb[0].mxu1 %vm927_vm1, %v1865_v23 }
 0x23d   : > { %5420 = vmatprep.mubr.msk.bf16.mxu1 %vm927_vm1, %v6083_v28 }
 0x244   : > { %5421 = vmatmul.mubr.msk.bf16.gmra.mrb[4].mxu1 %vm927_vm1, %v6091_v47 }
 0x245   : > { %5424 = vmatprep.mubr.msk.bf16.mxu1 %vm927_vm1, %v6097_v51 }
 0x24c   : > { %5425 = vmatmul.mubr.msk.bf16.gmra.mrb[8].mxu1 %vm927_vm1, %v6105_v5 }
 0x24d   : > { %5428 = vmatprep.mubr.msk.bf16.mxu1 %vm927_vm1, %v6111_v12 }
 0x254   : > { %5429 = vmatmul.mubr.msk.bf16.gmra.mrb[12].mxu1 %vm927_vm1, %v6119_v30 }
 0x255   : > { %5432 = vmatprep.mubr.msk.bf16.mxu1 %vm927_vm1, %v6125_v34 }
 0x25c   : > { %5433 = vmatmul.mubr.msk.bf16.gmra.mrb[16].mxu1 %vm927_vm1, %v6133_v55 }
 0x25d   : > { %5436 = vmatprep.mubr.msk.bf16.mxu1 %vm927_vm1, %v6139_v59 }
 0x264   : > { %5437 = vmatmul.mubr.msk.bf16.gmra.mrb[20].mxu1 %vm927_vm1, %v6147_v18 }
 0x265   : > { %5440 = vmatprep.mubr.msk.bf16.mxu1 %vm927_vm1, %v6153_v21 }
 0x26c   : > { %5441 = vmatmul.mubr.msk.bf16.gmra.mrb[24].mxu1 %vm927_vm1, %v6160_v40 }
 0x26d   : > { %5444 = vmatprep.mubr.msk.bf16.mxu1 %vm927_vm1, %v6165_v42 }
 0x274   : > { %5445 = vmatmul.mubr.msk.bf16.gmra.mrb[28].mxu1 %vm927_vm1, %v6169_v38 }
 0x275   : > { %5448 = vmatprep.mubr.msk.bf16.mxu1 %vm927_vm1, %v6173_v45 }
 0x27c   : > { %5449 = vmatmul.mubr.msk.bf16.gmra.mrb[32].mxu1 %vm927_vm1, %v1881_v26 }
 0x2d7   : > { %v5390_v44 = vpop.f32.mrb[36].mxu1 }
 0x2d8   : > { %v6363_v57 = vadd.f32 %v5390_v44, %v6222_v4  ;;  %v2021_v60 = vpop.f32.mrb[37].mxu1 }
 0x2d9   : > { %v6368_v14 = vadd.f32 %v2021_v60, %v6224_v46  ;;  %v5391_v29 = vpop.f32.mrb[38].mxu1 }
 0x2da   : > { %8804 = vst [vmem:[#allocation3_spill] sm:$0xff] %v6363_v57  ;;  %v6371_v32 = vadd.f32 %v5391_v29, %v6226_v25  ;;  %2928 = vrot.lane.b32.xlu1 %v6363_v57, %s5750_s16  ;;  %v2024_v49 = vpop.f32.mrb[39].mxu1  ;;  %v2346_v8 = vrot.slane %v6363_v57, 7 }
 0x2db   : > { %8805 = vst [vmem:[#allocation4_spill] sm:$0xff] %v6368_v14  ;;  %v6376_v52 = vadd.f32 %v2024_v49, %v6228_v48  ;;  %2924 = vrot.lane.b32.xlu0 %v6368_v14, %s5750_s16  ;;  %v2345_v30 = vrot.slane %v6368_v14, 7 }
 0x2dc   : > { %8806 = vst [vmem:[#allocation5_spill] sm:$0xff] %v6371_v32  ;;  %v2378_v3 = vrot.slane %v6371_v32, 7 }
 0x2dd   : > { %8807 = vst [vmem:[#allocation6_spill] sm:$0xff] %v6376_v52  ;;  %v2377_v28 = vrot.slane %v6376_v52, 7 }
 0x2de   : > { %2930 = vrot.lane.b32.xlu1 %v6371_v32, %s5750_s16  ;;  %v2443_v51 = vsel %vm2409_vm2, %v2378_v3, %v2346_v8  ;;  %v2411_v59 = vsel %vm2409_vm2, %v2346_v8, %v2378_v3 }
 0x2df   : > { %2926 = vrot.lane.b32.xlu0 %v6376_v52, %s5750_s16  ;;  %v5394_v47 = vpop.f32.mrb[40].mxu1  ;;  %v2476_v33 = vsel %vm2343_vm3, %v2443_v51, 0.0  ;;  %v2442_v36 = vsel %vm2409_vm2, %v2377_v28, %v2345_v30  ;;  %v2410_v39 = vsel %vm2409_vm2, %v2345_v30, %v2377_v28 }
 0x2e0   : > { %v6392_v5 = vadd.f32 %v5394_v47, %v6234_v50  ;;  %v2037_v12 = vpop.f32.mrb[41].mxu1  ;;  %v2474_v40 = vsel %vm2343_vm3, %v2442_v36, 0.0 }
 0x2e1   : > { %v6396_v34 = vadd.f32 %v2037_v12, %v6236_v53  ;;  %v5395_v55 = vpop.f32.mrb[42].mxu1 }
 0x2e2   : > { %8808 = vst [vmem:[#allocation7_spill] sm:$0xff] %v6392_v5  ;;  %v6401_v18 = vadd.f32 %v5395_v55, %v6238_v54  ;;  %2608 = vrot.lane.b32.xlu1 %v2411_v59, %s5749_s15  ;;  %v2040_v21 = vpop.f32.mrb[43].mxu1  ;;  %v2348_v50 = vrot.slane %v6392_v5, 7 }
 0x2e3   : > { %8809 = vst [vmem:[#allocation8_spill] sm:$0xff] %v6396_v34  ;;  %v6407_v35 = vadd.f32 %v2040_v21, %v6240_v56  ;;  %2606 = vrot.lane.b32.xlu0 %v2476_v33, %s5749_s15 }
 0x2e4   : > { %8810 = vst [vmem:[#allocation9_spill] sm:$0xff] %v6401_v18  ;;  %v2380_v4 = vrot.slane %v6401_v18, 7 }
 0x2e5   : > { %8811 = vst [vmem:[#allocation10_spill] sm:$0xff] %v6407_v35  ;;  %v2379_v53 = vrot.slane %v6407_v35, 7 }
 0x2e6   : > { %2604 = vrot.lane.b32.xlu1 %v2410_v39, %s5749_s15  ;;  %v2445_v54 = vsel %vm2409_vm2, %v2380_v4, %v2348_v50  ;;  %v2413_v44 = vsel %vm2409_vm2, %v2348_v50, %v2380_v4 }
 0x2e7   : > { %2602 = vrot.lane.b32.xlu0 %v2474_v40, %s5749_s15  ;;  %v5398_v42 = vpop.f32.mrb[44].mxu1  ;;  %v2480_v23 = vsel %vm2343_vm3, %v2445_v54, 0.0 }
 0x2e8   : > { %v6419_v38 = vadd.f32 %v5398_v42, %v6246_v58  ;;  %v2053_v43 = vpop.f32.mrb[45].mxu1  ;;  %v2347_v58 = vrot.slane %v6396_v34, 7 }
 0x2e9   : > { %v6422_v45 = vadd.f32 %v2053_v43, %v6248_v61  ;;  %v5399_v7 = vpop.f32.mrb[46].mxu1 }
 0x2ea   : > { %8812 = vst [vmem:[#allocation11_spill] sm:$0xff] %v6419_v38  ;;  %v6426_v46 = vadd.f32 %v5399_v7, %v6250_v62  ;;  %2938 = vrot.lane.b32.xlu1 %v6401_v18, %s5750_s16  ;;  %v2056_v25 = vpop.f32.mrb[47].mxu1 }
 0x2eb   : > { %8813 = vst [vmem:[#allocation12_spill] sm:$0xff] %v6422_v45  ;;  %v6431_v48 = vadd.f32 %v2056_v25, %v6252_v63  ;;  %2936 = vrot.lane.b32.xlu0 %v6392_v5, %s5750_s16 }
 0x2ec   : > { %8814 = vst [vmem:[#allocation13_spill] sm:$0xff] %v6426_v46  ;;  %v2382_v28 = vrot.slane %v6426_v46, 7 }
 0x2ed   : > { %8815 = vst [vmem:[#allocation14_spill] sm:$0xff] %v6431_v48 }
 0x2ee   : > { %2934 = vrot.lane.b32.xlu1 %v6407_v35, %s5750_s16 }
 0x2ef   : > { %2932 = vrot.lane.b32.xlu0 %v6396_v34, %s5750_s16  ;;  %v5402_v56 = vpop.f32.mrb[48].mxu1 }
 0x2f0   : > { %v6445_v61 = vadd.f32 %v5402_v56, %v6258_v0  ;;  %v2069_v62 = vpop.f32.mrb[49].mxu1  ;;  %v2444_v0 = vsel %vm2409_vm2, %v2379_v53, %v2347_v58 }
 0x2f1   : > { %v6448_v63 = vadd.f32 %v2069_v62, %v6260_v1  ;;  %v5403_v17 = vpop.f32.mrb[50].mxu1  ;;  %v2478_v1 = vsel %vm2343_vm3, %v2444_v0, 0.0 }
 0x2f2   : > { %8816 = vst [vmem:[#allocation15_spill] sm:$0xff] %v6445_v61  ;;  %v6453_v26 = vadd.f32 %v5403_v17, %v6262_v2  ;;  %2614 = vrot.lane.b32.xlu1 %v2480_v23, %s5749_s15  ;;  %v2072_v41 = vpop.f32.mrb[51].mxu1  ;;  %v2412_v2 = vsel %vm2409_vm2, %v2347_v58, %v2379_v53 }
 0x2f3   : > { %8817 = vst [vmem:[#allocation16_spill] sm:$0xff] %v6448_v63  ;;  %v6461_v60 = vadd.f32 %v2072_v41, %v6264_v6  ;;  %2616 = vrot.lane.b32.xlu0 %v2413_v44, %s5749_s15 }
 0x2f4   : > { %8818 = vst [vmem:[#allocation17_spill] sm:$0xff] %v6453_v26  ;;  %v2384_v53 = vrot.slane %v6453_v26, 7 }
 0x2f5   : > { %8819 = vst [vmem:[#allocation18_spill] sm:$0xff] %v6461_v60 }
 0x2f6   : > { %2610 = vrot.lane.b32.xlu1 %v2478_v1, %s5749_s15 }
 0x2f7   : > { %2612 = vrot.lane.b32.xlu0 %v2412_v2, %s5749_s15  ;;  %v5406_v29 = vpop.f32.mrb[52].mxu1 }
 0x2f8   : > { %v6471_v49 = vadd.f32 %v5406_v29, %v6270_v9  ;;  %v2085_v3 = vpop.f32.mrb[53].mxu1  ;;  %v2350_v9 = vrot.slane %v6419_v38, 7 }
 0x2f9   : > { %v6474_v6 = vadd.f32 %v2085_v3, %v6272_v13  ;;  %v5407_v8 = vpop.f32.mrb[54].mxu1  ;;  %v2381_v13 = vrot.slane %v6431_v48, 7 }
 0x2fa   : > { %8820 = vst [vmem:[#allocation19_spill] sm:$0xff] %v6471_v49  ;;  %v6478_v47 = vadd.f32 %v5407_v8, %v6274_v15  ;;  %2946 = vrot.lane.b32.xlu1 %v6426_v46, %s5750_s16  ;;  %v2088_v51 = vpop.f32.mrb[55].mxu1  ;;  %v2447_v15 = vsel %vm2409_vm2, %v2382_v28, %v2350_v9  ;;  %v2415_v42 = vsel %vm2409_vm2, %v2350_v9, %v2382_v28 }
 0x2fb   : > { %8821 = vst [vmem:[#allocation20_spill] sm:$0xff] %v6474_v6  ;;  %v6483_v12 = vadd.f32 %v2088_v51, %v6276_v16  ;;  %2944 = vrot.lane.b32.xlu0 %v6419_v38, %s5750_s16  ;;  %v2349_v16 = vrot.slane %v6422_v45, 7  ;;  %v2484_v36 = vsel %vm2343_vm3, %v2447_v15, 0.0 }
 0x2fc   : > { %8822 = vst [vmem:[#allocation21_spill] sm:$0xff] %v6478_v47 }
 0x2fd   : > { %8823 = vst [vmem:[#allocation22_spill] sm:$0xff] %v6483_v12 }
 0x2fe   : > { %2942 = vrot.lane.b32.xlu1 %v6431_v48, %s5750_s16 }
 0x2ff   : > { %2940 = vrot.lane.b32.xlu0 %v6422_v45, %s5750_s16  ;;  %v5410_v30 = vpop.f32.mrb[56].mxu1 }
 0x300   : > { %v6497_v55 = vadd.f32 %v5410_v30, %v6286_v19  ;;  %v2101_v59 = vpop.f32.mrb[57].mxu1  ;;  %v2446_v19 = vsel %vm2409_vm2, %v2381_v13, %v2349_v16 }
 0x301   : > { %v6500_v21 = vadd.f32 %v2101_v59, %v6288_v20  ;;  %v5411_v33 = vpop.f32.mrb[58].mxu1  ;;  %v2482_v20 = vsel %vm2343_vm3, %v2446_v19, 0.0 }
 0x302   : > { %8824 = vst [vmem:[#allocation23_spill] sm:$0xff] %v6497_v55  ;;  %v6505_v39 = vadd.f32 %v5411_v33, %v6290_v22  ;;  %2622 = vrot.lane.b32.xlu1 %v2484_v36, %s5749_s15  ;;  %v2104_v40 = vpop.f32.mrb[59].mxu1  ;;  %v2414_v22 = vsel %vm2409_vm2, %v2349_v16, %v2381_v13  ;;  %v2386_v36 = vrot.slane %v6478_v47, 7 }
 0x303   : > { %8825 = vst [vmem:[#allocation24_spill] sm:$0xff] %v6500_v21  ;;  %v6513_v43 = vadd.f32 %v2104_v40, %v6292_v24  ;;  %2624 = vrot.lane.b32.xlu0 %v2415_v42, %s5749_s15 }
 0x304   : > { %8826 = vst [vmem:[#allocation25_spill] sm:$0xff] %v6505_v39 }
 0x305   : > { %8827 = vst [vmem:[#allocation26_spill] sm:$0xff] %v6513_v43 }
 0x306   : > { %2618 = vrot.lane.b32.xlu1 %v2482_v20, %s5749_s15 }
 0x307   : > { %2620 = vrot.lane.b32.xlu0 %v2414_v22, %s5749_s15  ;;  %v5414_v7 = vpop.f32.mrb[60].mxu1 }
 0x308   : > { %v6523_v4 = vadd.f32 %v5414_v7, %v6298_v37  ;;  %v2117_v25 = vpop.f32.mrb[61].mxu1  ;;  %v2352_v37 = vrot.slane %v6445_v61, 7  ;;  %v2354_v7 = vrot.slane %v6471_v49, 7 }
 0x309   : > { %v6526_v24 = vadd.f32 %v2117_v25, %v6300_v10  ;;  %v5415_v50 = vpop.f32.mrb[62].mxu1  ;;  %v2383_v10 = vrot.slane %v6461_v60, 7 }
 0x30a   : > { %8828 = vst [vmem:[#allocation27_spill] sm:$0xff] %v6523_v4  ;;  %v6530_v54 = vadd.f32 %v5415_v50, %v6302_v27  ;;  %2954 = vrot.lane.b32.xlu1 %v6453_v26, %s5750_s16  ;;  %v2120_v56 = vpop.f32.mrb[63].mxu1  ;;  %v2449_v27 = vsel %vm2409_vm2, %v2384_v53, %v2352_v37  ;;  %v2417_v2 = vsel %vm2409_vm2, %v2352_v37, %v2384_v53  ;;  %v2385_v37 = vrot.slane %v6483_v12, 7 }
 0x30b   : > { %8829 = vst [vmem:[#allocation28_spill] sm:$0xff] %v6526_v24  ;;  %v6535_v58 = vadd.f32 %v2120_v56, %v6304_v31  ;;  %2952 = vrot.lane.b32.xlu0 %v6445_v61, %s5750_s16  ;;  %v2351_v31 = vrot.slane %v6448_v63, 7  ;;  %v2488_v41 = vsel %vm2343_vm3, %v2449_v27, 0.0 }
 0x30c   : > { %8830 = vst [vmem:[#allocation29_spill] sm:$0xff] %v6530_v54  ;;  %v2390_v46 = vrot.slane %v6530_v54, 7 }
 0x30d   : > { %8831 = vst [vmem:[#allocation30_spill] sm:$0xff] %v6535_v58  ;;  %v2448_v29 = vsel %vm2409_vm2, %v2383_v10, %v2351_v31  ;;  %v2416_v30 = vsel %vm2409_vm2, %v2351_v31, %v2383_v10  ;;  %v2451_v10 = vsel %vm2409_vm2, %v2386_v36, %v2354_v7  ;;  %v2353_v31 = vrot.slane %v6474_v6, 7 }
 0x30e   : > { %2950 = vrot.lane.b32.xlu1 %v6461_v60, %s5750_s16  ;;  %v2486_v9 = vsel %vm2343_vm3, %v2448_v29, 0.0  ;;  %v2389_v18 = vrot.slane %v6535_v58, 7 }
 0x30f   : > { %2948 = vrot.lane.b32.xlu0 %v6448_v63, %s5750_s16  ;;  %v6547_v62 = vpop.f32.mrb[0].mxu1 }
 0x310   : > { %8832 = vst [vmem:[#allocation31_spill] sm:$0xff] %v6547_v62  ;;  %v6550_v17 = vpop.f32.mrb[1].mxu1  ;;  %v2360_v44 = vrot.slane %v6547_v62, 7 }
 0x311   : > { %8833 = vst [vmem:[#allocation32_spill] sm:$0xff] %v6550_v17  ;;  %v6552_v23 = vpop.f32.mrb[2].mxu1  ;;  %v2359_v3 = vrot.slane %v6550_v17, 7 }
 0x312   : > { %8834 = vst [vmem:[#allocation33_spill] sm:$0xff] %v6552_v23  ;;  %v2392_v0 = vrot.slane %v6552_v23, 7  ;;  %2630 = vrot.lane.b32.xlu1 %v2488_v41, %s5749_s15  ;;  %v6559_v1 = vpop.f32.mrb[3].mxu1 }
 0x313   : > { %8835 = vst [vmem:[#allocation34_spill] sm:$0xff] %v6559_v1  ;;  %v2391_v8 = vrot.slane %v6559_v1, 7  ;;  %2632 = vrot.lane.b32.xlu0 %v2417_v2, %s5749_s15 }
 0x314   : > { %v6570_v28 = vsel %vm2409_vm2, %v2392_v0, %v2360_v44  ;;  %v6574_v51 = vsel %vm2409_vm2, %v2360_v44, %v2392_v0  ;;  %v2492_v0 = vsel %vm2343_vm3, %v2451_v10, 0.0  ;;  %v2418_v10 = vsel %vm2409_vm2, %v2353_v31, %v2385_v37 }
 0x315   : > { %v6580_v13 = vsel %vm2409_vm2, %v2391_v8, %v2359_v3  ;;  %v6584_v15 = vsel %vm2409_vm2, %v2359_v3, %v2391_v8  ;;  %v2419_v8 = vsel %vm2409_vm2, %v2354_v7, %v2386_v36 }
 0x316   : > { %2626 = vrot.lane.b32.xlu1 %v2486_v9, %s5749_s15  ;;  %v2450_v9 = vsel %vm2409_vm2, %v2385_v37, %v2353_v31 }
 0x317   : > { %2628 = vrot.lane.b32.xlu0 %v2416_v30, %s5749_s15  ;;  %v6590_v16 = vpop.f32.mrb[4].mxu1  ;;  %v2490_v36 = vsel %vm2343_vm3, %v2450_v9, 0.0 }
 0x318   : > { %8836 = vst [vmem:[#allocation35_spill] sm:$0xff] %v6590_v16  ;;  %v6592_v59 = vpop.f32.mrb[5].mxu1  ;;  %v2362_v40 = vrot.slane %v6590_v16, 7 }
 0x319   : > { %8837 = vst [vmem:[#allocation36_spill] sm:$0xff] %v6592_v59  ;;  %v6594_v33 = vpop.f32.mrb[6].mxu1  ;;  %v2361_v20 = vrot.slane %v6592_v59, 7 }
 0x31a   : > { %8838 = vst [vmem:[#allocation37_spill] sm:$0xff] %v6594_v33  ;;  %v2394_v42 = vrot.slane %v6594_v33, 7  ;;  %2962 = vrot.lane.b32.xlu1 %v6478_v47, %s5750_s16  ;;  %v6601_v19 = vpop.f32.mrb[7].mxu1  ;;  %v2387_v47 = vrot.slane %v6513_v43, 7 }
 0x31b   : > { %8839 = vst [vmem:[#allocation38_spill] sm:$0xff] %v6601_v19  ;;  %v2393_v22 = vrot.slane %v6601_v19, 7  ;;  %2960 = vrot.lane.b32.xlu0 %v6471_v49, %s5750_s16 }
 0x31c   : > { %v6610_v25 = vsel %vm2409_vm2, %v2394_v42, %v2362_v40  ;;  %v6614_v50 = vsel %vm2409_vm2, %v2362_v40, %v2394_v42 }
 0x31d   : > { %v6618_v53 = vsel %vm2409_vm2, %v2393_v22, %v2361_v20  ;;  %v6622_v56 = vsel %vm2409_vm2, %v2361_v20, %v2393_v22 }
 0x31e   : > { %2958 = vrot.lane.b32.xlu1 %v6483_v12, %s5750_s16 }
 0x31f   : > { %2956 = vrot.lane.b32.xlu0 %v6474_v6, %s5750_s16  ;;  %v6631_v27 = vpop.f32.mrb[8].mxu1 }
 0x320   : > { %8840 = vst [vmem:[#allocation39_spill] sm:$0xff] %v6631_v27  ;;  %v6634_v41 = vpop.f32.mrb[9].mxu1  ;;  %v2364_v2 = vrot.slane %v6631_v27, 7 }
 0x321   : > { %8841 = vst [vmem:[#allocation40_spill] sm:$0xff] %v6634_v41  ;;  %v6636_v44 = vpop.f32.mrb[10].mxu1  ;;  %v2363_v30 = vrot.slane %v6634_v41, 7 }
 0x322   : > { %8842 = vst [vmem:[#allocation41_spill] sm:$0xff] %v6636_v44  ;;  %v2396_v29 = vrot.slane %v6636_v44, 7  ;;  %2638 = vrot.lane.b32.xlu1 %v2492_v0, %s5749_s15  ;;  %v6643_v3 = vpop.f32.mrb[11].mxu1 }
 0x323   : > { %8843 = vst [vmem:[#allocation42_spill] sm:$0xff] %v6643_v3  ;;  %v2395_v40 = vrot.slane %v6643_v3, 7  ;;  %2640 = vrot.lane.b32.xlu0 %v2419_v8, %s5749_s15  ;;  %v2388_v8 = vrot.slane %v6505_v39, 7 }
 0x324   : > { %v6654_v42 = vsel %vm2409_vm2, %v2396_v29, %v2364_v2  ;;  %v6658_v20 = vsel %vm2409_vm2, %v2364_v2, %v2396_v29 }
 0x325   : > { %v6664_v22 = vsel %vm2409_vm2, %v2395_v40, %v2363_v30  ;;  %v6668_v7 = vsel %vm2409_vm2, %v2363_v30, %v2395_v40 }
 0x326   : > { %2634 = vrot.lane.b32.xlu1 %v2490_v36, %s5749_s15  ;;  %v2356_v36 = vrot.slane %v6497_v55, 7 }
 0x327   : > { %2636 = vrot.lane.b32.xlu0 %v2418_v10, %s5749_s15  ;;  %v6674_v0 = vpop.f32.mrb[12].mxu1 }
 0x328   : > { %8844 = vst [vmem:[#allocation43_spill] sm:$0xff] %v6674_v0  ;;  %v6676_v2 = vpop.f32.mrb[13].mxu1  ;;  %v2366_v9 = vrot.slane %v6674_v0, 7  ;;  %v2421_v26 = vsel %vm2409_vm2, %v2356_v36, %v2388_v8 }
 0x329   : > { %8845 = vst [vmem:[#allocation44_spill] sm:$0xff] %v6676_v2  ;;  %v6678_v29 = vpop.f32.mrb[14].mxu1  ;;  %v2365_v37 = vrot.slane %v6676_v2, 7 }
 0x32a   : > { %8846 = vst [vmem:[#allocation45_spill] sm:$0xff] %v6678_v29  ;;  %v2398_v30 = vrot.slane %v6678_v29, 7  ;;  %2970 = vrot.lane.b32.xlu1 %v6505_v39, %s5750_s16  ;;  %v6685_v40 = vpop.f32.mrb[15].mxu1 }
 0x32b   : > { %8847 = vst [vmem:[#allocation46_spill] sm:$0xff] %v6685_v40  ;;  %v2397_v31 = vrot.slane %v6685_v40, 7  ;;  %2968 = vrot.lane.b32.xlu0 %v6497_v55, %s5750_s16  ;;  %v2453_v55 = vsel %vm2409_vm2, %v2388_v8, %v2356_v36 }
 0x32c   : > { %v6694_v10 = vsel %vm2409_vm2, %v2398_v30, %v2366_v9  ;;  %v6698_v12 = vsel %vm2409_vm2, %v2366_v9, %v2398_v30  ;;  %v2355_v30 = vrot.slane %v6500_v21, 7 }
 0x32d   : > { %v6702_v39 = vsel %vm2409_vm2, %v2397_v31, %v2365_v37  ;;  %v6706_v6 = vsel %vm2409_vm2, %v2365_v37, %v2397_v31  ;;  %v2496_v37 = vsel %vm2343_vm3, %v2453_v55, 0.0 }
 0x32e   : > { %2966 = vrot.lane.b32.xlu1 %v6513_v43, %s5750_s16 }
 0x32f   : > { %2964 = vrot.lane.b32.xlu0 %v6500_v21, %s5750_s16  ;;  %v6715_v9 = vpop.f32.mrb[16].mxu1  ;;  %v2452_v21 = vsel %vm2409_vm2, %v2387_v47, %v2355_v30 }
 0x330   : > { %8848 = vst [vmem:[#allocation47_spill] sm:$0xff] %v6715_v9  ;;  %v6718_v49 = vpop.f32.mrb[17].mxu1  ;;  %v2368_v31 = vrot.slane %v6715_v9, 7  ;;  %v2494_v8 = vsel %vm2343_vm3, %v2452_v21, 0.0 }
 0x331   : > { %8849 = vst [vmem:[#allocation48_spill] sm:$0xff] %v6718_v49  ;;  %v6720_v60 = vpop.f32.mrb[18].mxu1  ;;  %v2367_v61 = vrot.slane %v6718_v49, 7 }
 0x332   : > { %8850 = vst [vmem:[#allocation49_spill] sm:$0xff] %v6720_v60  ;;  %v2400_v43 = vrot.slane %v6720_v60, 7  ;;  %2646 = vrot.lane.b32.xlu1 %v2496_v37, %s5749_s15  ;;  %v6727_v63 = vpop.f32.mrb[19].mxu1 }
 0x333   : > { %8851 = vst [vmem:[#allocation50_spill] sm:$0xff] %v6727_v63  ;;  %v2399_v48 = vrot.slane %v6727_v63, 7  ;;  %2648 = vrot.lane.b32.xlu0 %v2421_v26, %s5749_s15  ;;  %v2420_v26 = vsel %vm2409_vm2, %v2355_v30, %v2387_v47 }
 0x334   : > { %v6738_v55 = vsel %vm2409_vm2, %v2400_v43, %v2368_v31  ;;  %v6742_v37 = vsel %vm2409_vm2, %v2368_v31, %v2400_v43 }
 0x335   : > { %v6748_v36 = vsel %vm2409_vm2, %v2399_v48, %v2367_v61  ;;  %v6752_v45 = vsel %vm2409_vm2, %v2367_v61, %v2399_v48 }
 0x336   : > { %2642 = vrot.lane.b32.xlu1 %v2494_v8, %s5749_s15  ;;  %v2358_v8 = vrot.slane %v6523_v4, 7 }
 0x337   : > { %2644 = vrot.lane.b32.xlu0 %v2420_v26, %s5749_s15  ;;  %v6758_v43 = vpop.f32.mrb[20].mxu1 }
 0x338   : > { %8852 = vst [vmem:[#allocation51_spill] sm:$0xff] %v6758_v43  ;;  %v6760_v31 = vpop.f32.mrb[21].mxu1  ;;  %v2370_v38 = vrot.slane %v6758_v43, 7  ;;  %v2423_v32 = vsel %vm2409_vm2, %v2358_v8, %v2390_v46 }
 0x339   : > { %8853 = vst [vmem:[#allocation52_spill] sm:$0xff] %v6760_v31  ;;  %v6762_v21 = vpop.f32.mrb[22].mxu1  ;;  %v2369_v47 = vrot.slane %v6760_v31, 7 }
 0x33a   : > { %8854 = vst [vmem:[#allocation53_spill] sm:$0xff] %v6762_v21  ;;  %v2402_v48 = vrot.slane %v6762_v21, 7  ;;  %2978 = vrot.lane.b32.xlu1 %v6530_v54, %s5750_s16  ;;  %v6769_v61 = vpop.f32.mrb[23].mxu1 }
 0x33b   : > { %8855 = vst [vmem:[#allocation54_spill] sm:$0xff] %v6769_v61  ;;  %v2401_v30 = vrot.slane %v6769_v61, 7  ;;  %2976 = vrot.lane.b32.xlu0 %v6523_v4, %s5750_s16  ;;  %v2455_v4 = vsel %vm2409_vm2, %v2390_v46, %v2358_v8 }
 0x33c   : > { %v6778_v26 = vsel %vm2409_vm2, %v2402_v48, %v2370_v38  ;;  %v6782_v35 = vsel %vm2409_vm2, %v2370_v38, %v2402_v48  ;;  %v2357_v48 = vrot.slane %v6526_v24, 7 }
 0x33d   : > { %v6786_v54 = vsel %vm2409_vm2, %v2401_v30, %v2369_v47  ;;  %v6790_v34 = vsel %vm2409_vm2, %v2369_v47, %v2401_v30  ;;  %v2500_v47 = vsel %vm2343_vm3, %v2455_v4, 0.0 }
 0x33e   : > { %8856 = vst [vmem:[#allocation55_spill] sm:$0xff] %v6790_v34  ;;  %2974 = vrot.lane.b32.xlu1 %v6535_v58, %s5750_s16 }
 0x33f   : > { %2972 = vrot.lane.b32.xlu0 %v6526_v24, %s5750_s16  ;;  %v6799_v38 = vpop.f32.mrb[24].mxu1  ;;  %v2454_v24 = vsel %vm2409_vm2, %v2389_v18, %v2357_v48 }
 0x340   : > { %8857 = vst [vmem:[#allocation56_spill] sm:$0xff] %v6799_v38  ;;  %v6802_v5 = vpop.f32.mrb[25].mxu1  ;;  %v2372_v30 = vrot.slane %v6799_v38, 7  ;;  %v2498_v46 = vsel %vm2343_vm3, %v2454_v24, 0.0 }
 0x341   : > { %8858 = vst [vmem:[#allocation57_spill] sm:$0xff] %v6802_v5  ;;  %v6804_v52 = vpop.f32.mrb[26].mxu1  ;;  %v2371_v57 = vrot.slane %v6802_v5, 7 }
 0x342   : > { %8859 = vst [vmem:[#allocation58_spill] sm:$0xff] %v6804_v52  ;;  %v2404_v58 = vrot.slane %v6804_v52, 7  ;;  %2654 = vrot.lane.b32.xlu1 %v2500_v47, %s5749_s15  ;;  %v6811_v14 = vpop.f32.mrb[27].mxu1 }
 0x343   : > { %8860 = vst [vmem:[#allocation59_spill] sm:$0xff] %v6811_v14  ;;  %v2403_v34 = vrot.slane %v6811_v14, 7  ;;  %2656 = vrot.lane.b32.xlu0 %v2423_v32, %s5749_s15 }
 0x344   : > { %v6822_v4 = vsel %vm2409_vm2, %v2404_v58, %v2372_v30  ;;  %v6826_v47 = vsel %vm2409_vm2, %v2372_v30, %v2404_v58  ;;  %v6843_v58 = vpop.permute.xlu0 %3635 }
 0x345   : > { %8861 = vst [vmem:[#allocation60_spill] sm:$0xff] %v6826_v47  ;;  %v6832_v8 = vsel %vm2409_vm2, %v2403_v34, %v2371_v57  ;;  %v6836_v14 = vsel %vm2409_vm2, %v2371_v57, %v2403_v34  ;;  %8864 = vst [vmem:[#allocation63_spill] sm:$0xff] %v6843_v58  ;;  %v2422_v34 = vsel %vm2409_vm2, %v2357_v48, %v2389_v18 }
 0x346   : > { %8862 = vst [vmem:[#allocation61_spill] sm:$0xff] %v6832_v8  ;;  %2650 = vrot.lane.b32.xlu1 %v2498_v46, %s5749_s15 }
 0x347   : > { %2984 = vrot.lane.b32.xlu0 %v6547_v62, %s5750_s16  ;;  %v6841_v32 = vpop.f32.mrb[28].mxu1 }
 0x348   : > { %8863 = vst [vmem:[#allocation62_spill] sm:$0xff] %v6841_v32  ;;  %v6845_v30 = vpop.f32.mrb[29].mxu1  ;;  %v2374_v47 = vrot.slane %v6841_v32, 7 }
 0x349   : > { %8865 = vst [vmem:[#allocation64_spill] sm:$0xff] %v6845_v30  ;;  %v6847_v24 = vpop.f32.mrb[30].mxu1  ;;  %v2373_v46 = vrot.slane %v6845_v30, 7 }
 0x34a   : > { %8866 = vst [vmem:[#allocation65_spill] sm:$0xff] %v6847_v24  ;;  %v2406_v8 = vrot.slane %v6847_v24, 7  ;;  %2986 = vrot.lane.b32.xlu1 %v6552_v23, %s5750_s16  ;;  %v6853_v57 = vpop.f32.mrb[31].mxu1 }
 0x34b   : > { %8867 = vst [vmem:[#allocation66_spill] sm:$0xff] %v6853_v57  ;;  %v2405_v62 = vrot.slane %v6853_v57, 7  ;;  %2652 = vrot.lane.b32.xlu0 %v2422_v34, %s5749_s15 }
 0x34c   : > { %v6860_v58 = vpop.permute.xlu1 %2928  ;;  %v6864_v32 = vsel %vm2409_vm2, %v2374_v47, %v2406_v8  ;;  %v6868_v23 = vsel %vm2409_vm2, %v2406_v8, %v2374_v47 }
 0x34d   : > { %8868 = vst [vmem:[#allocation67_spill] sm:$0xff] %v6860_v58  ;;  %8869 = vst [vmem:[#allocation68_spill] sm:$0xff] %v6864_v32  ;;  %v6870_v24 = vpop.permute.xlu0 %2924  ;;  %v6874_v18 = vsel %vm2409_vm2, %v2405_v62, %v2373_v46  ;;  %v6878_v48 = vsel %vm2409_vm2, %v2373_v46, %v2405_v62  ;;  %v2504_v62 = vsel %vm2343_vm3, %v6570_v28, 0.0 }
 0x34e   : > { %8870 = vst [vmem:[#allocation69_spill] sm:$0xff] %v6868_v23  ;;  %8871 = vst [vmem:[#allocation70_spill] sm:$0xff] %v6870_v24  ;;  %2982 = vrot.lane.b32.xlu1 %v6559_v1, %s5750_s16 }
 0x34f   : > { %2980 = vrot.lane.b32.xlu0 %v6550_v17, %s5750_s16  ;;  %v6884_v34 = vpop.f32.mrb[32].mxu1 }
 0x350   : > { %8872 = vst [vmem:[#allocation71_spill] sm:$0xff] %v6884_v34  ;;  %v6886_v47 = vpop.permute.xlu1 %2930  ;;  %v6888_v8 = vpop.f32.mrb[33].mxu1  ;;  %v2376_v46 = vrot.slane %v6884_v34, 7 }
 0x351   : > { %8873 = vst [vmem:[#allocation72_spill] sm:$0xff] %v6888_v8  ;;  %v6890_v23 = vpop.permute.xlu0 %2926  ;;  %v6892_v32 = vpop.f32.mrb[34].mxu1  ;;  %v2375_v24 = vrot.slane %v6888_v8, 7 }
 0x352   : > { %8874 = vst [vmem:[#allocation73_spill] sm:$0xff] %v6890_v23  ;;  %8875 = vst [vmem:[#allocation74_spill] sm:$0xff] %v6892_v32  ;;  %v2408_v1 = vrot.slane %v6892_v32, 7  ;;  %2662 = vrot.lane.b32.xlu1 %v2504_v62, %s5749_s15  ;;  %v6900_v17 = vpop.f32.mrb[35].mxu1  ;;  %v2502_v62 = vsel %vm2343_vm3, %v6580_v13, 0.0 }
 0x353   : > { %8876 = vst [vmem:[#allocation75_spill] sm:$0xff] %v6900_v17  ;;  %v2407_v58 = vrot.slane %v6900_v17, 7  ;;  %2664 = vrot.lane.b32.xlu0 %v6574_v51, %s5749_s15 }
 0x354   : > { %v6906_v23 = vpop.permute.xlu1 %2608  ;;  %v6910_v28 = vsel %vm2409_vm2, %v2376_v46, %v2408_v1  ;;  %v6928_v51 = vsel %vm2409_vm2, %v2408_v1, %v2376_v46  ;;  %v2508_v46 = vsel %vm2343_vm3, %v6610_v25, 0.0 }
 0x355   : > { %8877 = vst [vmem:[#allocation76_spill] sm:$0xff] %v6910_v28  ;;  %v6912_v34 = vpop.permute.xlu0 %2606  ;;  %v6919_v32 = vsel %vm2409_vm2, %v2375_v24, %v2407_v58  ;;  %v6923_v17 = vsel %vm2409_vm2, %v2407_v58, %v2375_v24  ;;  %8879 = vst [vmem:[#allocation78_spill] sm:$0xff] %v6928_v51 }
 0x356   : > { %8878 = vst [vmem:[#allocation77_spill] sm:$0xff] %v6923_v17  ;;  %2658 = vrot.lane.b32.xlu1 %v2502_v62, %s5749_s15 }
 0x357   : > { %2660 = vrot.lane.b32.xlu0 %v6584_v15, %s5749_s15 }
 0x358   : > { %v6932_v28 = vpop.permute.xlu1 %2604 }
 0x359   : > { %v6934_v13 = vpop.permute.xlu0 %2602 }
 0x35a   : > { %2992 = vrot.lane.b32.xlu1 %v6590_v16, %s5750_s16 }
 0x35b   : > { %2988 = vrot.lane.b32.xlu0 %v6592_v59, %s5750_s16 }
 0x35c   : > { %v6940_v58 = vpop.permute.xlu1 %2938 }
 0x35d   : > { %v6942_v24 = vpop.permute.xlu0 %2936 }
 0x35e   : > { %2990 = vrot.lane.b32.xlu1 %v6601_v19, %s5750_s16  ;;  %v2506_v19 = vsel %vm2343_vm3, %v6618_v53, 0.0 }
 0x35f   : > { %2994 = vrot.lane.b32.xlu0 %v6594_v33, %s5750_s16 }
 0x360   : > { %v6948_v1 = vpop.permute.xlu1 %2934 }
 0x361   : > { %v6950_v15 = vpop.permute.xlu0 %2932 }
 0x362   : > { %2670 = vrot.lane.b32.xlu1 %v2508_v46, %s5749_s15 }
 0x363   : > { %2672 = vrot.lane.b32.xlu0 %v6614_v50, %s5749_s15 }
 0x364   : > { %v6958_v62 = vpop.permute.xlu1 %2614 }
 0x365   : > { %v6960_v59 = vpop.permute.xlu0 %2616 }
 0x366   : > { %2666 = vrot.lane.b32.xlu1 %v2506_v19, %s5749_s15 }
 0x367   : > { %2668 = vrot.lane.b32.xlu0 %v6622_v56, %s5749_s15  ;;  %v2512_v56 = vsel %vm2343_vm3, %v6654_v42, 0.0 }
 0x368   : > { %v6968_v33 = vpop.permute.xlu1 %2610 }
 0x369   : > { %v6970_v25 = vpop.permute.xlu0 %2612 }
 0x36a   : > { %3000 = vrot.lane.b32.xlu1 %v6631_v27, %s5750_s16 }
 0x36b   : > { %3002 = vrot.lane.b32.xlu0 %v6636_v44, %s5750_s16 }
 0x36c   : > { %v6976_v50 = vpop.permute.xlu1 %2946 }
 0x36d   : > { %v6978_v46 = vpop.permute.xlu0 %2944 }
 0x36e   : > { %2996 = vrot.lane.b32.xlu1 %v6634_v41, %s5750_s16 }
 0x36f   : > { %2998 = vrot.lane.b32.xlu0 %v6643_v3, %s5750_s16  ;;  %v2510_v3 = vsel %vm2343_vm3, %v6664_v22, 0.0 }
 0x370   : > { %v6984_v19 = vpop.permute.xlu1 %2942 }
 0x371   : > { %v6986_v53 = vpop.permute.xlu0 %2940 }
 0x372   : > { %2678 = vrot.lane.b32.xlu1 %v2512_v56, %s5749_s15 }
 0x373   : > { %2680 = vrot.lane.b32.xlu0 %v6658_v20, %s5749_s15 }
 0x374   : > { %v6994_v44 = vpop.permute.xlu1 %2622 }
 0x375   : > { %v6996_v27 = vpop.permute.xlu0 %2624 }
 0x376   : > { %2674 = vrot.lane.b32.xlu1 %v2510_v3, %s5749_s15 }
 0x377   : > { %2676 = vrot.lane.b32.xlu0 %v6668_v7, %s5749_s15  ;;  %v2516_v7 = vsel %vm2343_vm3, %v6694_v10, 0.0 }
 0x378   : > { %v7004_v41 = vpop.permute.xlu1 %2618 }
 0x379   : > { %v7006_v42 = vpop.permute.xlu0 %2620 }
 0x37a   : > { %3008 = vrot.lane.b32.xlu1 %v6674_v0, %s5750_s16 }
 0x37b   : > { %3010 = vrot.lane.b32.xlu0 %v6678_v29, %s5750_s16 }
 0x37c   : > { %v7012_v20 = vpop.permute.xlu1 %2954 }
 0x37d   : > { %v7014_v56 = vpop.permute.xlu0 %2952 }
 0x37e   : > { %3004 = vrot.lane.b32.xlu1 %v6676_v2, %s5750_s16 }
 0x37f   : > { %3006 = vrot.lane.b32.xlu0 %v6685_v40, %s5750_s16  ;;  %v2514_v40 = vsel %vm2343_vm3, %v6702_v39, 0.0 }
 0x380   : > { %v7020_v3 = vpop.permute.xlu1 %2950 }
 0x381   : > { %v7022_v22 = vpop.permute.xlu0 %2948 }
 0x382   : > { %2686 = vrot.lane.b32.xlu1 %v2516_v7, %s5749_s15 }
 0x383   : > { %2688 = vrot.lane.b32.xlu0 %v6698_v12, %s5749_s15 }
 0x384   : > { %v7030_v29 = vpop.permute.xlu1 %2630 }
 0x385   : > { %v7032_v0 = vpop.permute.xlu0 %2632 }
 0x386   : > { %2682 = vrot.lane.b32.xlu1 %v2514_v40, %s5749_s15  ;;  %v2520_v40 = vsel %vm2343_vm3, %v6738_v55, 0.0 }
 0x387   : > { %2684 = vrot.lane.b32.xlu0 %v6706_v6, %s5749_s15 }
 0x388   : > { %v7040_v2 = vpop.permute.xlu1 %2626 }
 0x389   : > { %v7042_v10 = vpop.permute.xlu0 %2628 }
 0x38a   : > { %3016 = vrot.lane.b32.xlu1 %v6715_v9, %s5750_s16 }
 0x38b   : > { %3018 = vrot.lane.b32.xlu0 %v6720_v60, %s5750_s16 }
 0x38c   : > { %v7048_v12 = vpop.permute.xlu1 %2962 }
 0x38d   : > { %v7050_v7 = vpop.permute.xlu0 %2960 }
 0x38e   : > { %3012 = vrot.lane.b32.xlu1 %v6718_v49, %s5750_s16 }
 0x38f   : > { %3014 = vrot.lane.b32.xlu0 %v6727_v63, %s5750_s16  ;;  %v2518_v63 = vsel %vm2343_vm3, %v6748_v36, 0.0  ;;  %v2524_v36 = vsel %vm2343_vm3, %v6778_v26, 0.0 }
 0x390   : > { %v7056_v6 = vpop.permute.xlu1 %2958 }
 0x391   : > { %v7058_v39 = vpop.permute.xlu0 %2956 }
 0x392   : > { %2694 = vrot.lane.b32.xlu1 %v2520_v40, %s5749_s15 }
 0x393   : > { %2696 = vrot.lane.b32.xlu0 %v6742_v37, %s5749_s15 }
 0x394   : > { %v7066_v60 = vpop.permute.xlu1 %2638 }
 0x395   : > { %v7068_v9 = vpop.permute.xlu0 %2640 }
 0x396   : > { %2690 = vrot.lane.b32.xlu1 %v2518_v63, %s5749_s15 }
 0x397   : > { %2692 = vrot.lane.b32.xlu0 %v6752_v45, %s5749_s15 }
 0x398   : > { %v7076_v49 = vpop.permute.xlu1 %2634 }
 0x399   : > { %v7078_v55 = vpop.permute.xlu0 %2636 }
 0x39a   : > { %3024 = vrot.lane.b32.xlu1 %v6758_v43, %s5750_s16 }
 0x39b   : > { %3026 = vrot.lane.b32.xlu0 %v6762_v21, %s5750_s16 }
 0x39c   : > { %v7084_v37 = vpop.permute.xlu1 %2970 }
 0x39d   : > { %v7086_v40 = vpop.permute.xlu0 %2968 }
 0x39e   : > { %3020 = vrot.lane.b32.xlu1 %v6760_v31, %s5750_s16  ;;  %v8882_v31 = vld [vmem:[#allocation55_spill] sm:$0xff] }
 0x39f   : > { %3022 = vrot.lane.b32.xlu0 %v6769_v61, %s5750_s16  ;;  %v2522_v61 = vsel %vm2343_vm3, %v6786_v54, 0.0  ;;  %v8885_v54 = vld [vmem:[#allocation59_spill] sm:$0xff] }
 0x3a0   : > { %v7092_v45 = vpop.permute.xlu1 %2966 }
 0x3a1   : > { %v7094_v63 = vpop.permute.xlu0 %2964 }
 0x3a2   : > { %2702 = vrot.lane.b32.xlu1 %v2524_v36, %s5749_s15 }
 0x3a3   : > { %2704 = vrot.lane.b32.xlu0 %v6782_v35, %s5749_s15 }
 0x3a4   : > { %v7102_v21 = vpop.permute.xlu1 %2646 }
 0x3a5   : > { %8880 = vst [vmem:[#allocation79_spill] sm:$0xff] %v7102_v21  ;;  %v7104_v43 = vpop.permute.xlu0 %2648  ;;  %v3118_v21 = vrot.slane %v6950_v15, 1  ;;  %v3153_v15 = vrot.slane %v6976_v50, 1  ;;  %v3152_v50 = vrot.slane %v6984_v19, 1  ;;  %v3155_v19 = vrot.slane %v7012_v20, 1 }
 0x3a6   : > { %8881 = vst [vmem:[#allocation80_spill] sm:$0xff] %v7104_v43  ;;  %2698 = vrot.lane.b32.xlu1 %v2522_v61, %s5749_s15  ;;  %v3154_v20 = vrot.slane %v7020_v3, 1  ;;  %v3157_v3 = vrot.slane %v7048_v12, 1  ;;  %v3156_v12 = vrot.slane %v7056_v6, 1  ;;  %v3159_v6 = vrot.slane %v7084_v37, 1 }
 0x3a7   : > { %2700 = vrot.lane.b32.xlu0 %v8882_v31, %s5749_s15  ;;  %v3158_v37 = vrot.slane %v7092_v45, 1 }
 0x3a8   : > { %v7112_v16 = vpop.permute.xlu1 %2642 }
 0x3a9   : > { %8883 = vst [vmem:[#allocation55_spill] sm:$0xff] %v7112_v16  ;;  %v7114_v26 = vpop.permute.xlu0 %2644 }
 0x3aa   : > { %8884 = vst [vmem:[#allocation81_spill] sm:$0xff] %v7114_v26  ;;  %3032 = vrot.lane.b32.xlu1 %v6799_v38, %s5750_s16  ;;  %v2528_v38 = vsel %vm2343_vm3, %v6822_v4, 0.0 }
 0x3ab   : > { %3034 = vrot.lane.b32.xlu0 %v6804_v52, %s5750_s16  ;;  %v8886_v52 = vld [vmem:[#allocation60_spill] sm:$0xff] }
 0x3ac   : > { %v7120_v35 = vpop.permute.xlu1 %2978 }
 0x3ad   : > { %v7122_v36 = vpop.permute.xlu0 %2976  ;;  %v3161_v45 = vrot.slane %v7120_v35, 1 }
 0x3ae   : > { %3028 = vrot.lane.b32.xlu1 %v6802_v5, %s5750_s16  ;;  %v8889_v5 = vld [vmem:[#allocation61_spill] sm:$0xff] }
 0x3af   : > { %3030 = vrot.lane.b32.xlu0 %v8885_v54, %s5750_s16  ;;  %v2526_v54 = vsel %vm2343_vm3, %v8889_v5, 0.0 }
 0x3b0   : > { %v7128_v31 = vpop.permute.xlu1 %2974 }
 0x3b1   : > { %v7130_v61 = vpop.permute.xlu0 %2972  ;;  %v3160_v35 = vrot.slane %v7128_v31, 1 }
 0x3b2   : > { %2710 = vrot.lane.b32.xlu1 %v2528_v38, %s5749_s15  ;;  %v8891_v38 = vld [vmem:[#allocation62_spill] sm:$0xff] }
 0x3b3   : > { %2712 = vrot.lane.b32.xlu0 %v8886_v52, %s5749_s15  ;;  %v8892_v52 = vld [vmem:[#allocation65_spill] sm:$0xff] }
 0x3b4   : > { %v7138_v51 = vpop.permute.xlu1 %2654 }
 0x3b5   : > { %8887 = vst [vmem:[#allocation60_spill] sm:$0xff] %v7138_v51  ;;  %v7140_v26 = vpop.permute.xlu0 %2656 }
 0x3b6   : > { %8888 = vst [vmem:[#allocation82_spill] sm:$0xff] %v7140_v26  ;;  %2706 = vrot.lane.b32.xlu1 %v2526_v54, %s5749_s15  ;;  %v2530_v54 = vsel %vm2343_vm3, %v6874_v18, 0.0 }
 0x3b7   : > { %2708 = vrot.lane.b32.xlu0 %v6836_v14, %s5749_s15 }
 0x3b8   : > { %v7148_v16 = vpop.permute.xlu1 %2650 }
 0x3b9   : > { %8890 = vst [vmem:[#allocation61_spill] sm:$0xff] %v7148_v16  ;;  %v7150_v4 = vpop.permute.xlu0 %2984  ;;  %v8897_v16 = vld [vmem:[#allocation71_spill] sm:$0xff] }
 0x3ba   : > { %3040 = vrot.lane.b32.xlu1 %v8891_v38, %s5750_s16  ;;  %v3149_v38 = vrot.slane %v6886_v47, 1  ;;  %v7186_v47 = vadd.s32 8, %v6365_v11 }
 0x3bb   : > { %3042 = vrot.lane.b32.xlu0 %v8892_v52, %s5750_s16  ;;  %v8894_v52 = vld [vmem:[#allocation67_spill] sm:$0xff] }
 0x3bc   : > { %v7156_v26 = vpop.permute.xlu1 %2986  ;;  %vm2859_vm5 = vcmp.lt.s32.totalorder %v7186_v47, 15 }
 0x3bd   : > { %v7158_v51 = vpop.permute.xlu0 %2652  ;;  %v3163_v31 = vrot.slane %v7156_v26, 1 }
 0x3be   : > { %8893 = vst [vmem:[#allocation83_spill] sm:$0xff] %v7158_v51  ;;  %3036 = vrot.lane.b32.xlu1 %v6845_v30, %s5750_s16  ;;  %v3117_v30 = vrot.slane %v8894_v52, 1  ;;  %v8900_v52 = vld [vmem:[#allocation73_spill] sm:$0xff] }
 0x3bf   : > { %3038 = vrot.lane.b32.xlu0 %v6853_v57, %s5750_s16  ;;  %v3148_v17 = vrot.slane %v8900_v52, 1 }
 0x3c0   : > { %v7164_v14 = vpop.permute.xlu1 %2982  ;;  %v3182_v18 = vsel %vm3180_vm4, %v3117_v30, %v3149_v38 }
 0x3c1   : > { %v7166_v5 = vpop.permute.xlu0 %2980  ;;  %v3162_v26 = vrot.slane %v7164_v14, 1 }
 0x3c2   : > { %2714 = vrot.lane.b32.xlu1 %v2530_v54, %s5749_s15 }
 0x3c3   : > { %2716 = vrot.lane.b32.xlu0 %v6878_v48, %s5749_s15 }
 0x3c4   : > { %v7177_v57 = vpop.permute.xlu1 %2662 }
 0x3c5   : > { %8895 = vst [vmem:[#allocation67_spill] sm:$0xff] %v7177_v57  ;;  %v7179_v51 = vpop.permute.xlu0 %2664  ;;  %v8902_v57 = vld [vmem:[#allocation70_spill] sm:$0xff] }
 0x3c6   : > { %8896 = vst [vmem:[#allocation84_spill] sm:$0xff] %v7179_v51  ;;  %3048 = vrot.lane.b32.xlu1 %v8897_v16, %s5750_s16  ;;  %v3214_v16 = vsel %vm3180_vm4, %v3149_v38, %v3117_v30  ;;  %v8901_v51 = vld [vmem:[#allocation74_spill] sm:$0xff]  ;;  %v3116_v43 = vrot.slane %v8902_v57, 1  ;;  %v3151_v38 = vrot.slane %v6940_v58, 1 }
 0x3c7   : > { %3377 = vrot.lane.b32.xlu0 %v3182_v18, %s5749_s15  ;;  %v3248_v52 = vsel %vm2859_vm5, %v3214_v16, 0.0 }
 0x3c8   : > { %v7189_v48 = vpop.permute.xlu1 %2658  ;;  %v3213_v30 = vsel %vm3180_vm4, %v3148_v17, %v3116_v43 }
 0x3c9   : > { %8898 = vst [vmem:[#allocation85_spill] sm:$0xff] %v7189_v48  ;;  %v7191_v54 = vpop.permute.xlu0 %2660  ;;  %v3246_v16 = vsel %vm2859_vm5, %v3213_v30, 0.0  ;;  %v3121_v30 = vrot.slane %v6978_v46, 1  ;;  %v3120_v46 = vrot.slane %v6986_v53, 1  ;;  %v3123_v53 = vrot.slane %v7014_v56, 1 }
 0x3ca   : > { %8899 = vst [vmem:[#allocation86_spill] sm:$0xff] %v7191_v54  ;;  %3044 = vrot.lane.b32.xlu1 %v6888_v8, %s5750_s16  ;;  %v3181_v8 = vsel %vm3180_vm4, %v3116_v43, %v3148_v17  ;;  %v8903_v17 = vld [vmem:[#allocation75_spill] sm:$0xff]  ;;  %v3122_v56 = vrot.slane %v7022_v22, 1  ;;  %v3125_v22 = vrot.slane %v7050_v7, 1  ;;  %v3124_v7 = vrot.slane %v7058_v39, 1 }
 0x3cb   : > { %3050 = vrot.lane.b32.xlu0 %v8901_v51, %s5750_s16  ;;  %v3119_v51 = vrot.slane %v6942_v24, 1  ;;  %v3127_v39 = vrot.slane %v7086_v40, 1  ;;  %v3126_v40 = vrot.slane %v7094_v63, 1  ;;  %v3129_v63 = vrot.slane %v7122_v36, 1 }
 0x3cc   : > { %v7202_v18 = vpop.permute.xlu1 %2992  ;;  %v3128_v36 = vrot.slane %v7130_v61, 1 }
 0x3cd   : > { %v7204_v48 = vpop.permute.xlu0 %2988  ;;  %v3216_v43 = vsel %vm3180_vm4, %v3151_v38, %v3119_v51  ;;  %v3184_v24 = vsel %vm3180_vm4, %v3119_v51, %v3151_v38 }
 0x3ce   : > { %3379 = vrot.lane.b32.xlu1 %v3248_v52, %s5749_s15  ;;  %v3150_v52 = vrot.slane %v6948_v1, 1  ;;  %v3252_v1 = vsel %vm2859_vm5, %v3216_v43, 0.0  ;;  %v3218_v43 = vsel %vm3180_vm4, %v3153_v15, %v3121_v30  ;;  %v3225_v61 = vsel %vm3180_vm4, %v3160_v35, %v3128_v36 }
 0x3cf   : > { %3373 = vrot.lane.b32.xlu0 %v3181_v8, %s5749_s15 }
 0x3d0   : > { %v7216_v57 = vpop.permute.xlu1 %2990  ;;  %v3183_v51 = vsel %vm3180_vm4, %v3118_v21, %v3150_v52 }
 0x3d1   : > { %v7218_v54 = vpop.permute.xlu0 %2994 }
 0x3d2   : > { %3375 = vrot.lane.b32.xlu1 %v3246_v16, %s5749_s15  ;;  %v3215_v16 = vsel %vm3180_vm4, %v3150_v52, %v3118_v21  ;;  %v3186_v21 = vsel %vm3180_vm4, %v3121_v30, %v3153_v15  ;;  %v3256_v52 = vsel %vm2859_vm5, %v3218_v43, 0.0  ;;  %v3185_v15 = vsel %vm3180_vm4, %v3120_v46, %v3152_v50 }
 0x3d3   : > { %3046 = vrot.lane.b32.xlu0 %v8903_v17, %s5750_s16  ;;  %v3250_v38 = vsel %vm2859_vm5, %v3215_v16, 0.0  ;;  %v3217_v16 = vsel %vm3180_vm4, %v3152_v50, %v3120_v46  ;;  %v3220_v43 = vsel %vm3180_vm4, %v3155_v19, %v3123_v53  ;;  %v3188_v50 = vsel %vm3180_vm4, %v3123_v53, %v3155_v19 }
 0x3d4   : > { %v7229_v8 = vpop.permute.xlu1 %2670  ;;  %v3254_v30 = vsel %vm2859_vm5, %v3217_v16, 0.0  ;;  %v3260_v46 = vsel %vm2859_vm5, %v3220_v43, 0.0  ;;  %v3219_v16 = vsel %vm3180_vm4, %v3154_v20, %v3122_v56  ;;  %v3187_v19 = vsel %vm3180_vm4, %v3122_v56, %v3154_v20 }
 0x3d5   : > { %v7231_v58 = vpop.permute.xlu0 %2672  ;;  %v3258_v53 = vsel %vm2859_vm5, %v3219_v16, 0.0  ;;  %v3222_v43 = vsel %vm3180_vm4, %v3157_v3, %v3125_v22  ;;  %v3190_v20 = vsel %vm3180_vm4, %v3125_v22, %v3157_v3  ;;  %v3221_v16 = vsel %vm3180_vm4, %v3156_v12, %v3124_v7 }
 0x3d6   : > { %8904 = vst [vmem:[#allocation73_spill] sm:$0xff] %v7231_v58  ;;  %3385 = vrot.lane.b32.xlu1 %v3184_v24, %s5749_s15  ;;  %v3264_v56 = vsel %vm2859_vm5, %v3222_v43, 0.0  ;;  %v3189_v3 = vsel %vm3180_vm4, %v3124_v7, %v3156_v12  ;;  %v3262_v22 = vsel %vm2859_vm5, %v3221_v16, 0.0  ;;  %v3224_v43 = vsel %vm3180_vm4, %v3159_v6, %v3127_v39 }
 0x3d7   : > { %3387 = vrot.lane.b32.xlu0 %v3252_v1, %s5749_s15  ;;  %v3192_v12 = vsel %vm3180_vm4, %v3127_v39, %v3159_v6  ;;  %v3268_v7 = vsel %vm2859_vm5, %v3224_v43, 0.0  ;;  %v3223_v16 = vsel %vm3180_vm4, %v3158_v37, %v3126_v40  ;;  %v3191_v6 = vsel %vm3180_vm4, %v3126_v40, %v3158_v37 }
 0x3d8   : > { %v7243_v17 = vpop.permute.xlu1 %2666  ;;  %v3266_v39 = vsel %vm2859_vm5, %v3223_v16, 0.0  ;;  %v3226_v43 = vsel %vm3180_vm4, %v3161_v45, %v3129_v63  ;;  %v3194_v37 = vsel %vm3180_vm4, %v3129_v63, %v3161_v45  ;;  %v3193_v45 = vsel %vm3180_vm4, %v3128_v36, %v3160_v35 }
 0x3d9   : > { %v7245_v58 = vpop.permute.xlu0 %2668  ;;  %v3272_v40 = vsel %vm2859_vm5, %v3226_v43, 0.0  ;;  %v3270_v63 = vsel %vm2859_vm5, %v3225_v61, 0.0  ;;  %v3130_v43 = vrot.slane %v7166_v5, 1  ;;  %v3165_v14 = vrot.slane %v7218_v54, 1 }
 0x3da   : > { %3381 = vrot.lane.b32.xlu1 %v3183_v51, %s5749_s15  ;;  %v3164_v54 = vrot.slane %v7216_v57, 1 }
 0x3db   : > { %3383 = vrot.lane.b32.xlu0 %v3250_v38, %s5749_s15  ;;  %v3227_v5 = vsel %vm3180_vm4, %v3162_v26, %v3130_v43 }
 0x3dc   : > { %v7257_v24 = vpop.permute.xlu1 %3000 }
 0x3dd   : > { %v7259_v1 = vpop.permute.xlu0 %3002  ;;  %v3135_v57 = vrot.slane %v7257_v24, 1 }
 0x3de   : > { %3393 = vrot.lane.b32.xlu1 %v3186_v21, %s5749_s15 }
 0x3df   : > { %3395 = vrot.lane.b32.xlu0 %v3256_v52, %s5749_s15 }
 0x3e0   : > { %v7271_v51 = vpop.permute.xlu1 %2996 }
 0x3e1   : > { %v7273_v38 = vpop.permute.xlu0 %2998  ;;  %v3134_v24 = vrot.slane %v7271_v51, 1 }
 0x3e2   : > { %3389 = vrot.lane.b32.xlu1 %v3185_v15, %s5749_s15 }
 0x3e3   : > { %3391 = vrot.lane.b32.xlu0 %v3254_v30, %s5749_s15 }
 0x3e4   : > { %v7285_v21 = vpop.permute.xlu1 %2678 }
 0x3e5   : > { %v7287_v52 = vpop.permute.xlu0 %2680 }
 0x3e6   : > { %3401 = vrot.lane.b32.xlu1 %v3188_v50, %s5749_s15 }
 0x3e7   : > { %3403 = vrot.lane.b32.xlu0 %v3260_v46, %s5749_s15 }
 0x3e8   : > { %v7299_v15 = vpop.permute.xlu1 %2674 }
 0x3e9   : > { %v7301_v30 = vpop.permute.xlu0 %2676 }
 0x3ea   : > { %3397 = vrot.lane.b32.xlu1 %v3187_v19, %s5749_s15 }
 0x3eb   : > { %3399 = vrot.lane.b32.xlu0 %v3258_v53, %s5749_s15 }
 0x3ec   : > { %v7313_v50 = vpop.permute.xlu1 %3008 }
 0x3ed   : > { %v7315_v46 = vpop.permute.xlu0 %3010  ;;  %v3137_v51 = vrot.slane %v7313_v50, 1 }
 0x3ee   : > { %3409 = vrot.lane.b32.xlu1 %v3190_v20, %s5749_s15 }
 0x3ef   : > { %3411 = vrot.lane.b32.xlu0 %v3264_v56, %s5749_s15 }
 0x3f0   : > { %v7327_v19 = vpop.permute.xlu1 %3004 }
 0x3f1   : > { %v7329_v53 = vpop.permute.xlu0 %3006  ;;  %v3136_v50 = vrot.slane %v7327_v19, 1 }
 0x3f2   : > { %3405 = vrot.lane.b32.xlu1 %v3189_v3, %s5749_s15 }
 0x3f3   : > { %3407 = vrot.lane.b32.xlu0 %v3262_v22, %s5749_s15 }
 0x3f4   : > { %v7341_v20 = vpop.permute.xlu1 %2686 }
 0x3f5   : > { %v7343_v56 = vpop.permute.xlu0 %2688 }
 0x3f6   : > { %3417 = vrot.lane.b32.xlu1 %v3192_v12, %s5749_s15 }
 0x3f7   : > { %3419 = vrot.lane.b32.xlu0 %v3268_v7, %s5749_s15 }
 0x3f8   : > { %v7355_v3 = vpop.permute.xlu1 %2682 }
 0x3f9   : > { %v7357_v22 = vpop.permute.xlu0 %2684 }
 0x3fa   : > { %3413 = vrot.lane.b32.xlu1 %v3191_v6, %s5749_s15  ;;  %v3131_v6 = vrot.slane %v7150_v4, 1 }
 0x3fb   : > { %3415 = vrot.lane.b32.xlu0 %v3266_v39, %s5749_s15 }
 0x3fc   : > { %v7369_v12 = vpop.permute.xlu1 %3016  ;;  %v3196_v35 = vsel %vm3180_vm4, %v3131_v6, %v3163_v31 }
 0x3fd   : > { %v7371_v7 = vpop.permute.xlu0 %3018 }
 0x3fe   : > { %3425 = vrot.lane.b32.xlu1 %v3194_v37, %s5749_s15  ;;  %v3228_v37 = vsel %vm3180_vm4, %v3163_v31, %v3131_v6  ;;  %v3195_v31 = vsel %vm3180_vm4, %v3130_v43, %v3162_v26  ;;  %v3274_v6 = vsel %vm2859_vm5, %v3227_v5, 0.0  ;;  %v3167_v5 = vrot.slane %v7259_v1, 1 }
 0x3ff   : > { %3427 = vrot.lane.b32.xlu0 %v3272_v40, %s5749_s15  ;;  %v3276_v36 = vsel %vm2859_vm5, %v3228_v37, 0.0  ;;  %v3166_v1 = vrot.slane %v7273_v38, 1  ;;  %v3169_v38 = vrot.slane %v7315_v46, 1  ;;  %v3168_v46 = vrot.slane %v7329_v53, 1 }
 0x400   : > { %v7382_v16 = vpop.permute.xlu1 %3012  ;;  %v3171_v19 = vrot.slane %v7371_v7, 1 }
 0x401   : > { %v7385_v39 = vpop.permute.xlu0 %3014  ;;  %v3233_v53 = vsel %vm3180_vm4, %v3168_v46, %v3136_v50 }
 0x402   : > { %3421 = vrot.lane.b32.xlu1 %v3193_v45, %s5749_s15  ;;  %v3133_v45 = vrot.slane %v7202_v18, 1  ;;  %v3132_v18 = vrot.slane %v7204_v48, 1 }
 0x403   : > { %3423 = vrot.lane.b32.xlu0 %v3270_v63, %s5749_s15 }
 0x404   : > { %v7397_v4 = vpop.permute.xlu1 %2694  ;;  %v3230_v37 = vsel %vm3180_vm4, %v3165_v14, %v3133_v45  ;;  %v3198_v26 = vsel %vm3180_vm4, %v3133_v45, %v3165_v14  ;;  %v3197_v14 = vsel %vm3180_vm4, %v3132_v18, %v3164_v54 }
 0x405   : > { %v7399_v40 = vpop.permute.xlu0 %2696  ;;  %v3280_v43 = vsel %vm2859_vm5, %v3230_v37, 0.0  ;;  %v3232_v37 = vsel %vm3180_vm4, %v3167_v5, %v3135_v57 }
 0x406   : > { %3433 = vrot.lane.b32.xlu1 %v3196_v35, %s5749_s15 }
 0x407   : > { %3435 = vrot.lane.b32.xlu0 %v3276_v36, %s5749_s15 }
 0x408   : > { %v7410_v61 = vpop.permute.xlu1 %2690 }
 0x409   : > { %v7413_v63 = vpop.permute.xlu0 %2692 }
 0x40a   : > { %3429 = vrot.lane.b32.xlu1 %v3195_v31, %s5749_s15  ;;  %v3229_v31 = vsel %vm3180_vm4, %v3164_v54, %v3132_v18  ;;  %v3200_v54 = vsel %vm3180_vm4, %v3135_v57, %v3167_v5  ;;  %v3284_v18 = vsel %vm2859_vm5, %v3232_v37, 0.0  ;;  %v3199_v57 = vsel %vm3180_vm4, %v3134_v24, %v3166_v1 }
 0x40b   : > { %3431 = vrot.lane.b32.xlu0 %v3274_v6, %s5749_s15  ;;  %v3278_v45 = vsel %vm2859_vm5, %v3229_v31, 0.0  ;;  %v3231_v31 = vsel %vm3180_vm4, %v3166_v1, %v3134_v24  ;;  %v3234_v37 = vsel %vm3180_vm4, %v3169_v38, %v3137_v51  ;;  %v3139_v1 = vrot.slane %v7369_v12, 1 }
 0x40c   : > { %v7424_v35 = vpop.permute.xlu1 %3024  ;;  %v3282_v5 = vsel %vm2859_vm5, %v3231_v31, 0.0  ;;  %v3288_v24 = vsel %vm2859_vm5, %v3234_v37, 0.0  ;;  %v3170_v12 = vrot.slane %v7385_v39, 1 }
 0x40d   : > { %v7427_v36 = vpop.permute.xlu0 %3026  ;;  %v3236_v7 = vsel %vm3180_vm4, %v3171_v19, %v3139_v1 }
 0x40e   : > { %3441 = vrot.lane.b32.xlu1 %v3198_v26, %s5749_s15  ;;  %v3173_v39 = vrot.slane %v7427_v36, 1 }
 0x40f   : > { %3443 = vrot.lane.b32.xlu0 %v3280_v43, %s5749_s15 }
 0x410   : > { %v7439_v48 = vpop.permute.xlu1 %3020 }
 0x411   : > { %v7441_v6 = vpop.permute.xlu0 %3022 }
 0x412   : > { %3437 = vrot.lane.b32.xlu1 %v3197_v14, %s5749_s15  ;;  %v3172_v36 = vrot.slane %v7441_v6, 1 }
 0x413   : > { %3439 = vrot.lane.b32.xlu0 %v3278_v45, %s5749_s15 }
 0x414   : > { %v7453_v26 = vpop.permute.xlu1 %2702 }
 0x415   : > { %v7455_v43 = vpop.permute.xlu0 %2704 }
 0x416   : > { %3449 = vrot.lane.b32.xlu1 %v3200_v54, %s5749_s15 }
 0x417   : > { %3451 = vrot.lane.b32.xlu0 %v3284_v18, %s5749_s15 }
 0x418   : > { %v7467_v14 = vpop.permute.xlu1 %2698 }
 0x419   : > { %8905 = vst [vmem:[#allocation70_spill] sm:$0xff] %v7467_v14  ;;  %v7469_v45 = vpop.permute.xlu0 %2700 }
 0x41a   : > { %8906 = vst [vmem:[#allocation87_spill] sm:$0xff] %v7469_v45  ;;  %3445 = vrot.lane.b32.xlu1 %v3199_v57, %s5749_s15  ;;  %v3202_v45 = vsel %vm3180_vm4, %v3137_v51, %v3169_v38  ;;  %v3286_v51 = vsel %vm2859_vm5, %v3233_v53, 0.0  ;;  %v3138_v38 = vrot.slane %v7382_v16, 1  ;;  %v3141_v16 = vrot.slane %v7424_v35, 1 }
 0x41b   : > { %3447 = vrot.lane.b32.xlu0 %v3282_v5, %s5749_s15  ;;  %v3201_v5 = vsel %vm3180_vm4, %v3136_v50, %v3168_v46  ;;  %v3204_v50 = vsel %vm3180_vm4, %v3139_v1, %v3171_v19  ;;  %v3292_v46 = vsel %vm2859_vm5, %v3236_v7, 0.0  ;;  %v3140_v35 = vrot.slane %v7439_v48, 1 }
 0x41c   : > { %v3033_v54 = vpop.permute.xlu1 %3032  ;;  %v3203_v1 = vsel %vm3180_vm4, %v3138_v38, %v3170_v12 }
 0x41d   : > { %v3035_v18 = vpop.permute.xlu0 %3034  ;;  %v3143_v48 = vrot.slane %v3033_v54, 1  ;;  %v3237_v6 = vsel %vm3180_vm4, %v3172_v36, %v3140_v35 }
 0x41e   : > { %3457 = vrot.lane.b32.xlu1 %v3202_v45, %s5749_s15 }
 0x41f   : > { %3459 = vrot.lane.b32.xlu0 %v3288_v24, %s5749_s15  ;;  %v3235_v24 = vsel %vm3180_vm4, %v3170_v12, %v3138_v38  ;;  %v3206_v38 = vsel %vm3180_vm4, %v3141_v16, %v3173_v39 }
 0x420   : > { %v3029_v31 = vpop.permute.xlu1 %3028  ;;  %v3290_v19 = vsel %vm2859_vm5, %v3235_v24, 0.0 }
 0x421   : > { %v3031_v57 = vpop.permute.xlu0 %3030 }
 0x422   : > { %3453 = vrot.lane.b32.xlu1 %v3201_v5, %s5749_s15  ;;  %v3174_v54 = vrot.slane %v3031_v57, 1 }
 0x423   : > { %3455 = vrot.lane.b32.xlu0 %v3286_v51, %s5749_s15  ;;  %v3238_v51 = vsel %vm3180_vm4, %v3173_v39, %v3141_v16  ;;  %v3294_v16 = vsel %vm2859_vm5, %v3237_v6, 0.0  ;;  %v3142_v39 = vrot.slane %v3029_v31, 1 }
 0x424   : > { %v7501_v45 = vpop.permute.xlu1 %2710  ;;  %v3296_v12 = vsel %vm2859_vm5, %v3238_v51, 0.0 }
 0x425   : > { %8907 = vst [vmem:[#allocation88_spill] sm:$0xff] %v7501_v45  ;;  %v7503_v37 = vpop.permute.xlu0 %2712  ;;  %v3239_v31 = vsel %vm3180_vm4, %v3174_v54, %v3142_v39  ;;  %v3207_v6 = vsel %vm3180_vm4, %v3142_v39, %v3174_v54  ;;  %v8914_v39 = vld [vmem:[#allocation5_spill] sm:$0xff] }
 0x426   : > { %8908 = vst [vmem:[#allocation89_spill] sm:$0xff] %v7503_v37  ;;  %3465 = vrot.lane.b32.xlu1 %v3204_v50, %s5749_s15  ;;  %v2797_v54 = vadd.f32 %v8914_v39, %v6906_v23 }
 0x427   : > { %3467 = vrot.lane.b32.xlu0 %v3292_v46, %s5749_s15  ;;  %v3175_v46 = vrot.slane %v3035_v18, 1 }
 0x428   : > { %v7515_v53 = vpop.permute.xlu1 %2706 }
 0x429   : > { %8909 = vst [vmem:[#allocation90_spill] sm:$0xff] %v7515_v53  ;;  %v7517_v5 = vpop.permute.xlu0 %2708  ;;  %v3240_v18 = vsel %vm3180_vm4, %v3175_v46, %v3143_v48  ;;  %v8917_v53 = vld [vmem:[#allocation6_spill] sm:$0xff] }
 0x42a   : > { %8910 = vst [vmem:[#allocation91_spill] sm:$0xff] %v7517_v5  ;;  %3461 = vrot.lane.b32.xlu1 %v3203_v1, %s5749_s15  ;;  %v2795_v37 = vadd.f32 %v8917_v53, %v6932_v28 }
 0x42b   : > { %3463 = vrot.lane.b32.xlu0 %v3290_v19, %s5749_s15  ;;  %v3205_v19 = vsel %vm3180_vm4, %v3140_v35, %v3172_v36  ;;  %v3300_v35 = vsel %vm2859_vm5, %v3240_v18, 0.0 }
 0x42c   : > { %v7529_v7 = vpop.permute.xlu1 %3040 }
 0x42d   : > { %v7531_v50 = vpop.permute.xlu0 %3042 }
 0x42e   : > { %3473 = vrot.lane.b32.xlu1 %v3206_v38, %s5749_s15 }
 0x42f   : > { %3475 = vrot.lane.b32.xlu0 %v3296_v12, %s5749_s15  ;;  %v3208_v12 = vsel %vm3180_vm4, %v3143_v48, %v3175_v46  ;;  %v3298_v48 = vsel %vm2859_vm5, %v3239_v31, 0.0  ;;  %v8913_v46 = vld [vmem:[#allocation3_spill] sm:$0xff]  ;;  %v8915_v31 = vld [vmem:[#allocation4_spill] sm:$0xff] }
 0x430   : > { %v7541_v24 = vpop.permute.xlu1 %3036 }
 0x431   : > { %v7543_v1 = vpop.permute.xlu0 %3038 }
 0x432   : > { %3469 = vrot.lane.b32.xlu1 %v3205_v19, %s5749_s15  ;;  %v2796_v19 = vadd.f32 %v8913_v46, %v6912_v34  ;;  %v8916_v46 = vld [vmem:[#allocation63_spill] sm:$0xff] }
 0x433   : > { %3471 = vrot.lane.b32.xlu0 %v3294_v16, %s5749_s15  ;;  %v5667_v16 = vld [vmem:[%s8711_s5] sm:$0xff]  }
 0x434   : > { %v7553_v51 = vpop.permute.xlu1 %2714  ;;  %5452 = vmatprep.subr.bf16.mxu0 %v5667_v16 }
 0x435   : > { %8911 = vst [vmem:[#allocation92_spill] sm:$0xff] %v7553_v51  ;;  %v7555_v38 = vpop.permute.xlu0 %2716  ;;  %5453 = vmatpush3.bf16.msra.mxu0 %v5667_v16 }
 0x436   : > { %8912 = vst [vmem:[#allocation93_spill] sm:$0xff] %v7555_v38  ;;  %3481 = vrot.lane.b32.xlu1 %v3208_v12, %s5749_s15 }
 0x437   : > { %3483 = vrot.lane.b32.xlu0 %v3300_v35, %s5749_s15 }
 0x438   : > { %v7565_v57 = vpop.permute.xlu1 %3048 }
 0x439   : > { %v3378_v36 = vpop.permute.xlu0 %3377 }
 0x43a   : > { %3477 = vrot.lane.b32.xlu1 %v3207_v6, %s5749_s15  ;;  %v3567_v12 = vadd.f32 %v3378_v36, %v2796_v19  ;;  %v2794_v6 = vadd.f32 %v8915_v31, %v6934_v13  ;;  %v8918_v13 = vld [vmem:[#allocation7_spill] sm:$0xff] }
 0x43b   : > { %3479 = vrot.lane.b32.xlu0 %v3298_v48, %s5749_s15  ;;  %v2800_v31 = vadd.f32 %v8918_v13, %v6958_v62 }
 0x43c   : > { %v7578_v18 = vpop.permute.xlu1 %3044  ;;  %v3640_v48 = vadd.f32 %v8916_v46, %v3567_v12 }
 0x43d   : > { %v7580_v35 = vpop.permute.xlu0 %3050 }
 0x43e   : > { %v3704_v45 = vmax.f32 %v3640_v48, 0.0  ;;  %v8920_v48 = vld [vmem:[#allocation8_spill] sm:$0xff] }
 0x440   : > { %v3380_v34 = vpop.permute.xlu1 %3379 }
 0x441   : > { %v3568_v51 = vadd.f32 %v3380_v34, %v2797_v54  ;;  %v3374_v38 = vpop.permute.xlu0 %3373 }
 0x442   : > { %v3565_v5 = vadd.f32 %v3374_v38, %v2794_v6  ;;  %v8919_v38 = vld [vmem:[#allocation9_spill] sm:$0xff] }
 0x443   : > { %v3641_v36 = vadd.f32 %v8916_v46, %v3568_v51  ;;  %v2801_v6 = vadd.f32 %v8919_v38, %v6960_v59 }
 0x444   : > { %v3376_v19 = vpop.permute.xlu1 %3375  ;;  %v3638_v14 = vadd.f32 %v8916_v46, %v3565_v5 }
 0x445   : > { %v3705_v16 = vmax.f32 %v3641_v36, 0.0  ;;  %v3566_v23 = vadd.f32 %v3376_v19, %v2795_v37  ;;  %v7591_v39 = vpop.permute.xlu0 %3046  ;;  %v2798_v36 = vadd.f32 %v8920_v48, %v6968_v33  ;;  %v3176_v33 = vrot.slane %v7543_v1, 1 }
 0x446   : > { %v3702_v53 = vmax.f32 %v3638_v14, 0.0 }
 0x447   : > { %v3767_v12 = vpack.c.bf16 %v3705_v16, %v3704_v45  ;;  %v3639_v54 = vadd.f32 %v8916_v46, %v3566_v23  ;;  %v8921_v45 = vld [vmem:[#allocation10_spill] sm:$0xff] }
 0x448   : > { %v3386_v28 = vpop.permute.xlu1 %3385  ;;  %v2799_v16 = vadd.f32 %v8921_v45, %v6970_v25 }
 0x449   : > { %v3703_v51 = vmax.f32 %v3639_v54, 0.0  ;;  %v3571_v34 = vadd.f32 %v3386_v28, %v2800_v31  ;;  %3841 = vrot.lane.b32.xlu0 %v3767_v12, %s5751_s20  ;;  %v3388_v5 = vpop.permute.xlu0 %3387  ;;  %v8922_v31 = vld [vmem:[#allocation68_spill] sm:$0xff]  ;;  %v3144_v54 = vrot.slane %v7541_v24, 1  ;;  %v8923_v28 = vld [vmem:[#allocation11_spill] sm:$0xff] }
 0x44a   : > { %v3572_v37 = vadd.f32 %v3388_v5, %v2801_v6  ;;  %v2804_v25 = vadd.f32 %v8923_v28, %v6994_v44 }
 0x44b   : > { %v3766_v19 = vpack.c.bf16 %v3703_v51, %v3702_v53  ;;  %v3644_v62 = vadd.f32 %v8916_v46, %v3571_v34  ;;  %v8924_v51 = vld [vmem:[#allocation13_spill] sm:$0xff] }
 0x44c   : > { %v3645_v59 = vadd.f32 %v8916_v46, %v3572_v37  ;;  %v3382_v23 = vpop.permute.xlu1 %3381  ;;  %v2805_v34 = vadd.f32 %v8924_v51, %v6996_v27  ;;  %v3241_v27 = vsel %vm3180_vm4, %v3176_v33, %v3144_v54  ;;  %v3145_v51 = vrot.slane %v7529_v7, 1 }
 0x44d   : > { %v3708_v14 = vmax.f32 %v3644_v62, 0.0  ;;  %v3569_v13 = vadd.f32 %v3382_v23, %v2798_v36  ;;  %3839 = vrot.lane.b32.xlu1 %v3766_v19, %s5751_s20  ;;  %2720 = vrot.lane.b32.xlu0 %v8922_v31, %s5749_s15  ;;  %v3384_v12 = vpop.permute.xlu0 %3383  ;;  %v8925_v36 = vld [vmem:[#allocation69_spill] sm:$0xff] }
 0x44e   : > { %v3709_v38 = vmax.f32 %v3645_v59, 0.0  ;;  %v3570_v6 = vadd.f32 %v3384_v12, %v2799_v16  ;;  %v2532_v24 = vsel %vm2343_vm3, %v8925_v36, 0.0  ;;  %v8926_v16 = vld [vmem:[#allocation12_spill] sm:$0xff]  ;;  %v8929_v36 = vld [vmem:[#allocation17_spill] sm:$0xff] }
 0x44f   : > { %v3642_v53 = vadd.f32 %v8916_v46, %v3569_v13  ;;  %v2802_v59 = vadd.f32 %v8926_v16, %v7004_v41 }
 0x450   : > { %v3769_v5 = vpack.c.bf16 %v3709_v38, %v3708_v14  ;;  %v3643_v37 = vadd.f32 %v8916_v46, %v3570_v6  ;;  %v3394_v48 = vpop.permute.xlu1 %3393  ;;  %v8927_v14 = vld [vmem:[#allocation14_spill] sm:$0xff] }
 0x451   : > { %v3706_v19 = vmax.f32 %v3642_v53, 0.0  ;;  %v3575_v1 = vadd.f32 %v3394_v48, %v2804_v25  ;;  %2718 = vrot.lane.b32.xlu1 %v2532_v24, %s5749_s15  ;;  %v3396_v62 = vpop.permute.xlu0 %3395  ;;  %v2803_v13 = vadd.f32 %v8927_v14, %v7006_v42  ;;  %v3302_v53 = vsel %vm2859_vm5, %v3241_v27, 0.0  ;;  %v8928_v42 = vld [vmem:[#allocation15_spill] sm:$0xff]  ;;  %v8931_v14 = vld [vmem:[#allocation18_spill] sm:$0xff] }
 0x452   : > { %v3707_v45 = vmax.f32 %v3643_v37, 0.0  ;;  %v3576_v44 = vadd.f32 %v3396_v62, %v2805_v34  ;;  %3845 = vrot.lane.b32.xlu0 %v3769_v5, %s5751_s20  ;;  %v3177_v34 = vrot.slane %v7531_v50, 1  ;;  %v2808_v37 = vadd.f32 %v8928_v42, %v7030_v29 }
 0x453   : > { %v3648_v23 = vadd.f32 %v8916_v46, %v3575_v1  ;;  %v2809_v24 = vadd.f32 %v8929_v36, %v7032_v0  ;;  %v8930_v0 = vld [vmem:[#allocation16_spill] sm:$0xff] }
 0x454   : > { %v3768_v31 = vpack.c.bf16 %v3707_v45, %v3706_v19  ;;  %v3649_v12 = vadd.f32 %v8916_v46, %v3576_v44  ;;  %v3390_v38 = vpop.permute.xlu1 %3389  ;;  %v3209_v44 = vsel %vm3180_vm4, %v3144_v54, %v3176_v33  ;;  %v3242_v29 = vsel %vm3180_vm4, %v3177_v34, %v3145_v51 }
 0x455   : > { %v3712_v6 = vmax.f32 %v3648_v23, 0.0  ;;  %v3573_v28 = vadd.f32 %v3390_v38, %v2802_v59  ;;  %v3392_v25 = vpop.permute.xlu0 %3391  ;;  %v2806_v59 = vadd.f32 %v8930_v0, %v7040_v2  ;;  %v8932_v2 = vld [vmem:[#allocation19_spill] sm:$0xff] }
 0x456   : > { %v3713_v41 = vmax.f32 %v3649_v12, 0.0  ;;  %v3574_v5 = vadd.f32 %v3392_v25, %v2803_v13  ;;  %3487 = vrot.lane.b32.xlu0 %v3302_v53, %s5749_s15  ;;  %3843 = vrot.lane.b32.xlu1 %v3768_v31, %s5751_s20  ;;  %v2807_v13 = vadd.f32 %v8931_v14, %v7042_v10 }
 0x457   : > { %v3646_v48 = vadd.f32 %v8916_v46, %v3573_v28  ;;  %v3304_v28 = vsel %vm2859_vm5, %v3242_v29, 0.0 }
 0x458   : > { %v3771_v19 = vpack.c.bf16 %v3713_v41, %v3712_v6  ;;  %v3647_v1 = vadd.f32 %v8916_v46, %v3574_v5  ;;  %v3402_v7 = vpop.permute.xlu1 %3401  ;;  %v2812_v41 = vadd.f32 %v8932_v2, %v7066_v60  ;;  %v8933_v5 = vld [vmem:[#allocation21_spill] sm:$0xff]  ;;  %v8934_v60 = vld [vmem:[#allocation20_spill] sm:$0xff] }
 0x459   : > { %v3710_v62 = vmax.f32 %v3646_v48, 0.0  ;;  %v3579_v50 = vadd.f32 %v3402_v7, %v2808_v37  ;;  %v3404_v45 = vpop.permute.xlu0 %3403  ;;  %v2813_v42 = vadd.f32 %v8933_v5, %v7068_v9  ;;  %v3210_v7 = vsel %vm3180_vm4, %v3145_v51, %v3177_v34 }
 0x45a   : > { %v3711_v27 = vmax.f32 %v3647_v1, 0.0  ;;  %v3580_v16 = vadd.f32 %v3404_v45, %v2809_v24  ;;  %3485 = vrot.lane.b32.xlu1 %v3209_v44, %s5749_s15  ;;  %3849 = vrot.lane.b32.xlu0 %v3771_v19, %s5751_s20  ;;  %v2810_v45 = vadd.f32 %v8934_v60, %v7076_v49  ;;  %v8935_v44 = vld [vmem:[#allocation22_spill] sm:$0xff]  ;;  %v8936_v49 = vld [vmem:[#allocation79_spill] sm:$0xff] }
 0x45b   : > { %v3652_v23 = vadd.f32 %v8916_v46, %v3579_v50 }
 0x45c   : > { %v3770_v31 = vpack.c.bf16 %v3711_v27, %v3710_v62  ;;  %v3653_v54 = vadd.f32 %v8916_v46, %v3580_v16  ;;  %v3398_v33 = vpop.permute.xlu1 %3397  ;;  %v2811_v27 = vadd.f32 %v8935_v44, %v7078_v55  ;;  %v8938_v55 = vld [vmem:[#allocation80_spill] sm:$0xff]  ;;  %v3178_v44 = vrot.slane %v7591_v39, 1 }
 0x45d   : > { %v3716_v12 = vmax.f32 %v3652_v23, 0.0  ;;  %v3577_v38 = vadd.f32 %v3398_v33, %v2806_v59  ;;  %v3400_v6 = vpop.permute.xlu0 %3399  ;;  %v8939_v33 = vld [vmem:[#allocation25_spill] sm:$0xff] }
 0x45e   : > { %v3717_v25 = vmax.f32 %v3653_v54, 0.0  ;;  %v3578_v53 = vadd.f32 %v3400_v6, %v2807_v13  ;;  %3491 = vrot.lane.b32.xlu0 %v3304_v28, %s5749_s15  ;;  %3847 = vrot.lane.b32.xlu1 %v3770_v31, %s5751_s20  ;;  %v8937_v13 = vld [vmem:[#allocation23_spill] sm:$0xff] }
 0x45f   : > { %v3650_v10 = vadd.f32 %v8916_v46, %v3577_v38  ;;  %v2816_v31 = vadd.f32 %v8937_v13, %v8936_v49  ;;  %v3146_v13 = vrot.slane %v7578_v18, 1 }
 0x460   : > { %v3773_v37 = vpack.c.bf16 %v3717_v25, %v3716_v12  ;;  %v3651_v48 = vadd.f32 %v8916_v46, %v3578_v53  ;;  %v3410_v36 = vpop.permute.xlu1 %3409  ;;  %v2817_v12 = vadd.f32 %v8939_v33, %v8938_v55 }
 0x461   : > { %v3714_v24 = vmax.f32 %v3650_v10, 0.0  ;;  %v3583_v19 = vadd.f32 %v3410_v36, %v2812_v41  ;;  %v3412_v1 = vpop.permute.xlu0 %3411  ;;  %v8940_v41 = vld [vmem:[#allocation77_spill] sm:$0xff]  ;;  %v3243_v18 = vsel %vm3180_vm4, %v3178_v44, %v3146_v13 }
 0x462   : > { %v3715_v62 = vmax.f32 %v3651_v48, 0.0  ;;  %v3584_v50 = vadd.f32 %v3412_v1, %v2813_v42  ;;  %3489 = vrot.lane.b32.xlu1 %v3210_v7, %s5749_s15  ;;  %3853 = vrot.lane.b32.xlu0 %v3773_v37, %s5751_s20  ;;  %v2534_v10 = vsel %vm2343_vm3, %v8940_v41, 0.0  ;;  %v8941_v42 = vld [vmem:[#allocation55_spill] sm:$0xff]  ;;  %v8942_v37 = vld [vmem:[#allocation24_spill] sm:$0xff] }
 0x463   : > { %v3656_v9 = vadd.f32 %v8916_v46, %v3583_v19  ;;  %v2814_v48 = vadd.f32 %v8942_v37, %v8941_v42  ;;  %v8944_v19 = vld [vmem:[#allocation26_spill] sm:$0xff] }
 0x464   : > { %v3772_v16 = vpack.c.bf16 %v3715_v62, %v3714_v24  ;;  %v3657_v29 = vadd.f32 %v8916_v46, %v3584_v50  ;;  %v3406_v0 = vpop.permute.xlu1 %3405  ;;  %v8943_v24 = vld [vmem:[#allocation81_spill] sm:$0xff] }
 0x465   : > { %v3720_v59 = vmax.f32 %v3656_v9, 0.0  ;;  %v3581_v51 = vadd.f32 %v3406_v0, %v2810_v45  ;;  %v3408_v34 = vpop.permute.xlu0 %3407  ;;  %v2815_v1 = vadd.f32 %v8944_v19, %v8943_v24  ;;  %v8946_v0 = vld [vmem:[#allocation60_spill] sm:$0xff] }
 0x466   : > { %v3721_v23 = vmax.f32 %v3657_v29, 0.0  ;;  %v3582_v14 = vadd.f32 %v3408_v34, %v2811_v27  ;;  %3851 = vrot.lane.b32.xlu1 %v3772_v16, %s5751_s20  ;;  %2724 = vrot.lane.b32.xlu0 %v6919_v32, %s5749_s15  ;;  %v8945_v29 = vld [vmem:[#allocation76_spill] sm:$0xff] }
 0x467   : > { %v3654_v54 = vadd.f32 %v8916_v46, %v3581_v51 }
 0x468   : > { %v3775_v38 = vpack.c.bf16 %v3721_v23, %v3720_v59  ;;  %v3655_v6 = vadd.f32 %v8916_v46, %v3582_v14  ;;  %v3418_v28 = vpop.permute.xlu1 %3417  ;;  %v8947_v59 = vld [vmem:[#allocation27_spill] sm:$0xff]  ;;  %v8948_v23 = vld [vmem:[#allocation82_spill] sm:$0xff]  ;;  %v8949_v14 = vld [vmem:[#allocation29_spill] sm:$0xff] }
 0x469   : > { %v3718_v25 = vmax.f32 %v3654_v54, 0.0  ;;  %v3587_v53 = vadd.f32 %v3418_v28, %v2816_v31  ;;  %v3420_v2 = vpop.permute.xlu0 %3419  ;;  %v2820_v51 = vadd.f32 %v8947_v59, %v8946_v0  ;;  %v2821_v49 = vadd.f32 %v8949_v14, %v8948_v23  ;;  %v8958_v0 = vld [vmem:[#allocation33_spill] sm:$0xff] }
 0x46a   : > { %v3719_v32 = vmax.f32 %v3655_v6, 0.0  ;;  %v3588_v5 = vadd.f32 %v3420_v2, %v2817_v12  ;;  %2722 = vrot.lane.b32.xlu1 %v2534_v10, %s5749_s15  ;;  %3857 = vrot.lane.b32.xlu0 %v3775_v38, %s5751_s20  ;;  %v8950_v38 = vld [vmem:[#allocation78_spill] sm:$0xff]  ;;  %v8952_v2 = vld [vmem:[#allocation28_spill] sm:$0xff] }
 0x46b   : > { %v3660_v36 = vadd.f32 %v8916_v46, %v3587_v53  ;;  %v2536_v6 = vsel %vm2343_vm3, %v8950_v38, 0.0  ;;  %v8951_v53 = vld [vmem:[#allocation61_spill] sm:$0xff] }
 0x46c   : > { %v3774_v7 = vpack.c.bf16 %v3719_v32, %v3718_v25  ;;  %v3661_v62 = vadd.f32 %v8916_v46, %v3588_v5  ;;  %v3414_v50 = vpop.permute.xlu1 %3413  ;;  %v2818_v41 = vadd.f32 %v8952_v2, %v8951_v53  ;;  %v8953_v32 = vld [vmem:[#allocation83_spill] sm:$0xff]  ;;  %v8954_v5 = vld [vmem:[#allocation30_spill] sm:$0xff] }
 0x46d   : > { %v3724_v60 = vmax.f32 %v3660_v36, 0.0  ;;  %v3585_v45 = vadd.f32 %v3414_v50, %v2814_v48  ;;  %v3416_v9 = vpop.permute.xlu0 %3415  ;;  %v2819_v42 = vadd.f32 %v8954_v5, %v8953_v32 }
 0x46e   : > { %v3725_v27 = vmax.f32 %v3661_v62, 0.0  ;;  %v3586_v16 = vadd.f32 %v3416_v9, %v2815_v1  ;;  %3855 = vrot.lane.b32.xlu1 %v3774_v7, %s5751_s20  ;;  %2728 = vrot.lane.b32.xlu0 %v8945_v29, %s5749_s15  ;;  %v3306_v7 = vsel %vm2859_vm5, %v3243_v18, 0.0  ;;  %v3179_v62 = vrot.slane %v7580_v35, 1  ;;  %v8956_v9 = vld [vmem:[#allocation31_spill] sm:$0xff]  ;;  %v8957_v29 = vld [vmem:[#allocation84_spill] sm:$0xff] }
 0x46f   : > { %v3658_v34 = vadd.f32 %v8916_v46, %v3585_v45  ;;  %v8955_v45 = vld [vmem:[#allocation67_spill] sm:$0xff]  ;;  %v2825_v59 = vadd.f32 %v8958_v0, %v8957_v29 }
 0x470   : > { %v3777_v31 = vpack.c.bf16 %v3725_v27, %v3724_v60  ;;  %v3659_v39 = vadd.f32 %v8916_v46, %v3586_v16  ;;  %v3426_v54 = vpop.permute.xlu1 %3425  ;;  %v2824_v27 = vadd.f32 %v8956_v9, %v8955_v45 }
 0x471   : > { %v3722_v55 = vmax.f32 %v3658_v34, 0.0  ;;  %v3591_v33 = vadd.f32 %v3426_v54, %v2820_v51  ;;  %v3428_v12 = vpop.permute.xlu0 %3427  ;;  %v3147_v51 = vrot.slane %v7565_v57, 1  ;;  %v8959_v57 = vld [vmem:[#allocation32_spill] sm:$0xff] }
 0x472   : > { %v3723_v28 = vmax.f32 %v3659_v39, 0.0  ;;  %v3592_v25 = vadd.f32 %v3428_v12, %v2821_v49  ;;  %2726 = vrot.lane.b32.xlu1 %v2536_v6, %s5749_s15  ;;  %3861 = vrot.lane.b32.xlu0 %v3777_v31, %s5751_s20  ;;  %v3211_v39 = vsel %vm3180_vm4, %v3146_v13, %v3178_v44  ;;  %v8960_v12 = vld [vmem:[#allocation85_spill] sm:$0xff] }
 0x473   : > { %v3664_v10 = vadd.f32 %v8916_v46, %v3591_v33  ;;  %v3244_v33 = vsel %vm3180_vm4, %v3179_v62, %v3147_v51  ;;  %v2822_v38 = vadd.f32 %v8960_v12, %v8959_v57 }
 0x474   : > { %v3776_v37 = vpack.c.bf16 %v3723_v28, %v3722_v55  ;;  %v3665_v48 = vadd.f32 %v8916_v46, %v3592_v25  ;;  %v3422_v36 = vpop.permute.xlu1 %3421  ;;  %v8961_v28 = vld [vmem:[#allocation34_spill] sm:$0xff]  ;;  %v3308_v32 = vsel %vm2859_vm5, %v3244_v33, 0.0  ;;  %v8969_v33 = vld [vmem:[#allocation41_spill] sm:$0xff] }
 0x475   : > { %v3728_v24 = vmax.f32 %v3664_v10, 0.0  ;;  %v3589_v19 = vadd.f32 %v3422_v36, %v2818_v41  ;;  %v3424_v1 = vpop.permute.xlu0 %3423  ;;  %v8962_v25 = vld [vmem:[#allocation86_spill] sm:$0xff]  ;;  %v2833_v57 = vadd.f32 %v8969_v33, %v7287_v52 }
 0x476   : > { %v3729_v50 = vmax.f32 %v3665_v48, 0.0  ;;  %v3590_v60 = vadd.f32 %v3424_v1, %v2819_v42  ;;  %3859 = vrot.lane.b32.xlu1 %v3776_v37, %s5751_s20  ;;  %3495 = vrot.lane.b32.xlu0 %v3306_v7, %s5749_s15  ;;  %v2823_v18 = vadd.f32 %v8962_v25, %v8961_v28  ;;  %v8963_v37 = vld [vmem:[#allocation35_spill] sm:$0xff] }
 0x477   : > { %v3662_v16 = vadd.f32 %v8916_v46, %v3589_v19  ;;  %v2828_v48 = vadd.f32 %v8963_v37, %v7229_v8  ;;  %v8965_v19 = vld [vmem:[#allocation37_spill] sm:$0xff]  ;;  %v8966_v8 = vld [vmem:[#allocation36_spill] sm:$0xff] }
 0x478   : > { %v3779_v34 = vpack.c.bf16 %v3729_v50, %v3728_v24  ;;  %v3663_v23 = vadd.f32 %v8916_v46, %v3590_v60  ;;  %v3434_v35 = vpop.permute.xlu1 %3433  ;;  %v8964_v24 = vld [vmem:[#allocation73_spill] sm:$0xff]  ;;  %v2826_v0 = vadd.f32 %v7243_v17, %v8966_v8 }
 0x479   : > { %v3726_v14 = vmax.f32 %v3662_v16, 0.0  ;;  %v3595_v49 = vadd.f32 %v3434_v35, %v2824_v27  ;;  %v3436_v31 = vpop.permute.xlu0 %3435  ;;  %v2829_v1 = vadd.f32 %v8965_v19, %v8964_v24  ;;  %v3212_v27 = vsel %vm3180_vm4, %v3147_v51, %v3179_v62  ;;  %v8972_v24 = vld [vmem:[#allocation43_spill] sm:$0xff] }
 0x47a   : > { %v3727_v54 = vmax.f32 %v3663_v23, 0.0  ;;  %v3596_v55 = vadd.f32 %v3436_v31, %v2825_v59  ;;  %3493 = vrot.lane.b32.xlu1 %v3211_v39, %s5749_s15  ;;  %3865 = vrot.lane.b32.xlu0 %v3779_v34, %s5751_s20  ;;  %v8967_v34 = vld [vmem:[#allocation38_spill] sm:$0xff]  ;;  %v2836_v19 = vadd.f32 %v8972_v24, %v7341_v20 }
 0x47b   : > { %v3668_v6 = vadd.f32 %v8916_v46, %v3595_v49  ;;  %v2827_v23 = vadd.f32 %v7245_v58, %v8967_v34 }
 0x47c   : > { %v3778_v53 = vpack.c.bf16 %v3727_v54, %v3726_v14  ;;  %v3669_v44 = vadd.f32 %v8916_v46, %v3596_v55  ;;  %v3430_v13 = vpop.permute.xlu1 %3429  ;;  %v8968_v54 = vld [vmem:[#allocation39_spill] sm:$0xff] }
 0x47d   : > { %v3732_v2 = vmax.f32 %v3668_v6, 0.0  ;;  %v3593_v41 = vadd.f32 %v3430_v13, %v2822_v38  ;;  %v3432_v10 = vpop.permute.xlu0 %3431  ;;  %v2832_v55 = vadd.f32 %v8968_v54, %v7285_v21 }
 0x47e   : > { %v3733_v5 = vmax.f32 %v3669_v44, 0.0  ;;  %v3594_v42 = vadd.f32 %v3432_v10, %v2823_v18  ;;  %3863 = vrot.lane.b32.xlu1 %v3778_v53, %s5751_s20  ;;  %3499 = vrot.lane.b32.xlu0 %v3308_v32, %s5749_s15  ;;  %v8970_v44 = vld [vmem:[#allocation40_spill] sm:$0xff] }
 0x47f   : > { %v3666_v36 = vadd.f32 %v8916_v46, %v3593_v41  ;;  %v2830_v13 = vadd.f32 %v7299_v15, %v8970_v44 }
 0x480   : > { %v3781_v7 = vpack.c.bf16 %v3733_v5, %v3732_v2  ;;  %v3667_v50 = vadd.f32 %v8916_v46, %v3594_v42  ;;  %v3442_v60 = vpop.permute.xlu1 %3441  ;;  %v8971_v2 = vld [vmem:[#allocation42_spill] sm:$0xff] }
 0x481   : > { %v3730_v47 = vmax.f32 %v3666_v36, 0.0  ;;  %v3599_v45 = vadd.f32 %v3442_v60, %v2828_v48  ;;  %v3444_v9 = vpop.permute.xlu0 %3443  ;;  %v2831_v41 = vadd.f32 %v7301_v30, %v8971_v2 }
 0x482   : > { %v3731_v16 = vmax.f32 %v3667_v50, 0.0  ;;  %v3600_v29 = vadd.f32 %v3444_v9, %v2829_v1  ;;  %3497 = vrot.lane.b32.xlu1 %v3212_v27, %s5749_s15  ;;  %3869 = vrot.lane.b32.xlu0 %v3781_v7, %s5751_s20  ;;  %v8973_v1 = vld [vmem:[#allocation45_spill] sm:$0xff] }
 0x483   : > { %v3672_v59 = vadd.f32 %v8916_v46, %v3599_v45  ;;  %v2837_v7 = vadd.f32 %v8973_v1, %v7343_v56 }
 0x484   : > { %v3780_v35 = vpack.c.bf16 %v3731_v16, %v3730_v47  ;;  %v3673_v14 = vadd.f32 %v8916_v46, %v3600_v29  ;;  %v3438_v49 = vpop.permute.xlu1 %3437  ;;  %v8974_v29 = vld [vmem:[#allocation44_spill] sm:$0xff] }
 0x485   : > { %v3736_v11 = vmax.f32 %v3672_v59, 0.0  ;;  %v3597_v62 = vadd.f32 %v3438_v49, %v2826_v0  ;;  %v3440_v51 = vpop.permute.xlu0 %3439  ;;  %v2834_v8 = vadd.f32 %v7355_v3, %v8974_v29  ;;  %v8975_v0 = vld [vmem:[#allocation46_spill] sm:$0xff] }
 0x486   : > { %v3737_v31 = vmax.f32 %v3673_v14, 0.0  ;;  %v3598_v39 = vadd.f32 %v3440_v51, %v2827_v23  ;;  %3867 = vrot.lane.b32.xlu1 %v3780_v35, %s5751_s20  ;;  %v2835_v59 = vadd.f32 %v7357_v22, %v8975_v0  ;;  %v8976_v51 = vld [vmem:[#allocation47_spill] sm:$0xff] }
 0x487   : > { %v3670_v17 = vadd.f32 %v8916_v46, %v3597_v62 }
 0x488   : > { %v3783_v58 = vpack.c.bf16 %v3737_v31, %v3736_v11  ;;  %v3671_v12 = vadd.f32 %v8916_v46, %v3598_v39  ;;  %v3450_v38 = vpop.permute.xlu1 %3449  ;;  %v2840_v31 = vadd.f32 %v8976_v51, %v7397_v4  ;;  %v8977_v39 = vld [vmem:[#allocation49_spill] sm:$0xff] }
 0x489   : > { %v3734_v6 = vmax.f32 %v3670_v17, 0.0  ;;  %v3603_v28 = vadd.f32 %v3450_v38, %v2832_v55  ;;  %v3452_v25 = vpop.permute.xlu0 %3451  ;;  %v2841_v54 = vadd.f32 %v8977_v39, %v7399_v40 }
 0x48a   : > { %v3735_v18 = vmax.f32 %v3671_v12, 0.0  ;;  %v3604_v53 = vadd.f32 %v3452_v25, %v2833_v57  ;;  %3873 = vrot.lane.b32.xlu0 %v3783_v58, %s5751_s20  ;;  %v8979_v25 = vld [vmem:[#allocation50_spill] sm:$0xff] }
 0x48b   : > { %v3676_v21 = vadd.f32 %v8916_v46, %v3603_v28 }
 0x48c   : > { %v3782_v52 = vpack.c.bf16 %v3735_v18, %v3734_v6  ;;  %v3677_v10 = vadd.f32 %v8916_v46, %v3604_v53  ;;  %v3446_v32 = vpop.permute.xlu1 %3445  ;;  %v8978_v6 = vld [vmem:[#allocation48_spill] sm:$0xff]  ;;  %v2839_v18 = vadd.f32 %v7413_v63, %v8979_v25 }
 0x48d   : > { %v3740_v5 = vmax.f32 %v3676_v21, 0.0  ;;  %v3601_v42 = vadd.f32 %v3446_v32, %v2830_v13  ;;  %v3448_v37 = vpop.permute.xlu0 %3447  ;;  %v2838_v28 = vadd.f32 %v7410_v61, %v8978_v6 }
 0x48e   : > { %v3741_v48 = vmax.f32 %v3677_v10, 0.0  ;;  %v3602_v36 = vadd.f32 %v3448_v37, %v2831_v41  ;;  %3871 = vrot.lane.b32.xlu1 %v3782_v52, %s5751_s20  ;;  %v8980_v10 = vld [vmem:[#allocation51_spill] sm:$0xff] }
 0x48f   : > { %v3674_v15 = vadd.f32 %v8916_v46, %v3601_v42  ;;  %v2844_v32 = vadd.f32 %v8980_v10, %v7453_v26 }
 0x490   : > { %v3785_v30 = vpack.c.bf16 %v3741_v48, %v3740_v5  ;;  %v3675_v50 = vadd.f32 %v8916_v46, %v3602_v36  ;;  %v3458_v60 = vpop.permute.xlu1 %3457  ;;  %v8981_v5 = vld [vmem:[#allocation53_spill] sm:$0xff] }
 0x491   : > { %v3738_v47 = vmax.f32 %v3674_v15, 0.0  ;;  %v3607_v45 = vadd.f32 %v3458_v60, %v2836_v19  ;;  %v3460_v9 = vpop.permute.xlu0 %3459  ;;  %v2845_v42 = vadd.f32 %v8981_v5, %v7455_v43  ;;  %v8984_v60 = vld [vmem:[#allocation54_spill] sm:$0xff] }
 0x492   : > { %v3739_v27 = vmax.f32 %v3675_v50, 0.0  ;;  %v3608_v16 = vadd.f32 %v3460_v9, %v2837_v7  ;;  %3877 = vrot.lane.b32.xlu0 %v3785_v30, %s5751_s20  ;;  %v8982_v7 = vld [vmem:[#allocation52_spill] sm:$0xff]  ;;  %v8983_v30 = vld [vmem:[#allocation70_spill] sm:$0xff] }
 0x493   : > { %v3680_v20 = vadd.f32 %v8916_v46, %v3607_v45  ;;  %v2842_v50 = vadd.f32 %v8983_v30, %v8982_v7  ;;  %v8997_v7 = vld [vmem:[#allocation92_spill] sm:$0xff] }
 0x494   : > { %v3784_v56 = vpack.c.bf16 %v3739_v27, %v3738_v47  ;;  %v3681_v34 = vadd.f32 %v8916_v46, %v3608_v16  ;;  %v3454_v23 = vpop.permute.xlu1 %3453  ;;  %v8985_v47 = vld [vmem:[#allocation87_spill] sm:$0xff] }
 0x495   : > { %v3744_v35 = vmax.f32 %v3680_v20, 0.0  ;;  %v3605_v14 = vadd.f32 %v3454_v23, %v2834_v8  ;;  %v3456_v49 = vpop.permute.xlu0 %3455  ;;  %v2843_v45 = vadd.f32 %v8985_v47, %v8984_v60 }
 0x496   : > { %v3745_v11 = vmax.f32 %v3681_v34, 0.0  ;;  %v3606_v62 = vadd.f32 %v3456_v49, %v2835_v59  ;;  %3875 = vrot.lane.b32.xlu1 %v3784_v56, %s5751_s20  ;;  %v8986_v59 = vld [vmem:[#allocation88_spill] sm:$0xff] }
 0x497   : > { %v3678_v3 = vadd.f32 %v8916_v46, %v3605_v14  ;;  %v8987_v56 = vld [vmem:[#allocation56_spill] sm:$0xff]  ;;  %v8989_v14 = vld [vmem:[#allocation58_spill] sm:$0xff] }
 0x498   : > { %v3787_v22 = vpack.c.bf16 %v3745_v11, %v3744_v35  ;;  %v3679_v55 = vadd.f32 %v8916_v46, %v3606_v62  ;;  %v3466_v17 = vpop.permute.xlu1 %3465  ;;  %v2848_v34 = vadd.f32 %v8987_v56, %v8986_v59  ;;  %v8988_v35 = vld [vmem:[#allocation89_spill] sm:$0xff] }
 0x499   : > { %v3742_v33 = vmax.f32 %v3678_v3, 0.0  ;;  %v3611_v57 = vadd.f32 %v3466_v17, %v2840_v31  ;;  %v3468_v58 = vpop.permute.xlu0 %3467  ;;  %v2849_v49 = vadd.f32 %v8989_v14, %v8988_v35  ;;  %v8991_v17 = vld [vmem:[#allocation90_spill] sm:$0xff] }
 0x49a   : > { %v3743_v12 = vmax.f32 %v3679_v55, 0.0  ;;  %v3612_v38 = vadd.f32 %v3468_v58, %v2841_v54  ;;  %3881 = vrot.lane.b32.xlu0 %v3787_v22, %s5751_s20  ;;  %v8990_v55 = vld [vmem:[#allocation57_spill] sm:$0xff]  ;;  %v8992_v58 = vld [vmem:[#allocation59_spill] sm:$0xff] }
 0x49b   : > { %v3684_v4 = vadd.f32 %v8916_v46, %v3611_v57 }
 0x49c   : > { %v3786_v40 = vpack.c.bf16 %v3743_v12, %v3742_v33  ;;  %v3685_v53 = vadd.f32 %v8916_v46, %v3612_v38  ;;  %v3462_v44 = vpop.permute.xlu1 %3461  ;;  %v2846_v33 = vadd.f32 %v8991_v17, %v8990_v55  ;;  %v8993_v12 = vld [vmem:[#allocation91_spill] sm:$0xff] }
 0x49d   : > { %v3748_v13 = vmax.f32 %v3684_v4, 0.0  ;;  %v3609_v21 = vadd.f32 %v3462_v44, %v2838_v28  ;;  %v3464_v2 = vpop.permute.xlu0 %3463  ;;  %v2847_v38 = vadd.f32 %v8993_v12, %v8992_v58 }
 0x49e   : > { %v3749_v41 = vmax.f32 %v3685_v53, 0.0  ;;  %v3610_v52 = vadd.f32 %v3464_v2, %v2839_v18  ;;  %3879 = vrot.lane.b32.xlu1 %v3786_v40, %s5751_s20 }
 0x49f   : > { %v3682_v61 = vadd.f32 %v8916_v46, %v3609_v21 }
 0x4a0   : > { %v3789_v63 = vpack.c.bf16 %v3749_v41, %v3748_v13  ;;  %v3683_v37 = vadd.f32 %v8916_v46, %v3610_v52  ;;  %v3474_v48 = vpop.permute.xlu1 %3473 }
 0x4a1   : > { %v3746_v36 = vmax.f32 %v3682_v61, 0.0  ;;  %v3615_v24 = vadd.f32 %v3474_v48, %v2844_v32  ;;  %v3476_v19 = vpop.permute.xlu0 %3475  ;;  %v8995_v48 = vld [vmem:[#allocation93_spill] sm:$0xff] }
 0x4a2   : > { %v3747_v15 = vmax.f32 %v3683_v37, 0.0  ;;  %v3616_v1 = vadd.f32 %v3476_v19, %v2845_v42  ;;  %3885 = vrot.lane.b32.xlu0 %v3789_v63, %s5751_s20  ;;  %v8994_v37 = vld [vmem:[#allocation66_spill] sm:$0xff] }
 0x4a3   : > { %v3688_v26 = vadd.f32 %v8916_v46, %v3615_v24 }
 0x4a4   : > { %v3788_v43 = vpack.c.bf16 %v3747_v15, %v3746_v36  ;;  %v3689_v9 = vadd.f32 %v8916_v46, %v3616_v1  ;;  %v3470_v27 = vpop.permute.xlu1 %3469  ;;  %v2851_v36 = vadd.f32 %v8995_v48, %v8994_v37  ;;  %v8996_v1 = vld [vmem:[#allocation64_spill] sm:$0xff] }
 0x4a5   : > { %v3752_v16 = vmax.f32 %v3688_v26, 0.0  ;;  %v3613_v29 = vadd.f32 %v3470_v27, %v2842_v50  ;;  %v3472_v8 = vpop.permute.xlu0 %3471  ;;  %v2850_v30 = vadd.f32 %v8997_v7, %v8996_v1 }
 0x4a6   : > { %v3753_v20 = vmax.f32 %v3689_v9, 0.0  ;;  %v3614_v0 = vadd.f32 %v3472_v8, %v2843_v45  ;;  %3883 = vrot.lane.b32.xlu1 %v3788_v43, %s5751_s20  ;;  %v8998_v45 = vld [vmem:[#allocation65_spill] sm:$0xff] }
 0x4a7   : > { %v3686_v23 = vadd.f32 %v8916_v46, %v3613_v29 }
 0x4a8   : > { %v3791_v11 = vpack.c.bf16 %v3753_v20, %v3752_v16  ;;  %v3687_v62 = vadd.f32 %v8916_v46, %v3614_v0  ;;  %v3482_v51 = vpop.permute.xlu1 %3481  ;;  %v8999_v0 = vld [vmem:[#allocation62_spill] sm:$0xff] }
 0x4a9   : > { %v3750_v31 = vmax.f32 %v3686_v23, 0.0  ;;  %v3619_v3 = vadd.f32 %v3482_v51, %v2848_v34  ;;  %v3484_v39 = vpop.permute.xlu0 %3483 }
 0x4aa   : > { %v3751_v54 = vmax.f32 %v3687_v62, 0.0  ;;  %v3620_v22 = vadd.f32 %v3484_v39, %v2849_v49  ;;  %3889 = vrot.lane.b32.xlu0 %v3791_v11, %s5751_s20 }
 0x4ab   : > { %v3692_v57 = vadd.f32 %v8916_v46, %v3619_v3 }
 0x4ac   : > { %v3790_v6 = vpack.c.bf16 %v3751_v54, %v3750_v31  ;;  %v3693_v28 = vadd.f32 %v8916_v46, %v3620_v22  ;;  %v3478_v4 = vpop.permute.xlu1 %3477 }
 0x4ad   : > { %v3756_v25 = vmax.f32 %v3692_v57, 0.0  ;;  %v3617_v18 = vadd.f32 %v3478_v4, %v2846_v33  ;;  %v3480_v40 = vpop.permute.xlu0 %3479  ;;  %v9000_v57 = vld [vmem:[#allocation75_spill] sm:$0xff] }
 0x4ae   : > { %v3757_v53 = vmax.f32 %v3693_v28, 0.0  ;;  %v3618_v44 = vadd.f32 %v3480_v40, %v2847_v38  ;;  %3887 = vrot.lane.b32.xlu1 %v3790_v6, %s5751_s20  ;;  %v9001_v28 = vld [vmem:[#allocation72_spill] sm:$0xff] }
 0x4af   : > { %v3690_v13 = vadd.f32 %v8916_v46, %v3617_v18 }
 0x4b0   : > { %v3793_v21 = vpack.c.bf16 %v3757_v53, %v3756_v25  ;;  %v3691_v2 = vadd.f32 %v8916_v46, %v3618_v44  ;;  %v9002_v44 = vld [vmem:[#allocation74_spill] sm:$0xff] }
 0x4b1   : > { %v3754_v41 = vmax.f32 %v3690_v13, 0.0 }
 0x4b2   : > { %v3755_v52 = vmax.f32 %v3691_v2, 0.0  ;;  %3893 = vrot.lane.b32.xlu0 %v3793_v21, %s5751_s20 }
 0x4b4   : > { %v3792_v10 = vpack.c.bf16 %v3755_v52, %v3754_v41 }
 0x4b6   : > { %3891 = vrot.lane.b32.xlu1 %v3792_v10, %s5751_s20 }
 0x4bb   : > { %v3842_v32 = vpop.permute.xlu0 %3841 }
 0x4bf   : > { %v3840_v61 = vpop.permute.xlu1 %3839  ;;  %v2721_v5 = vpop.permute.xlu0 %2720 }
 0x4c0   : > { %5454 = vmatprep.mubr.msk.bf16.mxu0 %vm927_vm1, %v3840_v61  ;;  %v2853_v43 = vadd.f32 %v8998_v45, %v2721_v5  ;;  %v9003_v61 = vld [vmem:[#allocation71_spill] sm:$0xff] }
 0x4c1   : > { %5455 = vmatmul.mubr.msk.bf16.vlgmr.msra.gmra.mrb[92].mxu0 %vm927_vm1, %v3842_v32 }
 0x4c3   : > { %v2719_v42 = vpop.permute.xlu1 %2718 }
 0x4c4   : > { %v3846_v63 = vpop.permute.xlu0 %3845  ;;  %v2852_v59 = vadd.f32 %v8999_v0, %v2719_v42 }
 0x4c8   : > { %v3844_v24 = vpop.permute.xlu1 %3843  ;;  %v3488_v19 = vpop.permute.xlu0 %3487 }
 0x4c9   : > { %v3622_v15 = vadd.f32 %v3488_v19, %v2851_v36  ;;  %5458 = vmatprep.mubr.msk.bf16.mxu0 %vm927_vm1, %v3844_v24 }
 0x4ca   : > { %5459 = vmatmul.mubr.msk.bf16.gmra.mrb[96].mxu0 %vm927_vm1, %v3846_v63 }
 0x4cb   : > { %v3695_v60 = vadd.f32 %v8916_v46, %v3622_v15 }
 0x4cc   : > { %v3486_v50 = vpop.permute.xlu1 %3485  ;;  %v3850_v26 = vpop.permute.xlu0 %3849 }
 0x4cd   : > { %v3621_v47 = vadd.f32 %v3486_v50, %v2850_v30  ;;  %v3759_v29 = vmax.f32 %v3695_v60, 0.0 }
 0x4cf   : > { %v3694_v9 = vadd.f32 %v8916_v46, %v3621_v47 }
 0x4d0   : > { %v3848_v27 = vpop.permute.xlu1 %3847  ;;  %v3492_v16 = vpop.permute.xlu0 %3491 }
 0x4d1   : > { %v3758_v8 = vmax.f32 %v3694_v9, 0.0  ;;  %v3624_v20 = vadd.f32 %v3492_v16, %v2853_v43  ;;  %5462 = vmatprep.mubr.msk.bf16.mxu0 %vm927_vm1, %v3848_v27 }
 0x4d2   : > { %5463 = vmatmul.mubr.msk.bf16.gmra.mrb[100].mxu0 %vm927_vm1, %v3850_v26 }
 0x4d3   : > { %v3794_v56 = vpack.c.bf16 %v3759_v29, %v3758_v8  ;;  %v3697_v35 = vadd.f32 %v8916_v46, %v3624_v20 }
 0x4d4   : > { %v3490_v34 = vpop.permute.xlu1 %3489  ;;  %v3854_v23 = vpop.permute.xlu0 %3853 }
 0x4d5   : > { %v3623_v14 = vadd.f32 %v3490_v34, %v2852_v59  ;;  %3895 = vrot.lane.b32.xlu1 %v3794_v56, %s5751_s20  ;;  %v3761_v51 = vmax.f32 %v3697_v35, 0.0  ;;  %v7893_v56 = vld [vmem:[%s8712_s6] ss:$0 sm:$0xff] }
 0x4d7   : > { %v3696_v49 = vadd.f32 %v8916_v46, %v3623_v14 }
 0x4d8   : > { %v3852_v11 = vpop.permute.xlu1 %3851  ;;  %v2725_v62 = vpop.permute.xlu0 %2724 }
 0x4d9   : > { %v3760_v31 = vmax.f32 %v3696_v49, 0.0  ;;  %5466 = vmatprep.mubr.msk.bf16.mxu0 %vm927_vm1, %v3852_v11  ;;  %v2855_v58 = vadd.f32 %v2725_v62, %v9000_v57 }
 0x4da   : > { %5467 = vmatmul.mubr.msk.bf16.gmra.mrb[104].mxu0 %vm927_vm1, %v3854_v23 }
 0x4db   : > { %v3795_v3 = vpack.c.bf16 %v3761_v51, %v3760_v31 }
 0x4dc   : > { %v2723_v39 = vpop.permute.xlu1 %2722  ;;  %v3858_v54 = vpop.permute.xlu0 %3857 }
 0x4dd   : > { %3897 = vrot.lane.b32.xlu0 %v3795_v3, %s5751_s20  ;;  %v2854_v4 = vadd.f32 %v2723_v39, %v9001_v28 }
 0x4e0   : > { %v3856_v22 = vpop.permute.xlu1 %3855  ;;  %v2729_v55 = vpop.permute.xlu0 %2728 }
 0x4e1   : > { %5470 = vmatprep.mubr.msk.bf16.mxu0 %vm927_vm1, %v3856_v22  ;;  %v2857_v13 = vadd.f32 %v9002_v44, %v2729_v55 }
 0x4e2   : > { %5471 = vmatmul.mubr.msk.bf16.gmra.mrb[108].mxu0 %vm927_vm1, %v3858_v54 }
 0x4e4   : > { %v2727_v17 = vpop.permute.xlu1 %2726  ;;  %v3862_v33 = vpop.permute.xlu0 %3861 }
 0x4e5   : > { %v2856_v5 = vadd.f32 %v9003_v61, %v2727_v17 }
 0x4e8   : > { %v3860_v12 = vpop.permute.xlu1 %3859  ;;  %v3496_v38 = vpop.permute.xlu0 %3495 }
 0x4e9   : > { %v3626_v6 = vadd.f32 %v3496_v38, %v2855_v58  ;;  %5474 = vmatprep.mubr.msk.bf16.mxu0 %vm927_vm1, %v3860_v12 }
 0x4ea   : > { %5475 = vmatmul.mubr.msk.bf16.gmra.mrb[112].mxu0 %vm927_vm1, %v3862_v33 }
 0x4eb   : > { %v3699_v40 = vadd.f32 %v8916_v46, %v3626_v6 }
 0x4ec   : > { %v3494_v25 = vpop.permute.xlu1 %3493  ;;  %v3866_v18 = vpop.permute.xlu0 %3865 }
 0x4ed   : > { %v3625_v53 = vadd.f32 %v3494_v25, %v2854_v4  ;;  %v3763_v52 = vmax.f32 %v3699_v40, 0.0 }
 0x4ef   : > { %v3698_v21 = vadd.f32 %v8916_v46, %v3625_v53 }
 0x4f0   : > { %v3864_v2 = vpop.permute.xlu1 %3863  ;;  %v3500_v41 = vpop.permute.xlu0 %3499 }
 0x4f1   : > { %v3762_v10 = vmax.f32 %v3698_v21, 0.0  ;;  %v3628_v32 = vadd.f32 %v3500_v41, %v2857_v13  ;;  %5478 = vmatprep.mubr.msk.bf16.mxu0 %vm927_vm1, %v3864_v2 }
 0x4f2   : > { %5479 = vmatmul.mubr.msk.bf16.gmra.mrb[116].mxu0 %vm927_vm1, %v3866_v18 }
 0x4f3   : > { %v3796_v42 = vpack.c.bf16 %v3763_v52, %v3762_v10  ;;  %v3701_v37 = vadd.f32 %v8916_v46, %v3628_v32 }
 0x4f4   : > { %v3498_v63 = vpop.permute.xlu1 %3497  ;;  %v3870_v1 = vpop.permute.xlu0 %3869 }
 0x4f5   : > { %v3627_v48 = vadd.f32 %v3498_v63, %v2856_v5  ;;  %3899 = vrot.lane.b32.xlu1 %v3796_v42, %s5751_s20  ;;  %v3765_v19 = vmax.f32 %v3701_v37, 0.0 }
 0x4f7   : > { %v3700_v36 = vadd.f32 %v8916_v46, %v3627_v48 }
 0x4f8   : > { %v3868_v24 = vpop.permute.xlu1 %3867 }
 0x4f9   : > { %v3764_v15 = vmax.f32 %v3700_v36, 0.0  ;;  %5482 = vmatprep.mubr.msk.bf16.mxu0 %vm927_vm1, %v3868_v24 }
 0x4fa   : > { %5483 = vmatmul.mubr.msk.bf16.gmra.mrb[120].mxu0 %vm927_vm1, %v3870_v1 }
 0x4fb   : > { %v3797_v7 = vpack.c.bf16 %v3765_v19, %v3764_v15 }
 0x4fc   : > { %v3874_v50 = vpop.permute.xlu0 %3873 }
 0x4fd   : > { %3901 = vrot.lane.b32.xlu0 %v3797_v7, %s5751_s20 }
 0x500   : > { %v3872_v30 = vpop.permute.xlu1 %3871 }
 0x501   : > { %5486 = vmatprep.mubr.msk.bf16.mxu0 %vm927_vm1, %v3872_v30 }
 0x502   : > { %5487 = vmatmul.mubr.msk.bf16.gmra.mrb[124].mxu0 %vm927_vm1, %v3874_v50 }
 0x504   : > { %v3878_v60 = vpop.permute.xlu0 %3877 }
 0x508   : > { %v3876_v26 = vpop.permute.xlu1 %3875 }
 0x509   : > { %5490 = vmatprep.mubr.msk.bf16.mxu0 %vm927_vm1, %v3876_v26 }
 0x50a   : > { %5491 = vmatmul.mubr.msk.bf16.gmra.mrb[128].mxu0 %vm927_vm1, %v3878_v60 }
 0x50c   : > { %v3882_v47 = vpop.permute.xlu0 %3881 }
 0x510   : > { %v3880_v46 = vpop.permute.xlu1 %3879 }
 0x511   : > { %5494 = vmatprep.mubr.msk.bf16.mxu0 %vm927_vm1, %v3880_v46 }
 0x512   : > { %5495 = vmatmul.mubr.msk.bf16.gmra.mrb[132].mxu0 %vm927_vm1, %v3882_v47 }
 0x514   : > { %v3886_v43 = vpop.permute.xlu0 %3885 }
 0x518   : > { %v3884_v45 = vpop.permute.xlu1 %3883 }
 0x519   : > { %5498 = vmatprep.mubr.msk.bf16.mxu0 %vm927_vm1, %v3884_v45 }
 0x51a   : > { %5499 = vmatmul.mubr.msk.bf16.gmra.mrb[136].mxu0 %vm927_vm1, %v3886_v43 }
 0x51c   : > { %v3890_v27 = vpop.permute.xlu0 %3889 }
 0x520   : > { %v3888_v9 = vpop.permute.xlu1 %3887 }
 0x521   : > { %5502 = vmatprep.mubr.msk.bf16.mxu0 %vm927_vm1, %v3888_v9 }
 0x522   : > { %5503 = vmatmul.mubr.msk.bf16.gmra.mrb[140].mxu0 %vm927_vm1, %v3890_v27 }
 0x524   : > { %v3894_v29 = vpop.permute.xlu0 %3893 }
 0x528   : > { %v3892_v16 = vpop.permute.xlu1 %3891 }
 0x529   : > { %5506 = vmatprep.mubr.msk.bf16.mxu0 %vm927_vm1, %v3892_v16 }
 0x52a   : > { %5507 = vmatmul.mubr.msk.bf16.gmra.mrb[144].mxu0 %vm927_vm1, %v3894_v29 }
 0x547   : > { %v3896_v8 = vpop.permute.xlu1 %3895 }
 0x548   : > { %5510 = vmatprep.mubr.msk.bf16.mxu0 %vm927_vm1, %v3896_v8 }
 0x54f   : > { %v3898_v20 = vpop.permute.xlu0 %3897 }
 0x550   : > { %5511 = vmatmul.mubr.msk.bf16.gmra.mrb[148].mxu0 %vm927_vm1, %v3898_v20 }
 0x567   : > { %v3900_v0 = vpop.permute.xlu1 %3899 }
 0x568   : > { %5514 = vmatprep.mubr.msk.bf16.mxu0 %vm927_vm1, %v3900_v0 }
 0x56f   : > { %v3902_v59 = vpop.permute.xlu0 %3901 }
 0x570   : > { %5515 = vmatmul.mubr.msk.bf16.gmra.mrb[152].mxu0 %vm927_vm1, %v3902_v59 }
 0x594   : > { %v5456_v34 = vpop.f32.mrb[92].mxu0 }
 0x595   : > { %v4039_v23 = vpop.f32.mrb[93].mxu0  ;;  %v7899_v11 = vadd.f32 %v5456_v34, %v7893_v56 }
 0x596   : > { %v7896_v35 = vadd.f32 %v7893_v56, %v4039_v23  ;;  %v5457_v14 = vpop.f32.mrb[94].mxu0 }
 0x597   : > { %v4042_v49 = vpop.f32.mrb[95].mxu0  ;;  %v7907_v31 = vadd.f32 %v5457_v14, %v7893_v56  ;;  %v4299_v54 = vsel %vm477_vm0, %v7899_v11, 0.0 }
 0x598   : > { %v7902_v62 = vadd.f32 %v7893_v56, %v4042_v49  ;;  %v4296_v51 = vsel %vm477_vm0, %v7896_v35, 0.0 }
 0x599   : > { %v4301_v17 = vsel %vm477_vm0, %v7907_v31, 0.0 }
 0x59a   : > { %v4297_v3 = vsel %vm477_vm0, %v7902_v62, 0.0 }
 0x59b   : > { %v4298_v39 = vadd.f32 %v4297_v3, %v4296_v51 }
 0x59d   : > { %v4300_v22 = vadd.f32 %v4299_v54, %v4298_v39  ;;  %v5460_v55 = vpop.f32.mrb[96].mxu0 }
 0x59e   : > { %v4055_v33 = vpop.f32.mrb[97].mxu0  ;;  %v7919_v6 = vadd.f32 %v5460_v55, %v7893_v56 }
 0x59f   : > { %v7916_v57 = vadd.f32 %v7893_v56, %v4055_v33  ;;  %v4302_v58 = vadd.f32 %v4301_v17, %v4300_v22  ;;  %v5461_v12 = vpop.f32.mrb[98].mxu0 }
 0x5a0   : > { %v4058_v38 = vpop.f32.mrb[99].mxu0  ;;  %v7927_v18 = vadd.f32 %v5461_v12, %v7893_v56  ;;  %v4307_v44 = vsel %vm477_vm0, %v7919_v6, 0.0 }
 0x5a1   : > { %v4303_v28 = vsel %vm477_vm0, %v7916_v57, 0.0  ;;  %v7924_v4 = vadd.f32 %v7893_v56, %v4058_v38 }
 0x5a2   : > { %v4304_v25 = vadd.f32 %v4303_v28, %v4302_v58  ;;  %v4309_v41 = vsel %vm477_vm0, %v7927_v18, 0.0 }
 0x5a3   : > { %v4305_v40 = vsel %vm477_vm0, %v7924_v4, 0.0 }
 0x5a4   : > { %v4306_v53 = vadd.f32 %v4305_v40, %v4304_v25 }
 0x5a5   : > { %v5464_v13 = vpop.f32.mrb[100].mxu0 }
 0x5a6   : > { %v4308_v21 = vadd.f32 %v4307_v44, %v4306_v53  ;;  %v4071_v2 = vpop.f32.mrb[101].mxu0  ;;  %v7939_v5 = vadd.f32 %v5464_v13, %v7893_v56 }
 0x5a7   : > { %v7936_v52 = vadd.f32 %v7893_v56, %v4071_v2  ;;  %v5465_v10 = vpop.f32.mrb[102].mxu0 }
 0x5a8   : > { %v4310_v32 = vadd.f32 %v4309_v41, %v4308_v21  ;;  %v4074_v61 = vpop.f32.mrb[103].mxu0  ;;  %v7947_v48 = vadd.f32 %v5465_v10, %v7893_v56  ;;  %v4315_v19 = vsel %vm477_vm0, %v7939_v5, 0.0 }
 0x5a9   : > { %v4311_v42 = vsel %vm477_vm0, %v7936_v52, 0.0  ;;  %v7944_v63 = vadd.f32 %v7893_v56, %v4074_v61 }
 0x5aa   : > { %v4312_v37 = vadd.f32 %v4311_v42, %v4310_v32  ;;  %v4317_v30 = vsel %vm477_vm0, %v7947_v48, 0.0 }
 0x5ab   : > { %v4313_v36 = vsel %vm477_vm0, %v7944_v63, 0.0 }
 0x5ac   : > { %v4314_v24 = vadd.f32 %v4313_v36, %v4312_v37 }
 0x5ad   : > { %v5468_v15 = vpop.f32.mrb[104].mxu0 }
 0x5ae   : > { %v4316_v1 = vadd.f32 %v4315_v19, %v4314_v24  ;;  %v4087_v7 = vpop.f32.mrb[105].mxu0  ;;  %v7959_v47 = vadd.f32 %v5468_v15, %v7893_v56 }
 0x5af   : > { %v7956_v50 = vadd.f32 %v7893_v56, %v4087_v7  ;;  %v5469_v26 = vpop.f32.mrb[106].mxu0 }
 0x5b0   : > { %v4318_v60 = vadd.f32 %v4317_v30, %v4316_v1  ;;  %v4090_v46 = vpop.f32.mrb[107].mxu0  ;;  %v7967_v27 = vadd.f32 %v5469_v26, %v7893_v56  ;;  %v4323_v8 = vsel %vm477_vm0, %v7959_v47, 0.0 }
 0x5b1   : > { %v4319_v45 = vsel %vm477_vm0, %v7956_v50, 0.0  ;;  %v7964_v43 = vadd.f32 %v7893_v56, %v4090_v46 }
 0x5b2   : > { %v4320_v9 = vadd.f32 %v4319_v45, %v4318_v60  ;;  %v4325_v34 = vsel %vm477_vm0, %v7967_v27, 0.0 }
 0x5b3   : > { %v4321_v16 = vsel %vm477_vm0, %v7964_v43, 0.0 }
 0x5b4   : > { %v4322_v29 = vadd.f32 %v4321_v16, %v4320_v9 }
 0x5b5   : > { %v5472_v20 = vpop.f32.mrb[108].mxu0 }
 0x5b6   : > { %v4324_v0 = vadd.f32 %v4323_v8, %v4322_v29  ;;  %v4103_v59 = vpop.f32.mrb[109].mxu0  ;;  %v7979_v3 = vadd.f32 %v5472_v20, %v7893_v56 }
 0x5b7   : > { %v7976_v23 = vadd.f32 %v7893_v56, %v4103_v59  ;;  %v5473_v14 = vpop.f32.mrb[110].mxu0 }
 0x5b8   : > { %v4326_v49 = vadd.f32 %v4325_v34, %v4324_v0  ;;  %v4106_v51 = vpop.f32.mrb[111].mxu0  ;;  %v7987_v55 = vadd.f32 %v5473_v14, %v7893_v56  ;;  %v4331_v58 = vsel %vm477_vm0, %v7979_v3, 0.0 }
 0x5b9   : > { %v4327_v39 = vsel %vm477_vm0, %v7976_v23, 0.0  ;;  %v7984_v54 = vadd.f32 %v7893_v56, %v4106_v51 }
 0x5ba   : > { %v4328_v22 = vadd.f32 %v4327_v39, %v4326_v49  ;;  %v4333_v25 = vsel %vm477_vm0, %v7987_v55, 0.0 }
 0x5bb   : > { %v4329_v17 = vsel %vm477_vm0, %v7984_v54, 0.0 }
 0x5bc   : > { %v4330_v33 = vadd.f32 %v4329_v17, %v4328_v22 }
 0x5bd   : > { %v5476_v12 = vpop.f32.mrb[112].mxu0 }
 0x5be   : > { %v4332_v38 = vadd.f32 %v4331_v58, %v4330_v33  ;;  %v4119_v28 = vpop.f32.mrb[113].mxu0  ;;  %v7999_v21 = vadd.f32 %v5476_v12, %v7893_v56 }
 0x5bf   : > { %v7996_v40 = vadd.f32 %v7893_v56, %v4119_v28  ;;  %v5477_v53 = vpop.f32.mrb[114].mxu0 }
 0x5c0   : > { %v4334_v44 = vadd.f32 %v4333_v25, %v4332_v38  ;;  %v4122_v13 = vpop.f32.mrb[115].mxu0  ;;  %v8007_v32 = vadd.f32 %v5477_v53, %v7893_v56  ;;  %v4339_v37 = vsel %vm477_vm0, %v7999_v21, 0.0 }
 0x5c1   : > { %v4335_v2 = vsel %vm477_vm0, %v7996_v40, 0.0  ;;  %v8004_v41 = vadd.f32 %v7893_v56, %v4122_v13 }
 0x5c2   : > { %v4336_v10 = vadd.f32 %v4335_v2, %v4334_v44  ;;  %v4341_v15 = vsel %vm477_vm0, %v8007_v32, 0.0 }
 0x5c3   : > { %v4337_v61 = vsel %vm477_vm0, %v8004_v41, 0.0 }
 0x5c4   : > { %v4338_v42 = vadd.f32 %v4337_v61, %v4336_v10 }
 0x5c5   : > { %v5480_v36 = vpop.f32.mrb[116].mxu0 }
 0x5c6   : > { %v4340_v24 = vadd.f32 %v4339_v37, %v4338_v42  ;;  %v4135_v19 = vpop.f32.mrb[117].mxu0  ;;  %v8019_v60 = vadd.f32 %v5480_v36, %v7893_v56 }
 0x5c7   : > { %v8016_v1 = vadd.f32 %v7893_v56, %v4135_v19  ;;  %v5481_v7 = vpop.f32.mrb[118].mxu0 }
 0x5c8   : > { %v4342_v30 = vadd.f32 %v4341_v15, %v4340_v24  ;;  %v4138_v26 = vpop.f32.mrb[119].mxu0  ;;  %v8027_v16 = vadd.f32 %v5481_v7, %v7893_v56  ;;  %v4347_v20 = vsel %vm477_vm0, %v8019_v60, 0.0 }
 0x5c9   : > { %v4343_v46 = vsel %vm477_vm0, %v8016_v1, 0.0  ;;  %v8024_v45 = vadd.f32 %v7893_v56, %v4138_v26 }
 0x5ca   : > { %v4344_v9 = vadd.f32 %v4343_v46, %v4342_v30  ;;  %v4349_v14 = vsel %vm477_vm0, %v8027_v16, 0.0 }
 0x5cb   : > { %v4345_v29 = vsel %vm477_vm0, %v8024_v45, 0.0 }
 0x5cc   : > { %v4346_v8 = vadd.f32 %v4345_v29, %v4344_v9 }
 0x5cd   : > { %v5484_v0 = vpop.f32.mrb[120].mxu0 }
 0x5ce   : > { %v4348_v59 = vadd.f32 %v4347_v20, %v4346_v8  ;;  %v4151_v34 = vpop.f32.mrb[121].mxu0  ;;  %v8039_v17 = vadd.f32 %v5484_v0, %v7893_v56 }
 0x5cf   : > { %v8036_v49 = vadd.f32 %v7893_v56, %v4151_v34  ;;  %v5485_v51 = vpop.f32.mrb[122].mxu0 }
 0x5d0   : > { %v4350_v39 = vadd.f32 %v4349_v14, %v4348_v59  ;;  %v4154_v22 = vpop.f32.mrb[123].mxu0  ;;  %v8047_v38 = vadd.f32 %v5485_v51, %v7893_v56  ;;  %v4355_v53 = vsel %vm477_vm0, %v8039_v17, 0.0 }
 0x5d1   : > { %v4351_v33 = vsel %vm477_vm0, %v8036_v49, 0.0  ;;  %v8044_v58 = vadd.f32 %v7893_v56, %v4154_v22 }
 0x5d2   : > { %v4352_v12 = vadd.f32 %v4351_v33, %v4350_v39  ;;  %v4357_v10 = vsel %vm477_vm0, %v8047_v38, 0.0 }
 0x5d3   : > { %v4353_v28 = vsel %vm477_vm0, %v8044_v58, 0.0 }
 0x5d4   : > { %v4354_v25 = vadd.f32 %v4353_v28, %v4352_v12  ;;  %v8079_v28 = vld [vmem:[%s8713_s7] sm:$0xf] }
 0x5d5   : > { %v5488_v44 = vpop.f32.mrb[124].mxu0 }
 0x5d6   : > { %v4356_v13 = vadd.f32 %v4355_v53, %v4354_v25  ;;  %v4167_v2 = vpop.f32.mrb[125].mxu0  ;;  %v8064_v9 = vadd.f32 %v5488_v44, %v7893_v56 }
 0x5d7   : > { %v5489_v61 = vpop.f32.mrb[126].mxu0  ;;  %v8059_v19 = vadd.f32 %v7893_v56, %v4167_v2 }
 0x5d8   : > { %v4358_v42 = vadd.f32 %v4357_v10, %v4356_v13  ;;  %v4170_v37 = vpop.f32.mrb[127].mxu0  ;;  %v4517_v14 = vsel %vm477_vm0, %v8064_v9, 0.0  ;;  %v8071_v51 = vadd.f32 %v5489_v61, %v7893_v56 }
 0x5d9   : > { %v8056_v36 = vadd.f32 %v7893_v56, %v4170_v37  ;;  %v4514_v29 = vsel %vm477_vm0, %v8059_v19, 0.0 }
 0x5da   : > { %v4359_v24 = vrot.slane %v4358_v42, 4  ;;  %v4519_v44 = vsel %vm477_vm0, %v8071_v51, 0.0 }
 0x5db   : > { %v4515_v7 = vsel %vm477_vm0, %v8056_v36, 0.0 }
 0x5dc   : > { %v4360_v15 = vadd.f32 %v4359_v24, %v4358_v42  ;;  %v4516_v20 = vadd.f32 %v4515_v7, %v4514_v29 }
 0x5dd   : > { %v5492_v30 = vpop.f32.mrb[128].mxu0 }
 0x5de   : > { %v4183_v26 = vpop.f32.mrb[129].mxu0  ;;  %v4361_v46 = vrot.slane %v4360_v15, 2  ;;  %v4518_v39 = vadd.f32 %v4517_v14, %v4516_v20  ;;  %v8093_v29 = vadd.f32 %v5492_v30, %v7893_v56 }
 0x5df   : > { %v5493_v8 = vpop.f32.mrb[130].mxu0  ;;  %v8074_v33 = vadd.f32 %v7893_v56, %v4183_v26 }
 0x5e0   : > { %v4186_v0 = vpop.f32.mrb[131].mxu0  ;;  %v4362_v59 = vadd.f32 %v4361_v46, %v4360_v15  ;;  %v4520_v2 = vadd.f32 %v4519_v44, %v4518_v39  ;;  %9005 = vst [vmem:[#allocation5_spill] sm:$0xff] %v8093_v29  ;;  %v4525_v14 = vsel %vm477_vm0, %v8093_v29, 0.0 }
 0x5e1   : > { %v4521_v42 = vsel %vm477_vm0, %v8074_v33, 0.0  ;;  %v8087_v37 = vadd.f32 %v7893_v56, %v4186_v0  ;;  %v8098_v0 = vadd.f32 %v5493_v8, %v7893_v56 }
 0x5e2   : > { %v4363_v34 = vrot.slane %v4362_v59, 1  ;;  %v4522_v15 = vadd.f32 %v4521_v42, %v4520_v2 }
 0x5e3   : > { %9004 = vst [vmem:[#allocation3_spill] sm:$0xff] %v8087_v37  ;;  %v4523_v7 = vsel %vm477_vm0, %v8087_v37, 0.0  ;;  %9006 = vst [vmem:[#allocation4_spill] sm:$0xff] %v8098_v0  ;;  %v4527_v2 = vsel %vm477_vm0, %v8098_v0, 0.0 }
 0x5e4   : > { %v4364_v22 = vadd.f32 %v4363_v34, %v4362_v59  ;;  %v4524_v59 = vadd.f32 %v4523_v7, %v4522_v15 }
 0x5e5   : > { %v5496_v12 = vpop.f32.mrb[132].mxu0 }
 0x5e6   : > { %v4199_v25 = vpop.f32.mrb[133].mxu0  ;;  %v4365_v53 = vmul.f32 0.00390625, %v4364_v22  ;;  %v4526_v39 = vadd.f32 %v4525_v14, %v4524_v59  ;;  %v8113_v14 = vadd.f32 %v5496_v12, %v7893_v56 }
 0x5e7   : > { %v5497_v13 = vpop.f32.mrb[134].mxu0  ;;  %v8101_v22 = vadd.f32 %v7893_v56, %v4199_v25 }
 0x5e8   : > { %v4202_v10 = vpop.f32.mrb[135].mxu0  ;;  %v4366_v61 = vmul.f32 %v4365_v53, %v8079_v28  ;;  %9008 = vst [vmem:[#allocation6_spill] sm:$0xff] %v8113_v14 }
 0x5e9   : > { %v8108_v15 = vadd.f32 %v7893_v56, %v4202_v10 }
 0x5ea   : > { %v4368_v24 = vsel %vm4367_vm6, %v4366_v61, 0.0  ;;  %v4528_v61 = vadd.f32 %v4527_v2, %v4526_v39  ;;  %v4533_v39 = vsel %vm477_vm0, %v8113_v14, 0.0  ;;  %v8118_v2 = vadd.f32 %v5497_v13, %v7893_v56 }
 0x5eb   : > { %4369 = vadd.xlane.f32.xlu1 %v4368_v24  ;;  %v4529_v24 = vsel %vm477_vm0, %v8101_v22, 0.0  ;;  %9007 = vst [vmem:[#allocation63_spill] sm:$0xff] %v8108_v15  ;;  %v4531_v7 = vsel %vm477_vm0, %v8108_v15, 0.0 }
 0x5ec   : > { %v4530_v8 = vadd.f32 %v4529_v24, %v4528_v61  ;;  %v4535_v24 = vsel %vm477_vm0, %v8118_v2, 0.0 }
 0x5ed   : > { %v5500_v26 = vpop.f32.mrb[136].mxu0 }
 0x5ee   : > { %v4215_v46 = vpop.f32.mrb[137].mxu0  ;;  %v4532_v0 = vadd.f32 %v4531_v7, %v4530_v8  ;;  %v8133_v13 = vadd.f32 %v5500_v26, %v7893_v56 }
 0x5ef   : > { %v5501_v20 = vpop.f32.mrb[138].mxu0  ;;  %v8121_v61 = vadd.f32 %v7893_v56, %v4215_v46 }
 0x5f0   : > { %v4218_v34 = vpop.f32.mrb[139].mxu0  ;;  %v4534_v10 = vadd.f32 %v4533_v39, %v4532_v0  ;;  %v4541_v46 = vsel %vm477_vm0, %v8133_v13, 0.0  ;;  %v8138_v39 = vadd.f32 %v5501_v20, %v7893_v56 }
 0x5f1   : > { %v4537_v12 = vsel %vm477_vm0, %v8121_v61, 0.0  ;;  %v8128_v8 = vadd.f32 %v7893_v56, %v4218_v34 }
 0x5f2   : > { %v4536_v15 = vadd.f32 %v4535_v24, %v4534_v10  ;;  %v4543_v34 = vsel %vm477_vm0, %v8138_v39, 0.0 }
 0x5f3   : > { %v4539_v14 = vsel %vm477_vm0, %v8128_v8, 0.0 }
 0x5f4   : > { %v4538_v7 = vadd.f32 %v4537_v12, %v4536_v15 }
 0x5f5   : > { %v5504_v53 = vpop.f32.mrb[140].mxu0 }
 0x5f6   : > { %v4231_v44 = vpop.f32.mrb[141].mxu0  ;;  %v4540_v0 = vadd.f32 %v4539_v14, %v4538_v7  ;;  %v8153_v20 = vadd.f32 %v5504_v53, %v7893_v56 }
 0x5f7   : > { %v5505_v30 = vpop.f32.mrb[142].mxu0  ;;  %v8141_v24 = vadd.f32 %v7893_v56, %v4231_v44 }
 0x5f8   : > { %v4234_v42 = vpop.f32.mrb[143].mxu0  ;;  %v4542_v10 = vadd.f32 %v4541_v46, %v4540_v0  ;;  %9011 = vst [vmem:[#allocation8_spill] sm:$0xff] %v8153_v20  ;;  %v4549_v44 = vsel %vm477_vm0, %v8153_v20, 0.0  ;;  %v8158_v46 = vadd.f32 %v5505_v30, %v7893_v56 }
 0x5f9   : > { %9009 = vst [vmem:[#allocation7_spill] sm:$0xff] %v8141_v24  ;;  %v4545_v12 = vsel %vm477_vm0, %v8141_v24, 0.0  ;;  %v8148_v26 = vadd.f32 %v7893_v56, %v4234_v42 }
 0x5fa   : > { %v4544_v15 = vadd.f32 %v4543_v34, %v4542_v10  ;;  %9012 = vst [vmem:[#allocation10_spill] sm:$0xff] %v8158_v46 }
 0x5fb   : > { %9010 = vst [vmem:[#allocation9_spill] sm:$0xff] %v8148_v26  ;;  %v4547_v7 = vsel %vm477_vm0, %v8148_v26, 0.0  ;;  %v4551_v26 = vsel %vm477_vm0, %v8158_v46, 0.0 }
 0x5fc   : > { %v4546_v14 = vadd.f32 %v4545_v12, %v4544_v15 }
 0x5fd   : > { %v5508_v25 = vpop.f32.mrb[144].mxu0 }
 0x5fe   : > { %v4247_v59 = vpop.f32.mrb[145].mxu0  ;;  %v4548_v0 = vadd.f32 %v4547_v7, %v4546_v14 }
 0x5ff   : > { %v5509_v29 = vpop.f32.mrb[146].mxu0  ;;  %v8161_v42 = vadd.f32 %v7893_v56, %v4247_v59 }
 0x600   : > { %v4250_v37 = vpop.f32.mrb[147].mxu0  ;;  %v4550_v34 = vadd.f32 %v4549_v44, %v4548_v0  ;;  %v8173_v44 = vadd.f32 %v5508_v25, %v7893_v56  ;;  %v8178_v46 = vadd.f32 %v5509_v29, %v7893_v56 }
 0x601   : > { %v4553_v14 = vsel %vm477_vm0, %v8161_v42, 0.0  ;;  %v8168_v7 = vadd.f32 %v7893_v56, %v4250_v37 }
 0x602   : > { %v4552_v53 = vadd.f32 %v4551_v26, %v4550_v34  ;;  %9013 = vst [vmem:[#allocation68_spill] sm:$0xff] %v8173_v44  ;;  %v4557_v20 = vsel %vm477_vm0, %v8173_v44, 0.0  ;;  %9014 = vst [vmem:[#allocation11_spill] sm:$0xff] %v8178_v46  ;;  %v4559_v37 = vsel %vm477_vm0, %v8178_v46, 0.0 }
 0x603   : > { %v4555_v0 = vsel %vm477_vm0, %v8168_v7, 0.0 }
 0x604   : > { %v4554_v30 = vadd.f32 %v4553_v14, %v4552_v53 }
 0x606   : > { %v4556_v59 = vadd.f32 %v4555_v0, %v4554_v30 }
 0x608   : > { %v4558_v34 = vadd.f32 %v4557_v20, %v4556_v59 }
 0x60a   : > { %v4560_v14 = vadd.f32 %v4559_v37, %v4558_v34 }
 0x623   : > { %v5512_v10 = vpop.f32.mrb[148].mxu0 }
 0x624   : > { %v4263_v24 = vpop.f32.mrb[149].mxu0  ;;  %v8193_v29 = vadd.f32 %v5512_v10, %v7893_v56 }
 0x625   : > { %v5513_v15 = vpop.f32.mrb[150].mxu0  ;;  %v8181_v26 = vadd.f32 %v7893_v56, %v4263_v24 }
 0x626   : > { %v4266_v12 = vpop.f32.mrb[151].mxu0  ;;  %9017 = vst [vmem:[#allocation12_spill] sm:$0xff] %v8193_v29  ;;  %v4565_v20 = vsel %vm477_vm0, %v8193_v29, 0.0  ;;  %v8198_v59 = vadd.f32 %v5513_v15, %v7893_v56 }
 0x627   : > { %9015 = vst [vmem:[#allocation13_spill] sm:$0xff] %v8181_v26  ;;  %v4561_v53 = vsel %vm477_vm0, %v8181_v26, 0.0  ;;  %v8188_v25 = vadd.f32 %v7893_v56, %v4266_v12 }
 0x628   : > { %v4562_v30 = vadd.f32 %v4561_v53, %v4560_v14  ;;  %9018 = vst [vmem:[#allocation14_spill] sm:$0xff] %v8198_v59  ;;  %v4567_v12 = vsel %vm477_vm0, %v8198_v59, 0.0 }
 0x629   : > { %9016 = vst [vmem:[#allocation69_spill] sm:$0xff] %v8188_v25  ;;  %v4563_v0 = vsel %vm477_vm0, %v8188_v25, 0.0 }
 0x62a   : > { %v4564_v24 = vadd.f32 %v4563_v0, %v4562_v30 }
 0x62c   : > { %v4566_v46 = vadd.f32 %v4565_v20, %v4564_v24 }
 0x62e   : > { %v4568_v53 = vadd.f32 %v4567_v12, %v4566_v46 }
 0x643   : > { %v5516_v26 = vpop.f32.mrb[152].mxu0 }
 0x644   : > { %v4279_v44 = vpop.f32.mrb[153].mxu0  ;;  %v8206_v14 = vadd.f32 %v5516_v26, %v7893_v56 }
 0x645   : > { %v8203_v34 = vadd.f32 %v7893_v56, %v4279_v44  ;;  %v5517_v37 = vpop.f32.mrb[154].mxu0 }
 0x646   : > { %v4282_v10 = vpop.f32.mrb[155].mxu0  ;;  %v8214_v24 = vadd.f32 %v5517_v37, %v7893_v56  ;;  %v4573_v46 = vsel %vm477_vm0, %v8206_v14, 0.0 }
 0x647   : > { %9019 = vst [vmem:[#allocation15_spill] sm:$0xff] %v8203_v34  ;;  %v4569_v30 = vsel %vm477_vm0, %v8203_v34, 0.0  ;;  %v8211_v15 = vadd.f32 %v7893_v56, %v4282_v10 }
 0x648   : > { %v4570_v0 = vadd.f32 %v4569_v30, %v4568_v53  ;;  %v4575_v26 = vsel %vm477_vm0, %v8214_v24, 0.0 }
 0x649   : > { %9020 = vst [vmem:[#allocation17_spill] sm:$0xff] %v8211_v15  ;;  %v4571_v44 = vsel %vm477_vm0, %v8211_v15, 0.0 }
 0x64a   : > { %v4572_v20 = vadd.f32 %v4571_v44, %v4570_v0  ;;  %v8227_v0 = vld [vmem:[%s8714_s8] sm:$0xf] }
 0x64c   : > { %v4574_v12 = vadd.f32 %v4573_v46, %v4572_v20 }
 0x64e   : > { %v4576_v59 = vadd.f32 %v4575_v26, %v4574_v12 }
 0x650   : > { %v4577_v34 = vrot.slane %v4576_v59, 4 }
 0x652   : > { %v4578_v29 = vadd.f32 %v4577_v34, %v4576_v59 }
 0x654   : > { %v4579_v10 = vrot.slane %v4578_v29, 2 }
 0x656   : > { %v4580_v25 = vadd.f32 %v4579_v10, %v4578_v29 }
 0x658   : > { %v4581_v53 = vrot.slane %v4580_v25, 1 }
 0x65a   : > { %v4582_v30 = vadd.f32 %v4581_v53, %v4580_v25 }
 0x65c   : > { %v4583_v56 = vmul.f32 0.00390625, %v4582_v30 }
 0x65e   : > { %v4584_v37 = vmul.f32 %v4583_v56, %v8079_v28 }
 0x660   : > { %v4585_v15 = vsel %vm4367_vm6, %v4584_v37, 0.0 }
 0x661   : > { %4586 = vadd.xlane.f32.xlu0 %v4585_v15 }
 0x678   : > { %v4370_v44 = vpop.xlane.xlu1 %4369 }
 0x679   : > { %v4371_v20 = vmax.f32 %v4370_v44, 0.0 }
 0x67b   : > { %v4372_v46 = vmul.f32 %v4371_v20, %v8227_v0 }
 0x67d   : > { %v4373_v59 = vsel %vm4367_vm6, %v4372_v46, 0.0 }
 0x67e   : > { %v4374_v29 = vrot.slane %v4373_v59, 4 }
 0x680   : > { %v4375_v34 = vadd.f32 %v4374_v29, %v4373_v59 }
 0x682   : > { %v4376_v25 = vrot.slane %v4375_v34, 2 }
 0x684   : > { %v4377_v12 = vadd.f32 %v4376_v25, %v4375_v34 }
 0x686   : > { %v4378_v26 = vrot.slane %v4377_v12, 1 }
 0x688   : > { %v4379_v28 = vadd.f32 %v4378_v26, %v4377_v12  ;;  %v5681_v26 = vld [vmem:[%s5827_s21 + $0x28] sm:$0xff] }
 0x68a   : > { %v4976_v10 = vmul.f32 -1.442695, %v4379_v28 }
 0x68c   : > { %5668 = vpow2.f32 %v4976_v10  ;;  %v5682_v10 = vld [vmem:[%s5827_s21 + $0x30] sm:$0xff] }
 0x696   : > { %v5669_v15 = vpop.eup %5668 }
 0x697   : > { %v4383_v53 = vadd.f32 1.0, %v5669_v15 }
 0x699   : > { %5670 = vrcp.f32 %v4383_v53  ;;  %v5683_v53 = vld [vmem:[%s5827_s21 + $0x38] sm:$0xff] }
 0x6a3   : > { %v5671_v30 = vpop.eup %5670 }
 0x6a4   : > { %v4386_v56 = vmul.f32 %v5671_v30, %v7896_v35  ;;  %v4387_v37 = vmul.f32 %v5671_v30, %v7902_v62  ;;  %v4388_v44 = vmul.f32 %v5671_v30, %v7899_v11  ;;  %v4389_v20 = vmul.f32 %v5671_v30, %v7907_v31 }
 0x6a5   : > { %v4390_v46 = vmul.f32 %v5671_v30, %v7916_v57  ;;  %v4391_v59 = vmul.f32 %v5671_v30, %v7924_v4  ;;  %v4392_v29 = vmul.f32 %v5671_v30, %v7919_v6  ;;  %v4393_v34 = vmul.f32 %v5671_v30, %v7927_v18 }
 0x6a6   : > { %v4394_v25 = vmul.f32 %v5671_v30, %v7936_v52  ;;  %v4395_v12 = vmul.f32 %v5671_v30, %v7944_v63  ;;  %v4396_v35 = vmul.f32 %v5671_v30, %v7939_v5  ;;  %v4397_v62 = vmul.f32 %v5671_v30, %v7947_v48 }
 0x6a7   : > { %v4398_v11 = vmul.f32 %v5671_v30, %v7956_v50  ;;  %v4399_v31 = vmul.f32 %v5671_v30, %v7964_v43  ;;  %v4400_v57 = vmul.f32 %v5671_v30, %v7959_v47  ;;  %v4401_v4 = vmul.f32 %v5671_v30, %v7967_v27 }
 0x6a8   : > { %v4402_v6 = vmul.f32 %v5671_v30, %v7976_v23  ;;  %v4403_v18 = vmul.f32 %v5671_v30, %v7984_v54  ;;  %v4404_v52 = vmul.f32 %v5671_v30, %v7979_v3  ;;  %v4405_v5 = vmul.f32 %v5671_v30, %v7987_v55 }
 0x6a9   : > { %v4406_v63 = vmul.f32 %v5671_v30, %v7996_v40  ;;  %v4407_v48 = vmul.f32 %v5671_v30, %v8004_v41  ;;  %v4408_v50 = vmul.f32 %v5671_v30, %v7999_v21  ;;  %v4409_v47 = vmul.f32 %v5671_v30, %v8007_v32  ;;  %v5676_v41 = vld [vmem:[%s5827_s21] sm:$0xff] }
 0x6aa   : > { %v4410_v43 = vmul.f32 %v5671_v30, %v8016_v1  ;;  %v4411_v27 = vmul.f32 %v5671_v30, %v8024_v45  ;;  %v4412_v23 = vmul.f32 %v5671_v30, %v8019_v60  ;;  %v4413_v3 = vmul.f32 %v5671_v30, %v8027_v16  ;;  %v5677_v1 = vld [vmem:[%s5827_s21 + $0x8] sm:$0xff]  ;;  %v5678_v45 = vld [vmem:[%s5827_s21 + $0x10] sm:$0xff] }
 0x6ab   : > { %v4414_v54 = vmul.f32 %v5671_v30, %v8036_v49  ;;  %v8261_v55 = vmul.f32 %v5671_v30, %v8044_v58  ;;  %v8264_v40 = vmul.f32 %v5671_v30, %v8039_v17  ;;  %v8267_v21 = vmul.f32 %v5671_v30, %v8047_v38  ;;  %v5679_v49 = vld [vmem:[%s5827_s21 + $0x18] sm:$0xff]  ;;  %v5680_v58 = vld [vmem:[%s5827_s21 + $0x20] sm:$0xff] }
 0x6ac   : > { %v8270_v32 = vadd.f32 %v5676_v41, %v4386_v56  ;;  %v8273_v60 = vadd.f32 %v5677_v1, %v4387_v37  ;;  %v8276_v16 = vadd.f32 %v5678_v45, %v4388_v44  ;;  %v8279_v17 = vadd.f32 %v5679_v49, %v4389_v20  ;;  %v5684_v56 = vld [vmem:[%s5827_s21 + $0x40] sm:$0xff]  ;;  %v5685_v44 = vld [vmem:[%s5827_s21 + $0x48] sm:$0xff]  ;;  %v5687_v41 = vld [vmem:[%s5827_s21 + $0x58] sm:$0xff] }
 0x6ad   : > { %v8282_v38 = vadd.f32 %v5680_v58, %v4390_v46  ;;  %v8285_v28 = vadd.f32 %v5681_v26, %v4391_v59  ;;  %v8288_v15 = vadd.f32 %v5682_v10, %v4392_v29  ;;  %v8291_v30 = vadd.f32 %v5683_v53, %v4393_v34  ;;  %v5686_v46 = vld [vmem:[%s5827_s21 + $0x50] sm:$0xff]  ;;  %v5688_v1 = vld [vmem:[%s5827_s21 + $0x60] sm:$0xff]  ;;  %v5689_v45 = vld [vmem:[%s5827_s21 + $0x68] sm:$0xff] }
 0x6ae   : > { %v8294_v37 = vadd.f32 %v5684_v56, %v4394_v25  ;;  %v8297_v20 = vadd.f32 %v5685_v44, %v4395_v12  ;;  %v8300_v59 = vadd.f32 %v5686_v46, %v4396_v35  ;;  %v8303_v29 = vadd.f32 %v5687_v41, %v4397_v62  ;;  %v5690_v49 = vld [vmem:[%s5827_s21 + $0x70] sm:$0xff]  ;;  %v5691_v58 = vld [vmem:[%s5827_s21 + $0x78] sm:$0xff]  ;;  %v5692_v26 = vld [vmem:[%s5827_s21 + $0x80] sm:$0xff] }
 0x6af   : > { %v8306_v34 = vadd.f32 %v5688_v1, %v4398_v11  ;;  %v8309_v25 = vadd.f32 %v5689_v45, %v4399_v31  ;;  %v8312_v12 = vadd.f32 %v5690_v49, %v4400_v57  ;;  %v8315_v35 = vadd.f32 %v5691_v58, %v4401_v4  ;;  %v5693_v10 = vld [vmem:[%s5827_s21 + $0x88] sm:$0xff]  ;;  %v5694_v53 = vld [vmem:[%s5827_s21 + $0x90] sm:$0xff]  ;;  %v5695_v56 = vld [vmem:[%s5827_s21 + $0x98] sm:$0xff] }
 0x6b0   : > { %v8318_v62 = vadd.f32 %v5692_v26, %v4402_v6  ;;  %v8321_v11 = vadd.f32 %v5693_v10, %v4403_v18  ;;  %v8324_v31 = vadd.f32 %v5694_v53, %v4404_v52  ;;  %v8327_v57 = vadd.f32 %v5695_v56, %v4405_v5  ;;  %v5696_v44 = vld [vmem:[%s5827_s21 + $0xa0] sm:$0xff]  ;;  %v5697_v46 = vld [vmem:[%s5827_s21 + $0xa8] sm:$0xff]  ;;  %v5698_v41 = vld [vmem:[%s5827_s21 + $0xb0] sm:$0xff] }
 0x6b1   : > { %v8330_v4 = vadd.f32 %v5696_v44, %v4406_v63  ;;  %v8333_v6 = vadd.f32 %v5697_v46, %v4407_v48  ;;  %v8336_v18 = vadd.f32 %v5698_v41, %v4408_v50  ;;  %v5699_v1 = vld [vmem:[%s5827_s21 + $0xb8] sm:$0xff]  ;;  %v5700_v45 = vld [vmem:[%s5827_s21 + $0xc0] sm:$0xff]  ;;  %v5701_v49 = vld [vmem:[%s5827_s21 + $0xc8] sm:$0xff]  ;;  %v4450_v44 = vmax.f32 %v8270_v32, 0.0 }
 0x6b2   : > { %v8339_v52 = vadd.f32 %v5699_v1, %v4409_v47  ;;  %v8342_v5 = vadd.f32 %v5700_v45, %v4410_v43  ;;  %v8345_v58 = vadd.f32 %v5701_v49, %v4411_v27  ;;  %v5702_v63 = vld [vmem:[%s5827_s21 + $0xd0] sm:$0xff]  ;;  %v5703_v48 = vld [vmem:[%s5827_s21 + $0xd8] sm:$0xff]  ;;  %v5704_v50 = vld [vmem:[%s5827_s21 + $0xe0] sm:$0xff]  ;;  %v4452_v46 = vmax.f32 %v8276_v16, 0.0 }
 0x6b3   : > { %v8348_v26 = vadd.f32 %v5702_v63, %v4412_v23  ;;  %v8351_v10 = vadd.f32 %v5703_v48, %v4413_v3  ;;  %v8361_v47 = vadd.f32 %v5704_v50, %v4414_v54  ;;  %v5705_v43 = vld [vmem:[%s5827_s21 + $0xe8] sm:$0xff]  ;;  %v5706_v27 = vld [vmem:[%s5827_s21 + $0xf0] sm:$0xff]  ;;  %v5707_v3 = vld [vmem:[%s5827_s21 + $0xf8] sm:$0xff]  ;;  %v4451_v54 = vmax.f32 %v8273_v60, 0.0  ;;  %4482 = vst.msk [vmem:[%s8358_s10] sm:$0xff] %vm477_vm0, %v4450_v44 }
 0x6b4   : > { %v8365_v53 = vadd.f32 %v5705_v43, %v8261_v55  ;;  %v8369_v23 = vadd.f32 %v5706_v27, %v8264_v40  ;;  %v8373_v56 = vadd.f32 %v5707_v3, %v8267_v21  ;;  %v4453_v55 = vmax.f32 %v8279_v17, 0.0  ;;  %4484 = vst.msk [vmem:[%s8358_s10 + $0x10] sm:$0xff] %vm477_vm0, %v4452_v46  ;;  %v9021_v46 = vld [vmem:[#allocation3_spill] sm:$0xff] }
 0x6b5   : > { %v4454_v41 = vmax.f32 %v8282_v38, 0.0  ;;  %v4455_v40 = vmax.f32 %v8285_v28, 0.0  ;;  %v4456_v1 = vmax.f32 %v8288_v15, 0.0  ;;  %v4457_v21 = vmax.f32 %v8291_v30, 0.0  ;;  %4483 = vst.msk [vmem:[%s8358_s10 + $0x8] sm:$0xff] %vm477_vm0, %v4451_v54 }
 0x6b6   : > { %v4458_v32 = vmax.f32 %v8294_v37, 0.0  ;;  %v4459_v60 = vmax.f32 %v8297_v20, 0.0  ;;  %v4460_v16 = vmax.f32 %v8300_v59, 0.0  ;;  %v4461_v17 = vmax.f32 %v8303_v29, 0.0  ;;  %4485 = vst.msk [vmem:[%s8358_s10 + $0x18] sm:$0xff] %vm477_vm0, %v4453_v55 }
 0x6b7   : > { %v4462_v38 = vmax.f32 %v8306_v34, 0.0  ;;  %v4463_v28 = vmax.f32 %v8309_v25, 0.0  ;;  %v4464_v15 = vmax.f32 %v8312_v12, 0.0  ;;  %v4465_v30 = vmax.f32 %v8315_v35, 0.0  ;;  %4486 = vst.msk [vmem:[%s8358_s10 + $0x20] sm:$0xff] %vm477_vm0, %v4454_v41  ;;  %4487 = vst.msk [vmem:[%s8358_s10 + $0x28] sm:$0xff] %vm477_vm0, %v4455_v40 }
 0x6b8   : > { %4488 = vst.msk [vmem:[%s8358_s10 + $0x30] sm:$0xff] %vm477_vm0, %v4456_v1  ;;  %4489 = vst.msk [vmem:[%s8358_s10 + $0x38] sm:$0xff] %vm477_vm0, %v4457_v21  ;;  %v4466_v37 = vmax.f32 %v8318_v62, 0.0  ;;  %v4467_v20 = vmax.f32 %v8321_v11, 0.0  ;;  %v4468_v59 = vmax.f32 %v8324_v31, 0.0  ;;  %v4469_v29 = vmax.f32 %v8327_v57, 0.0 }
 0x6b9   : > { %4490 = vst.msk [vmem:[%s8358_s10 + $0x40] sm:$0xff] %vm477_vm0, %v4458_v32  ;;  %4491 = vst.msk [vmem:[%s8358_s10 + $0x48] sm:$0xff] %vm477_vm0, %v4459_v60  ;;  %v4470_v34 = vmax.f32 %v8330_v4, 0.0  ;;  %v4471_v25 = vmax.f32 %v8333_v6, 0.0  ;;  %v4472_v12 = vmax.f32 %v8336_v18, 0.0  ;;  %v4473_v35 = vmax.f32 %v8339_v52, 0.0 }
 0x6ba   : > { %4492 = vst.msk [vmem:[%s8358_s10 + $0x50] sm:$0xff] %vm477_vm0, %v4460_v16  ;;  %4493 = vst.msk [vmem:[%s8358_s10 + $0x58] sm:$0xff] %vm477_vm0, %v4461_v17  ;;  %v4474_v62 = vmax.f32 %v8342_v5, 0.0  ;;  %v4475_v11 = vmax.f32 %v8345_v58, 0.0  ;;  %v4476_v31 = vmax.f32 %v8348_v26, 0.0  ;;  %v4477_v57 = vmax.f32 %v8351_v10, 0.0 }
 0x6bb   : > { %4494 = vst.msk [vmem:[%s8358_s10 + $0x60] sm:$0xff] %vm477_vm0, %v4462_v38  ;;  %4495 = vst.msk [vmem:[%s8358_s10 + $0x68] sm:$0xff] %vm477_vm0, %v4463_v28  ;;  %v4478_v4 = vmax.f32 %v8361_v47, 0.0  ;;  %v4479_v6 = vmax.f32 %v8365_v53, 0.0  ;;  %v4480_v18 = vmax.f32 %v8369_v23, 0.0  ;;  %v4481_v52 = vmax.f32 %v8373_v56, 0.0 }
 0x6bc   : > { %4496 = vst.msk [vmem:[%s8358_s10 + $0x70] sm:$0xff] %vm477_vm0, %v4464_v15  ;;  %4497 = vst.msk [vmem:[%s8358_s10 + $0x78] sm:$0xff] %vm477_vm0, %v4465_v30  ;;  %v9022_v41 = vld [vmem:[#allocation5_spill] sm:$0xff]  ;;  %v9023_v1 = vld [vmem:[#allocation4_spill] sm:$0xff] }
 0x6bd   : > { %4498 = vst.msk [vmem:[%s8358_s10 + $0x80] sm:$0xff] %vm477_vm0, %v4466_v37  ;;  %4499 = vst.msk [vmem:[%s8358_s10 + $0x88] sm:$0xff] %vm477_vm0, %v4467_v20  ;;  %v9024_v60 = vld [vmem:[#allocation63_spill] sm:$0xff]  ;;  %v9025_v17 = vld [vmem:[#allocation6_spill] sm:$0xff] }
 0x6be   : > { %4500 = vst.msk [vmem:[%s8358_s10 + $0x90] sm:$0xff] %vm477_vm0, %v4468_v59  ;;  %4501 = vst.msk [vmem:[%s8358_s10 + $0x98] sm:$0xff] %vm477_vm0, %v4469_v29  ;;  %v9026_v28 = vld [vmem:[#allocation7_spill] sm:$0xff]  ;;  %v9027_v30 = vld [vmem:[#allocation9_spill] sm:$0xff] }
 0x6bf   : > { %4502 = vst.msk [vmem:[%s8358_s10 + $0xa0] sm:$0xff] %vm477_vm0, %v4470_v34  ;;  %4503 = vst.msk [vmem:[%s8358_s10 + $0xa8] sm:$0xff] %vm477_vm0, %v4471_v25  ;;  %v9029_v59 = vld [vmem:[#allocation10_spill] sm:$0xff]  ;;  %v9032_v25 = vld [vmem:[#allocation13_spill] sm:$0xff] }
 0x6c0   : > { %4504 = vst.msk [vmem:[%s8358_s10 + $0xb0] sm:$0xff] %vm477_vm0, %v4472_v12  ;;  %4505 = vst.msk [vmem:[%s8358_s10 + $0xb8] sm:$0xff] %vm477_vm0, %v4473_v35  ;;  %v9033_v35 = vld [vmem:[#allocation69_spill] sm:$0xff] }
 0x6c1   : > { %4506 = vst.msk [vmem:[%s8358_s10 + $0xc0] sm:$0xff] %vm477_vm0, %v4474_v62  ;;  %4507 = vst.msk [vmem:[%s8358_s10 + $0xc8] sm:$0xff] %vm477_vm0, %v4475_v11  ;;  %v9034_v11 = vld [vmem:[#allocation12_spill] sm:$0xff] }
 0x6c2   : > { %4508 = vst.msk [vmem:[%s8358_s10 + $0xd0] sm:$0xff] %vm477_vm0, %v4476_v31  ;;  %4509 = vst.msk [vmem:[%s8358_s10 + $0xd8] sm:$0xff] %vm477_vm0, %v4477_v57  ;;  %v9035_v57 = vld [vmem:[#allocation14_spill] sm:$0xff] }
 0x6c3   : > { %4510 = vst.msk [vmem:[%s8358_s10 + $0xe0] sm:$0xff] %vm477_vm0, %v4478_v4  ;;  %4511 = vst.msk [vmem:[%s8358_s10 + $0xe8] sm:$0xff] %vm477_vm0, %v4479_v6  ;;  %v9036_v6 = vld [vmem:[#allocation15_spill] sm:$0xff] }
 0x6c4   : > { %4512 = vst.msk [vmem:[%s8358_s10 + $0xf0] sm:$0xff] %vm477_vm0, %v4480_v18  ;;  %4513 = vst.msk [vmem:[%s8358_s10 + $0xf8] sm:$0xff] %vm477_vm0, %v4481_v52  ;;  %v9037_v18 = vld [vmem:[#allocation17_spill] sm:$0xff] }
 0x6ee   : > { %v4587_v45 = vpop.xlane.xlu0 %4586 }
 0x6ef   : > { %v4588_v5 = vmax.f32 %v4587_v45, 0.0 }
 0x6f1   : > { %v4589_v49 = vmul.f32 %v4588_v5, %v8227_v0  ;;  %v5708_v5 = vld [vmem:[%s5827_s21 + $0x100] sm:$0xff] }
 0x6f3   : > { %v4590_v58 = vsel %vm4367_vm6, %v4589_v49, 0.0 }
 0x6f4   : > { %v4591_v63 = vrot.slane %v4590_v58, 4 }
 0x6f6   : > { %v4592_v26 = vadd.f32 %v4591_v63, %v4590_v58  ;;  %v5709_v58 = vld [vmem:[%s5827_s21 + $0x108] sm:$0xff] }
 0x6f8   : > { %v4593_v48 = vrot.slane %v4592_v26, 2 }
 0x6fa   : > { %v4594_v10 = vadd.f32 %v4593_v48, %v4592_v26  ;;  %v5710_v26 = vld [vmem:[%s5827_s21 + $0x110] sm:$0xff] }
 0x6fc   : > { %v4595_v50 = vrot.slane %v4594_v10, 1 }
 0x6fe   : > { %v4596_v47 = vadd.f32 %v4595_v50, %v4594_v10  ;;  %v5711_v10 = vld [vmem:[%s5827_s21 + $0x118] sm:$0xff]  ;;  %v5712_v50 = vld [vmem:[%s5827_s21 + $0x120] sm:$0xff] }
 0x700   : > { %v4977_v43 = vmul.f32 -1.442695, %v4596_v47  ;;  %v5713_v47 = vld [vmem:[%s5827_s21 + $0x128] sm:$0xff] }
 0x702   : > { %5672 = vpow2.f32 %v4977_v43 }
 0x70c   : > { %v5673_v53 = vpop.eup %5672 }
 0x70d   : > { %v4600_v27 = vadd.f32 1.0, %v5673_v53  ;;  %v5714_v53 = vld [vmem:[%s5827_s21 + $0x130] sm:$0xff] }
 0x70f   : > { %5674 = vrcp.f32 %v4600_v27 }
 0x719   : > { %v5675_v23 = vpop.eup %5674 }
 0x71a   : > { %v4603_v3 = vmul.f32 %v5675_v23, %v8059_v19  ;;  %v4604_v56 = vmul.f32 %v5675_v23, %v8056_v36  ;;  %v4605_v0 = vmul.f32 %v5675_v23, %v8064_v9  ;;  %v4606_v44 = vmul.f32 %v5675_v23, %v8071_v51 }
 0x71b   : > { %v4607_v54 = vmul.f32 %v5675_v23, %v8074_v33  ;;  %v4608_v55 = vmul.f32 %v5675_v23, %v9021_v46  ;;  %v4609_v40 = vmul.f32 %v5675_v23, %v9022_v41  ;;  %v4610_v21 = vmul.f32 %v5675_v23, %v9023_v1  ;;  %v5718_v46 = vld [vmem:[%s5827_s21 + $0x150] sm:$0xff]  ;;  %v5719_v41 = vld [vmem:[%s5827_s21 + $0x158] sm:$0xff]  ;;  %v5720_v1 = vld [vmem:[%s5827_s21 + $0x160] sm:$0xff] }
 0x71c   : > { %v4611_v32 = vmul.f32 %v5675_v23, %v8101_v22  ;;  %v4612_v16 = vmul.f32 %v5675_v23, %v9024_v60  ;;  %v4613_v19 = vmul.f32 %v5675_v23, %v9025_v17  ;;  %v4614_v36 = vmul.f32 %v5675_v23, %v8118_v2  ;;  %v9028_v22 = vld [vmem:[#allocation8_spill] sm:$0xff]  ;;  %v5722_v17 = vld [vmem:[%s5827_s21 + $0x170] sm:$0xff] }
 0x71d   : > { %v4615_v9 = vmul.f32 %v5675_v23, %v8121_v61  ;;  %v4616_v51 = vmul.f32 %v5675_v23, %v8128_v8  ;;  %v4617_v33 = vmul.f32 %v5675_v23, %v8133_v13  ;;  %v4618_v38 = vmul.f32 %v5675_v23, %v8138_v39  ;;  %v9030_v8 = vld [vmem:[#allocation68_spill] sm:$0xff]  ;;  %v9031_v13 = vld [vmem:[#allocation11_spill] sm:$0xff] }
 0x71e   : > { %v4619_v15 = vmul.f32 %v5675_v23, %v9026_v28  ;;  %v4620_v37 = vmul.f32 %v5675_v23, %v9027_v30  ;;  %v4621_v20 = vmul.f32 %v5675_v23, %v9028_v22  ;;  %v4622_v29 = vmul.f32 %v5675_v23, %v9029_v59  ;;  %v5721_v60 = vld [vmem:[%s5827_s21 + $0x168] sm:$0xff]  ;;  %v5723_v28 = vld [vmem:[%s5827_s21 + $0x178] sm:$0xff]  ;;  %v5724_v30 = vld [vmem:[%s5827_s21 + $0x180] sm:$0xff] }
 0x71f   : > { %v4623_v2 = vmul.f32 %v5675_v23, %v8161_v42  ;;  %v4624_v61 = vmul.f32 %v5675_v23, %v8168_v7  ;;  %v4625_v34 = vmul.f32 %v5675_v23, %v9030_v8  ;;  %v4626_v39 = vmul.f32 %v5675_v23, %v9031_v13  ;;  %v5725_v22 = vld [vmem:[%s5827_s21 + $0x188] sm:$0xff]  ;;  %v5726_v59 = vld [vmem:[%s5827_s21 + $0x190] sm:$0xff]  ;;  %v5727_v8 = vld [vmem:[%s5827_s21 + $0x198] sm:$0xff] }
 0x720   : > { %v4627_v12 = vmul.f32 %v5675_v23, %v9032_v25  ;;  %v4628_v62 = vmul.f32 %v5675_v23, %v9033_v35  ;;  %v4629_v31 = vmul.f32 %v5675_v23, %v9034_v11  ;;  %v4630_v4 = vmul.f32 %v5675_v23, %v9035_v57  ;;  %v5728_v13 = vld [vmem:[%s5827_s21 + $0x1a0] sm:$0xff]  ;;  %v5729_v25 = vld [vmem:[%s5827_s21 + $0x1a8] sm:$0xff]  ;;  %v5730_v35 = vld [vmem:[%s5827_s21 + $0x1b0] sm:$0xff] }
 0x721   : > { %v4631_v42 = vmul.f32 %v5675_v23, %v9036_v6  ;;  %v4632_v7 = vmul.f32 %v5675_v23, %v9037_v18  ;;  %v8504_v52 = vmul.f32 %v5675_v23, %v8206_v14  ;;  %v8507_v45 = vmul.f32 %v5675_v23, %v8214_v24  ;;  %v5715_v23 = vld [vmem:[%s5827_s21 + $0x138] sm:$0xff]  ;;  %v5732_v57 = vld [vmem:[%s5827_s21 + $0x1c0] sm:$0xff] }
 0x722   : > { %v8510_v49 = vadd.f32 %v5708_v5, %v4603_v3  ;;  %v8513_v63 = vadd.f32 %v5709_v58, %v4604_v56  ;;  %v8516_v48 = vadd.f32 %v5710_v26, %v4605_v0  ;;  %v8519_v14 = vadd.f32 %v5711_v10, %v4606_v44  ;;  %v5716_v56 = vld [vmem:[%s5827_s21 + $0x140] sm:$0xff]  ;;  %v5717_v44 = vld [vmem:[%s5827_s21 + $0x148] sm:$0xff]  ;;  %v5731_v11 = vld [vmem:[%s5827_s21 + $0x1b8] sm:$0xff] }
 0x723   : > { %v8522_v24 = vadd.f32 %v5712_v50, %v4607_v54  ;;  %v8525_v43 = vadd.f32 %v5713_v47, %v4608_v55  ;;  %v8528_v27 = vadd.f32 %v5714_v53, %v4609_v40  ;;  %v8531_v3 = vadd.f32 %v5715_v23, %v4610_v21  ;;  %v5735_v58 = vld [vmem:[%s5827_s21 + $0x1d8] sm:$0xff]  ;;  %v5736_v26 = vld [vmem:[%s5827_s21 + $0x1e0] sm:$0xff] }
 0x724   : > { %v8534_v0 = vadd.f32 %v5716_v56, %v4611_v32  ;;  %v8537_v54 = vadd.f32 %v5717_v44, %v4612_v16  ;;  %v8540_v55 = vadd.f32 %v5718_v46, %v4613_v19  ;;  %v8543_v40 = vadd.f32 %v5719_v41, %v4614_v36 }
 0x725   : > { %v8546_v21 = vadd.f32 %v5720_v1, %v4615_v9  ;;  %v8549_v32 = vadd.f32 %v5721_v60, %v4616_v51  ;;  %v8552_v16 = vadd.f32 %v5722_v17, %v4617_v33  ;;  %v8555_v19 = vadd.f32 %v5723_v28, %v4618_v38 }
 0x726   : > { %v8558_v36 = vadd.f32 %v5724_v30, %v4619_v15  ;;  %v8561_v9 = vadd.f32 %v5725_v22, %v4620_v37  ;;  %v8564_v51 = vadd.f32 %v5726_v59, %v4621_v20  ;;  %v8567_v33 = vadd.f32 %v5727_v8, %v4622_v29  ;;  %v5733_v29 = vld [vmem:[%s5827_s21 + $0x1c8] sm:$0xff] }
 0x727   : > { %v8570_v38 = vadd.f32 %v5728_v13, %v4623_v2  ;;  %v8573_v15 = vadd.f32 %v5729_v25, %v4624_v61  ;;  %v8576_v37 = vadd.f32 %v5730_v35, %v4625_v34  ;;  %v8579_v20 = vadd.f32 %v5731_v11, %v4626_v39  ;;  %v5734_v2 = vld [vmem:[%s5827_s21 + $0x1d0] sm:$0xff]  ;;  %v5737_v34 = vld [vmem:[%s5827_s21 + $0x1e8] sm:$0xff] }
 0x728   : > { %v8582_v6 = vadd.f32 %v5732_v57, %v4627_v12  ;;  %v8585_v18 = vadd.f32 %v5733_v29, %v4628_v62  ;;  %v8588_v5 = vadd.f32 %v5734_v2, %v4629_v31  ;;  %v8591_v61 = vadd.f32 %v5735_v58, %v4630_v4  ;;  %v5738_v39 = vld [vmem:[%s5827_s21 + $0x1f0] sm:$0xff]  ;;  %v5739_v62 = vld [vmem:[%s5827_s21 + $0x1f8] sm:$0xff] }
 0x729   : > { %v8594_v10 = vadd.f32 %v5736_v26, %v4631_v42  ;;  %v8597_v50 = vadd.f32 %v5737_v34, %v4632_v7  ;;  %v8601_v12 = vadd.f32 %v5738_v39, %v8504_v52  ;;  %v8605_v31 = vadd.f32 %v5739_v62, %v8507_v45 }
 0x72a   : > { %v4667_v4 = vmax.f32 %v8510_v49, 0.0  ;;  %v4668_v42 = vmax.f32 %v8513_v63, 0.0  ;;  %v4669_v47 = vmax.f32 %v8516_v48, 0.0  ;;  %v4670_v7 = vmax.f32 %v8519_v14, 0.0 }
 0x72b   : > { %v4671_v53 = vmax.f32 %v8522_v24, 0.0  ;;  %v4672_v52 = vmax.f32 %v8525_v43, 0.0  ;;  %v4673_v23 = vmax.f32 %v8528_v27, 0.0  ;;  %v4674_v45 = vmax.f32 %v8531_v3, 0.0 }
 0x72c   : > { %v4675_v49 = vmax.f32 %v8534_v0, 0.0  ;;  %v4676_v63 = vmax.f32 %v8537_v54, 0.0  ;;  %v4677_v48 = vmax.f32 %v8540_v55, 0.0  ;;  %v4678_v14 = vmax.f32 %v8543_v40, 0.0  ;;  %4978 = vst.msk [vmem:[%s8358_s10 + $0x100] sm:$0xff] %vm477_vm0, %v4667_v4  ;;  %4979 = vst.msk [vmem:[%s8358_s10 + $0x108] sm:$0xff] %vm477_vm0, %v4668_v42 }
 0x72d   : > { %4980 = vst.msk [vmem:[%s8358_s10 + $0x110] sm:$0xff] %vm477_vm0, %v4669_v47  ;;  %4981 = vst.msk [vmem:[%s8358_s10 + $0x118] sm:$0xff] %vm477_vm0, %v4670_v7  ;;  %v4679_v24 = vmax.f32 %v8546_v21, 0.0  ;;  %v4680_v43 = vmax.f32 %v8549_v32, 0.0  ;;  %v4681_v27 = vmax.f32 %v8552_v16, 0.0  ;;  %v4682_v3 = vmax.f32 %v8555_v19, 0.0 }
 0x72e   : > { %4982 = vst.msk [vmem:[%s8358_s10 + $0x120] sm:$0xff] %vm477_vm0, %v4671_v53  ;;  %4983 = vst.msk [vmem:[%s8358_s10 + $0x128] sm:$0xff] %vm477_vm0, %v4672_v52  ;;  %v4683_v56 = vmax.f32 %v8558_v36, 0.0  ;;  %v4684_v0 = vmax.f32 %v8561_v9, 0.0  ;;  %v4685_v44 = vmax.f32 %v8564_v51, 0.0  ;;  %v4686_v54 = vmax.f32 %v8567_v33, 0.0 }
 0x72f   : > { %4984 = vst.msk [vmem:[%s8358_s10 + $0x130] sm:$0xff] %vm477_vm0, %v4673_v23  ;;  %4985 = vst.msk [vmem:[%s8358_s10 + $0x138] sm:$0xff] %vm477_vm0, %v4674_v45  ;;  %v4687_v46 = vmax.f32 %v8570_v38, 0.0  ;;  %v4688_v55 = vmax.f32 %v8573_v15, 0.0  ;;  %v4689_v41 = vmax.f32 %v8576_v37, 0.0  ;;  %v4690_v40 = vmax.f32 %v8579_v20, 0.0 }
 0x730   : > { %4986 = vst.msk [vmem:[%s8358_s10 + $0x140] sm:$0xff] %vm477_vm0, %v4675_v49  ;;  %4987 = vst.msk [vmem:[%s8358_s10 + $0x148] sm:$0xff] %vm477_vm0, %v4676_v63  ;;  %v4691_v1 = vmax.f32 %v8582_v6, 0.0  ;;  %v4692_v21 = vmax.f32 %v8585_v18, 0.0  ;;  %v4693_v60 = vmax.f32 %v8588_v5, 0.0  ;;  %v4694_v32 = vmax.f32 %v8591_v61, 0.0 }
 0x731   : > { %4988 = vst.msk [vmem:[%s8358_s10 + $0x150] sm:$0xff] %vm477_vm0, %v4677_v48  ;;  %4989 = vst.msk [vmem:[%s8358_s10 + $0x158] sm:$0xff] %vm477_vm0, %v4678_v14  ;;  %v4695_v17 = vmax.f32 %v8594_v10, 0.0  ;;  %v4696_v16 = vmax.f32 %v8597_v50, 0.0  ;;  %v4697_v28 = vmax.f32 %v8601_v12, 0.0  ;;  %v4698_v19 = vmax.f32 %v8605_v31, 0.0 }
 0x732   : > { %4990 = vst.msk [vmem:[%s8358_s10 + $0x160] sm:$0xff] %vm477_vm0, %v4679_v24  ;;  %4991 = vst.msk [vmem:[%s8358_s10 + $0x168] sm:$0xff] %vm477_vm0, %v4680_v43 }
 0x733   : > { %4992 = vst.msk [vmem:[%s8358_s10 + $0x170] sm:$0xff] %vm477_vm0, %v4681_v27  ;;  %4993 = vst.msk [vmem:[%s8358_s10 + $0x178] sm:$0xff] %vm477_vm0, %v4682_v3 }
 0x734   : > { %4994 = vst.msk [vmem:[%s8358_s10 + $0x180] sm:$0xff] %vm477_vm0, %v4683_v56  ;;  %4995 = vst.msk [vmem:[%s8358_s10 + $0x188] sm:$0xff] %vm477_vm0, %v4684_v0 }
 0x735   : > { %4996 = vst.msk [vmem:[%s8358_s10 + $0x190] sm:$0xff] %vm477_vm0, %v4685_v44  ;;  %4997 = vst.msk [vmem:[%s8358_s10 + $0x198] sm:$0xff] %vm477_vm0, %v4686_v54 }
 0x736   : > { %4998 = vst.msk [vmem:[%s8358_s10 + $0x1a0] sm:$0xff] %vm477_vm0, %v4687_v46  ;;  %4999 = vst.msk [vmem:[%s8358_s10 + $0x1a8] sm:$0xff] %vm477_vm0, %v4688_v55 }
 0x737   : > { %5000 = vst.msk [vmem:[%s8358_s10 + $0x1b0] sm:$0xff] %vm477_vm0, %v4689_v41  ;;  %5001 = vst.msk [vmem:[%s8358_s10 + $0x1b8] sm:$0xff] %vm477_vm0, %v4690_v40 }
 0x738   : > { %5002 = vst.msk [vmem:[%s8358_s10 + $0x1c0] sm:$0xff] %vm477_vm0, %v4691_v1  ;;  %5003 = vst.msk [vmem:[%s8358_s10 + $0x1c8] sm:$0xff] %vm477_vm0, %v4692_v21 }
 0x739   : > { %5004 = vst.msk [vmem:[%s8358_s10 + $0x1d0] sm:$0xff] %vm477_vm0, %v4693_v60  ;;  %5005 = vst.msk [vmem:[%s8358_s10 + $0x1d8] sm:$0xff] %vm477_vm0, %v4694_v32 }
 0x73a   : > { %5006 = vst.msk [vmem:[%s8358_s10 + $0x1e0] sm:$0xff] %vm477_vm0, %v4695_v17  ;;  %5007 = vst.msk [vmem:[%s8358_s10 + $0x1e8] sm:$0xff] %vm477_vm0, %v4696_v16 }
 0x73b   : > { %5008 = vst.msk [vmem:[%s8358_s10 + $0x1f0] sm:$0xff] %vm477_vm0, %v4697_v28  ;;  %5009 = vst.msk [vmem:[%s8358_s10 + $0x1f8] sm:$0xff] %vm477_vm0, %v4698_v19 }
 0x73c PF: > { %s19_s30 = sadd.s32 1, %s5746_s30  }
 0x73d   : > { %p16_p4 = scmp.ge.s32.totalorder %s19_s30, 4  }
 0x73f   :  { %18 = sbr.rel (!%p16_p4) target bundleno = 1 (0x1), region = 92 }

</bundles_post_ra>
